<compile_context>
chip_gen: v6e
topology: v6e:2x2x1
jax: 0.10.0
libtpu: 0.0.40
codegen_flags: <defaults>
</compile_context>

<pallas_src>
import functools
import math

import jax
import jax.numpy as jnp
from jax import lax
from jax.experimental import pallas as pl
from jax.experimental.pallas import tpu as pltpu

_LANE = 128
_EPS = 1e-5
_MXU_DTYPE = jnp.bfloat16   # activations/weights staged once in bf16; f32 accum


def _round_up(v, m):
    return (v + m - 1) // m * m


def _bytes(shape, dtype):
    return math.prod(int(d) for d in shape) * jnp.dtype(dtype).itemsize


def _compiler_params(sem, live_block_bytes):
    # Explicit VMEM budget: double-buffered blocks + headroom, clamped so the
    # request stays comfortably inside v7x's 64 MiB per-TensorCore VMEM.
    vmem = int(min(max(2 * live_block_bytes + (1 << 20), 16 << 20), 48 << 20))
    return pltpu.CompilerParams(dimension_semantics=sem, vmem_limit_bytes=vmem)


def _cost(flops, operands):
    return pl.CostEstimate(
        flops=int(flops), transcendentals=0,
        bytes_accessed=int(sum(_bytes(o.shape, o.dtype) for o in operands)))


# ---------------------------------------------------------------------------
# Pass 1: conv1 (3x3, stride) + fused 1x1 shortcut, per-image BN partial stats
# ---------------------------------------------------------------------------
def _conv1_shortcut_kernel(*refs, ho, wo, stride, cin, cout_p, has_sc):
    s = stride
    nph = s * s
    x_refs = refs[:nph]                       # phase-split padded input, bf16, cin unpadded
    w1_ref = refs[nph]
    pos = nph + 1
    wc_ref = None
    if has_sc:
        wc_ref = refs[pos]
        pos += 1
    a1_ref, st1_ref = refs[pos], refs[pos + 1]
    sc_ref = sts_ref = None
    if has_sc:
        sc_ref, sts_ref = refs[pos + 2], refs[pos + 3]

    mo = ho * wo

    def tap(dy, dx):
        # stride handled by the wrapper-side phase split -> contiguous slices only
        ph = (dy % s) * s + (dx % s)
        r0, c0 = dy // s, dx // s
        return x_refs[ph][:, r0:r0 + ho, c0:c0 + wo, :].reshape(mo, cin)

    # 9 accumulated MXU matmuls with K = cin (actual, NOT zero-padded to 128).
    acc = jnp.zeros((mo, cout_p), jnp.float32)
    sc = None
    for t in range(9):                         # static unroll over taps
        dy, dx = divmod(t, 3)
        a = tap(dy, dx)                        # already bf16 -> no per-tap cast
        if has_sc and t == 4:
            # shortcut 1x1 weights are concatenated onto the centre tap along N,
            # so one MXU pass emits both the conv1 and the shortcut accumulators.
            d = jnp.dot(a, wc_ref[...], preferred_element_type=jnp.float32)
            acc = acc + d[:, :cout_p]
            sc = d[:, cout_p:]
        else:
            acc = acc + jnp.dot(a, w1_ref[t], preferred_element_type=jnp.float32)

    a1_ref[...] = acc.reshape(a1_ref.shape)
    st1_ref[:, 0:1, :] = jnp.sum(acc, axis=0, keepdims=True)[None]
    st1_ref[:, 1:2, :] = jnp.sum(acc * acc, axis=0, keepdims=True)[None]
    if has_sc:
        sc_ref[...] = sc.reshape(sc_ref.shape)
        sts_ref[:, 0:1, :] = jnp.sum(sc, axis=0, keepdims=True)[None]
        sts_ref[:, 1:2, :] = jnp.sum(sc * sc, axis=0, keepdims=True)[None]


# ---------------------------------------------------------------------------
# Pass 2: BN1-apply + ReLU + conv2 (3x3, stride 1), per-image BN partial stats
# ---------------------------------------------------------------------------
def _bn1_relu_conv2_kernel(a1_ref, scale1_ref, shift1_ref, w2_ref,
                           a2_ref, st2_ref, y1p_ref, *, ho, wo, cout_p):
    mo = ho * wo
    y1 = jnp.maximum(a1_ref[...] * scale1_ref[...] + shift1_ref[...], 0.0)

    # bf16 halo scratch: zero only the 1-px border (the interior is fully
    # overwritten each step) -- no full zeros store + offset overwrite.
    zr = jnp.zeros((1, wo + 2, cout_p), y1p_ref.dtype)
    zc = jnp.zeros((ho + 2, 1, cout_p), y1p_ref.dtype)
    y1p_ref[0:1, :, :] = zr
    y1p_ref[ho + 1:ho + 2, :, :] = zr
    y1p_ref[:, 0:1, :] = zc
    y1p_ref[:, wo + 1:wo + 2, :] = zc
    y1p_ref[1:ho + 1, 1:wo + 1, :] = y1.reshape(ho, wo, cout_p).astype(y1p_ref.dtype)

    acc = jnp.zeros((mo, cout_p), jnp.float32)
    for t in range(9):
        dy, dx = divmod(t, 3)
        a = y1p_ref[dy:dy + ho, dx:dx + wo, :].reshape(mo, cout_p)   # bf16, no cast
        acc = acc + jnp.dot(a, w2_ref[t], preferred_element_type=jnp.float32)

    a2_ref[...] = acc.reshape(a2_ref.shape)
    st2_ref[:, 0:1, :] = jnp.sum(acc, axis=0, keepdims=True)[None]
    st2_ref[:, 1:2, :] = jnp.sum(acc * acc, axis=0, keepdims=True)[None]


# ---------------------------------------------------------------------------
# Pass 3: fused epilogue  out = relu(BN2(a2) + shortcut)
# ---------------------------------------------------------------------------
def _epilogue_kernel(*refs, has_sc):
    if has_sc:
        a2_ref, res_ref, s2_ref, h2_ref, ss_ref, hs_ref, o_ref = refs
        res = res_ref[...] * ss_ref[...] + hs_ref[...]
    else:
        a2_ref, res_ref, s2_ref, h2_ref, o_ref = refs
        res = res_ref[...]                         # identity residual (exact f32)
    o_ref[...] = jnp.maximum(a2_ref[...] * s2_ref[...] + h2_ref[...] + res, 0.0)


# ---------------------------------------------------------------------------
# Wrappers
# ---------------------------------------------------------------------------
def basic_block_forward_nhwc(x, params, stride):
    """x: (N, H, W, Cin) float32 NHWC -> (N, Ho, Wo, Cout) float32 NHWC."""
    x = x.astype(jnp.float32)
    n, h, w, cin = x.shape
    cout = params["w1"].shape[-1]
    s = int(stride)
    assert s in (1, 2), "ResNet BasicBlock only uses stride 1 or 2"
    ho, wo = (h - 1) // s + 1, (w - 1) // s + 1
    mo = ho * wo
    m_total = n * mo
    cout_p = _round_up(max(cout, _LANE), _LANE)
    has_sc = "ws" in params
    if not has_sc:
        assert s == 1 and cin == cout, "identity shortcut needs stride 1, cin == cout"
    f32 = jnp.float32

    # ---- wrapper-side layout prep -------------------------------------------
    # bf16 staging once; NO channel padding of the input in HBM; pad=1 spatially
    # then phase-split ("space-to-depth") so stride>1 taps are contiguous slices.
    xpad = jnp.pad(x, ((0, 0), (1, 1), (1, 1), (0, 0))).astype(_MXU_DTYPE)
    # rows needed per phase: max within-phase tap offset is 2 // s, plus ho rows
    hpp, wpp = ho + (2 // s), wo + (2 // s)
    phases = []
    for p in range(s):
        for q in range(s):
            ph = xpad[:, p::s, q::s, :][:, :hpp, :wpp, :]
            ph = jnp.pad(ph, ((0, 0), (0, hpp - ph.shape[1]),
                              (0, wpp - ph.shape[2]), (0, 0)))
            phases.append(ph)

    def padvec(v):
        return jnp.pad(v.astype(f32), (0, cout_p - cout))

    w1 = jnp.pad(params["w1"], ((0, 0), (0, 0), (0, 0), (0, cout_p - cout)))
    w1 = w1.reshape(9, cin, cout_p).astype(_MXU_DTYPE)
    w2 = jnp.pad(params["w2"],
                 ((0, 0), (0, 0), (0, cout_p - cout), (0, cout_p - cout)))
    w2 = w2.reshape(9, cout_p, cout_p).astype(_MXU_DTYPE)
    if has_sc:
        ws = jnp.pad(params["ws"], ((0, 0), (0, cout_p - cout))).astype(_MXU_DTYPE)
        wc = jnp.concatenate([w1[4], ws], axis=1)                # (cin, 2*cout_p)

    img4 = pl.BlockSpec((1, ho, wo, cout_p), lambda b: (b, 0, 0, 0))
    st3 = pl.BlockSpec((1, 2, cout_p), lambda b: (b, 0, 0))

    # ---- pass 1 --------------------------------------------------------------
    p1_in = list(phases) + [w1] + ([wc] if has_sc else [])
    p1_in_specs = (
        [pl.BlockSpec((1, hpp, wpp, cin), lambda b: (b, 0, 0, 0)) for _ in phases]
        + [pl.BlockSpec((9, cin, cout_p), lambda b: (0, 0, 0))]
        + ([pl.BlockSpec((cin, 2 * cout_p), lambda b: (0, 0))] if has_sc else []))
    p1_out_shape = [jax.ShapeDtypeStruct((n, ho, wo, cout_p), f32),
                    jax.ShapeDtypeStruct((n, 2, cout_p), f32)]
    p1_out_specs = [img4, st3]
    if has_sc:
        p1_out_shape += [jax.ShapeDtypeStruct((n, ho, wo, cout_p), f32),
                         jax.ShapeDtypeStruct((n, 2, cout_p), f32)]
        p1_out_specs += [img4, st3]
    blk1 = (sum(_bytes((1, hpp, wpp, cin), _MXU_DTYPE) for _ in phases)
            + _bytes(w1.shape, _MXU_DTYPE)
            + (_bytes(wc.shape, _MXU_DTYPE) if has_sc else 0)
            + (4 if has_sc else 2) * _bytes((1, ho, wo, cout_p), f32))
    flops1 = 2 * n * mo * cin * cout_p * (10 if has_sc else 9)
    p1 = pl.pallas_call(
        functools.partial(_conv1_shortcut_kernel, ho=ho, wo=wo, stride=s,
                          cin=cin, cout_p=cout_p, has_sc=has_sc),
        out_shape=tuple(p1_out_shape),
        grid=(n,),
        in_specs=p1_in_specs,
        out_specs=tuple(p1_out_specs),
        compiler_params=_compiler_params(("parallel",), blk1),
        cost_estimate=_cost(flops1, p1_in + p1_out_shape),
    )(*p1_in)
    if has_sc:
        a1, st1, scacc, sts = p1
    else:
        a1, st1 = p1
        scacc = sts = None

    # ---- BN coefficients from per-image partials (O(Cout) wrapper reduction) -
    def bn_coeffs(stats, gamma, beta):
        ssum = jnp.sum(stats[:, 0, :], axis=0)
        ssq = jnp.sum(stats[:, 1, :], axis=0)
        mean = ssum / m_total
        var = jnp.maximum(ssq / m_total - mean * mean, 0.0)
        scale = padvec(gamma) * lax.rsqrt(var + _EPS)
        shift = padvec(beta) - mean * scale
        return scale.reshape(1, cout_p), shift.reshape(1, cout_p)

    scale1, shift1 = bn_coeffs(st1, params["g1"], params["b1"])

    # ---- pass 2 --------------------------------------------------------------
    vec1 = pl.BlockSpec((1, cout_p), lambda b: (0, 0))
    p2_in = [a1, scale1, shift1, w2]
    p2_in_specs = [img4, vec1, vec1,
                   pl.BlockSpec((9, cout_p, cout_p), lambda b: (0, 0, 0))]
    p2_out_shape = (jax.ShapeDtypeStruct((n, ho, wo, cout_p), f32),
                    jax.ShapeDtypeStruct((n, 2, cout_p), f32))
    blk2 = (2 * _bytes((1, ho, wo, cout_p), f32) + _bytes(w2.shape, _MXU_DTYPE)
            + _bytes((ho + 2, wo + 2, cout_p), _MXU_DTYPE))
    flops2 = 2 * n * mo * 9 * cout_p * cout_p
    a2, st2 = pl.pallas_call(
        functools.partial(_bn1_relu_conv2_kernel, ho=ho, wo=wo, cout_p=cout_p),
        out_shape=p2_out_shape,
        grid=(n,),
        in_specs=p2_in_specs,
        out_specs=(img4, st3),
        scratch_shapes=[pltpu.VMEM((ho + 2, wo + 2, cout_p), _MXU_DTYPE)],
        compiler_params=_compiler_params(("parallel",), blk2),
        cost_estimate=_cost(flops2, p2_in + list(p2_out_shape)),
    )(*p2_in)

    scale2, shift2 = bn_coeffs(st2, params["g2"], params["b2"])

    # ---- pass 3: fused epilogue ----------------------------------------------
    th = 8 if ho % 8 == 0 else ho
    tile4 = pl.BlockSpec((1, th, wo, cout_p), lambda b, i: (b, i, 0, 0))
    vec3 = pl.BlockSpec((1, cout_p), lambda b, i: (0, 0))
    if has_sc:
        scale_s, shift_s = bn_coeffs(sts, params["gs"], params["bs"])
        p3_in = [a2, scacc, scale2, shift2, scale_s, shift_s]
        p3_in_specs = [tile4, tile4, vec3, vec3, vec3, vec3]
    else:
        res = jnp.pad(x, ((0, 0), (0, 0), (0, 0), (0, cout_p - cout)))
        p3_in = [a2, res, scale2, shift2]
        p3_in_specs = [tile4, tile4, vec3, vec3]
    out3_shape = jax.ShapeDtypeStruct((n, ho, wo, cout_p), f32)
    blk3 = 3 * _bytes((1, th, wo, cout_p), f32)
    out_p = pl.pallas_call(
        functools.partial(_epilogue_kernel, has_sc=has_sc),
        out_shape=out3_shape,
        grid=(n, ho // th),
        in_specs=p3_in_specs,
        out_specs=tile4,
        compiler_params=_compiler_params(("parallel", "parallel"), blk3),
        cost_estimate=_cost(6 * n * mo * cout_p, p3_in + [out3_shape]),
    )(*p3_in)

    return out_p[..., :cout]


def basic_block_forward(x_nchw, params, stride):
    # NOTE: in a full network keep activations NHWC end-to-end and call
    # basic_block_forward_nhwc directly; this wrapper only matches PyTorch NCHW.
    x = jnp.transpose(x_nchw, (0, 2, 3, 1))
    y = basic_block_forward_nhwc(x, params, stride)
    return jnp.transpose(y, (0, 3, 1, 2))


# ---------------------------------------------------------------------------
# Parameter init (conv weights HWIO, BN gamma/beta)
# ---------------------------------------------------------------------------
def init_basic_block_params(key, in_channels, out_channels, stride):
    ks = jax.random.split(key, 6)

    def conv_w(k, shape, fan_in):
        return (jax.random.normal(k, shape) / jnp.sqrt(fan_in)).astype(jnp.float32)

    def gamma_beta(k, c):
        kg, kb = jax.random.split(k)
        return ((1.0 + 0.1 * jax.random.normal(kg, (c,))).astype(jnp.float32),
                (0.1 * jax.random.normal(kb, (c,))).astype(jnp.float32))

    p = {"w1": conv_w(ks[0], (3, 3, in_channels, out_channels), 9 * in_channels)}
    p["g1"], p["b1"] = gamma_beta(ks[1], out_channels)
    p["w2"] = conv_w(ks[2], (3, 3, out_channels, out_channels), 9 * out_channels)
    p["g2"], p["b2"] = gamma_beta(ks[3], out_channels)
    if stride != 1 or in_channels != out_channels:
        p["ws"] = conv_w(ks[4], (in_channels, out_channels), in_channels)
        p["gs"], p["bs"] = gamma_beta(ks[5], out_channels)
    return p


# ---------------------------------------------------------------------------
# Pure-JAX reference (training-mode BN, biased variance, eps=1e-5)
# ---------------------------------------------------------------------------
def _bn_train(x, g, b, eps=_EPS):
    mean = jnp.mean(x, axis=(0, 1, 2))
    var = jnp.mean((x - mean) ** 2, axis=(0, 1, 2))
    return (x - mean) * lax.rsqrt(var + eps) * g + b


def basic_block_reference_nhwc(x, params, stride, *, quantize_matmul_inputs=False):
    # quantize_matmul_inputs emulates the kernel's bf16 MXU feed so the bf16
    # path can be checked tightly; False gives the exact f32 reference.
    if quantize_matmul_inputs:
        q = lambda t: t.astype(jnp.bfloat16).astype(jnp.float32)
    else:
        q = lambda t: t

    def conv(a, wk, s, pad):
        return lax.conv_general_dilated(
            q(a), q(wk), (s, s), pad,
            dimension_numbers=("NHWC", "HWIO", "NHWC"),
            precision=lax.Precision.HIGHEST)

    o = jnp.maximum(_bn_train(conv(x, params["w1"], stride, ((1, 1), (1, 1))),
                              params["g1"], params["b1"]), 0.0)
    o = _bn_train(conv(o, params["w2"], 1, ((1, 1), (1, 1))),
                  params["g2"], params["b2"])
    if "ws" in params:
        cin, cout = params["ws"].shape
        sc = _bn_train(conv(x, params["ws"].reshape(1, 1, cin, cout), stride, "VALID"),
                       params["gs"], params["bs"])
    else:
        sc = x
    return jnp.maximum(o + sc, 0.0)


def basic_block_reference(x_nchw, params, stride, *, quantize_matmul_inputs=False):
    x = jnp.transpose(x_nchw, (0, 2, 3, 1)).astype(jnp.float32)
    y = basic_block_reference_nhwc(x, params, stride,
                                   quantize_matmul_inputs=quantize_matmul_inputs)
    return jnp.transpose(y, (0, 3, 1, 2))


# ---------------------------------------------------------------------------
if __name__ == "__main__":
    root = jax.random.PRNGKey(0)
    configs = [
        # (N, Cin, H, W, Cout, stride)
        (2, 16, 16, 16, 16, 1),   # identity shortcut
        (2, 16, 16, 16, 32, 1),   # 1x1-conv shortcut (channel change)
        (2, 16, 32, 32, 32, 2),   # 1x1-conv shortcut (stride 2)
    ]
    for cfg_i, (n, cin, h, w, cout, stride) in enumerate(configs):
        kx, kp = jax.random.split(jax.random.fold_in(root, cfg_i))
        x = jax.random.normal(kx, (n, cin, h, w), dtype=jnp.float32)   # NCHW
        params = init_basic_block_params(kp, cin, cout, stride)
        ho, wo = (h - 1) // stride + 1, (w - 1) // stride + 1

        out = jax.block_until_ready(basic_block_forward(x, params, stride))
        assert out.shape == (n, cout, ho, wo), out.shape
        ref = jax.block_until_ready(basic_block_reference(
            x, params, stride, quantize_matmul_inputs=True))
        err = float(jnp.max(jnp.abs(out - ref)))
        assert err <= 2e-2, (cfg_i, err)

    print("KERNEL_OK")
</pallas_src>

<mosaic_0001>
module attributes {stable_mosaic.version = 11 : i64} {
  func.func @_conv1_shortcut_kernel(%arg0: i32, %arg1: memref<1x18x18x16xbf16, #tpu.memory_space<vmem>>, %arg2: memref<9x16x128xbf16, #tpu.memory_space<vmem>>, %arg3: memref<1x16x16x128xf32, #tpu.memory_space<vmem>>, %arg4: memref<1x2x128xf32, #tpu.memory_space<vmem>>) attributes {dimension_semantics = [#tpu.dimension_semantics<parallel>], iteration_bounds = array<i64: 2>, scalar_prefetch = 0 : i64, scratch_operands = 0 : i64, tpu.core_type = #tpu.core_type<tc>, window_params = [{transform_indices = @transform_0, window_bounds = array<i64: 1, 18, 18, 16>}, {pipeline_mode = #tpu.pipeline_mode<synchronous>, transform_indices = @transform_1, window_bounds = array<i64: 9, 16, 128>}, {transform_indices = @transform_2, window_bounds = array<i64: 1, 16, 16, 128>}, {transform_indices = @transform_3, window_bounds = array<i64: 1, 2, 128>}]} {
    %cst = arith.constant 0.000000e+00 : f32
    %0 = vector.broadcast %cst : f32 to vector<256x128xf32>
    %c0 = arith.constant 0 : index
    %c0_0 = arith.constant 0 : index
    %c0_1 = arith.constant 0 : index
    %c0_2 = arith.constant 0 : index
    %1 = vector.load %arg1[%c0, %c0_0, %c0_1, %c0_2] : memref<1x18x18x16xbf16, #tpu.memory_space<vmem>>, vector<1x16x16x16xbf16>
    %2 = vector.shape_cast %1 : vector<1x16x16x16xbf16> to vector<256x16xbf16>
    %c0_3 = arith.constant 0 : index
    %c0_4 = arith.constant 0 : index
    %c0_5 = arith.constant 0 : index
    %3 = vector.load %arg2[%c0_3, %c0_4, %c0_5] : memref<9x16x128xbf16, #tpu.memory_space<vmem>>, vector<1x16x128xbf16>
    %4 = vector.shape_cast %3 : vector<1x16x128xbf16> to vector<16x128xbf16>
    %cst_6 = arith.constant dense<0.000000e+00> : vector<256x128xf32>
    %5 = tpu.matmul %2, %4, %cst_6 {dimension_numbers = #tpu.dot_dimension_numbers<[1], [0], [0], [1], [0, 0, 1, 1], [], []>} : vector<256x16xbf16>, vector<16x128xbf16>, vector<256x128xf32> -> vector<256x128xf32>
    %6 = arith.addf %0, %5 : vector<256x128xf32>
    %c0_7 = arith.constant 0 : index
    %c0_8 = arith.constant 0 : index
    %c1 = arith.constant 1 : index
    %c0_9 = arith.constant 0 : index
    %7 = vector.load %arg1[%c0_7, %c0_8, %c1, %c0_9] : memref<1x18x18x16xbf16, #tpu.memory_space<vmem>>, vector<1x16x16x16xbf16>
    %8 = vector.shape_cast %7 : vector<1x16x16x16xbf16> to vector<256x16xbf16>
    %c1_10 = arith.constant 1 : index
    %c0_11 = arith.constant 0 : index
    %c0_12 = arith.constant 0 : index
    %9 = vector.load %arg2[%c1_10, %c0_11, %c0_12] : memref<9x16x128xbf16, #tpu.memory_space<vmem>>, vector<1x16x128xbf16>
    %10 = vector.shape_cast %9 : vector<1x16x128xbf16> to vector<16x128xbf16>
    %cst_13 = arith.constant dense<0.000000e+00> : vector<256x128xf32>
    %11 = tpu.matmul %8, %10, %cst_13 {dimension_numbers = #tpu.dot_dimension_numbers<[1], [0], [0], [1], [0, 0, 1, 1], [], []>} : vector<256x16xbf16>, vector<16x128xbf16>, vector<256x128xf32> -> vector<256x128xf32>
    %12 = arith.addf %6, %11 : vector<256x128xf32>
    %c0_14 = arith.constant 0 : index
    %c0_15 = arith.constant 0 : index
    %c2 = arith.constant 2 : index
    %c0_16 = arith.constant 0 : index
    %13 = vector.load %arg1[%c0_14, %c0_15, %c2, %c0_16] : memref<1x18x18x16xbf16, #tpu.memory_space<vmem>>, vector<1x16x16x16xbf16>
    %14 = vector.shape_cast %13 : vector<1x16x16x16xbf16> to vector<256x16xbf16>
    %c2_17 = arith.constant 2 : index
    %c0_18 = arith.constant 0 : index
    %c0_19 = arith.constant 0 : index
    %15 = vector.load %arg2[%c2_17, %c0_18, %c0_19] : memref<9x16x128xbf16, #tpu.memory_space<vmem>>, vector<1x16x128xbf16>
    %16 = vector.shape_cast %15 : vector<1x16x128xbf16> to vector<16x128xbf16>
    %cst_20 = arith.constant dense<0.000000e+00> : vector<256x128xf32>
    %17 = tpu.matmul %14, %16, %cst_20 {dimension_numbers = #tpu.dot_dimension_numbers<[1], [0], [0], [1], [0, 0, 1, 1], [], []>} : vector<256x16xbf16>, vector<16x128xbf16>, vector<256x128xf32> -> vector<256x128xf32>
    %18 = arith.addf %12, %17 : vector<256x128xf32>
    %c0_21 = arith.constant 0 : index
    %c1_22 = arith.constant 1 : index
    %c0_23 = arith.constant 0 : index
    %c0_24 = arith.constant 0 : index
    %19 = vector.load %arg1[%c0_21, %c1_22, %c0_23, %c0_24] : memref<1x18x18x16xbf16, #tpu.memory_space<vmem>>, vector<1x16x16x16xbf16>
    %20 = vector.shape_cast %19 : vector<1x16x16x16xbf16> to vector<256x16xbf16>
    %c3 = arith.constant 3 : index
    %c0_25 = arith.constant 0 : index
    %c0_26 = arith.constant 0 : index
    %21 = vector.load %arg2[%c3, %c0_25, %c0_26] : memref<9x16x128xbf16, #tpu.memory_space<vmem>>, vector<1x16x128xbf16>
    %22 = vector.shape_cast %21 : vector<1x16x128xbf16> to vector<16x128xbf16>
    %cst_27 = arith.constant dense<0.000000e+00> : vector<256x128xf32>
    %23 = tpu.matmul %20, %22, %cst_27 {dimension_numbers = #tpu.dot_dimension_numbers<[1], [0], [0], [1], [0, 0, 1, 1], [], []>} : vector<256x16xbf16>, vector<16x128xbf16>, vector<256x128xf32> -> vector<256x128xf32>
    %24 = arith.addf %18, %23 : vector<256x128xf32>
    %c0_28 = arith.constant 0 : index
    %c1_29 = arith.constant 1 : index
    %c1_30 = arith.constant 1 : index
    %c0_31 = arith.constant 0 : index
    %25 = vector.load %arg1[%c0_28, %c1_29, %c1_30, %c0_31] : memref<1x18x18x16xbf16, #tpu.memory_space<vmem>>, vector<1x16x16x16xbf16>
    %26 = vector.shape_cast %25 : vector<1x16x16x16xbf16> to vector<256x16xbf16>
    %c4 = arith.constant 4 : index
    %c0_32 = arith.constant 0 : index
    %c0_33 = arith.constant 0 : index
    %27 = vector.load %arg2[%c4, %c0_32, %c0_33] : memref<9x16x128xbf16, #tpu.memory_space<vmem>>, vector<1x16x128xbf16>
    %28 = vector.shape_cast %27 : vector<1x16x128xbf16> to vector<16x128xbf16>
    %cst_34 = arith.constant dense<0.000000e+00> : vector<256x128xf32>
    %29 = tpu.matmul %26, %28, %cst_34 {dimension_numbers = #tpu.dot_dimension_numbers<[1], [0], [0], [1], [0, 0, 1, 1], [], []>} : vector<256x16xbf16>, vector<16x128xbf16>, vector<256x128xf32> -> vector<256x128xf32>
    %30 = arith.addf %24, %29 : vector<256x128xf32>
    %c0_35 = arith.constant 0 : index
    %c1_36 = arith.constant 1 : index
    %c2_37 = arith.constant 2 : index
    %c0_38 = arith.constant 0 : index
    %31 = vector.load %arg1[%c0_35, %c1_36, %c2_37, %c0_38] : memref<1x18x18x16xbf16, #tpu.memory_space<vmem>>, vector<1x16x16x16xbf16>
    %32 = vector.shape_cast %31 : vector<1x16x16x16xbf16> to vector<256x16xbf16>
    %c5 = arith.constant 5 : index
    %c0_39 = arith.constant 0 : index
    %c0_40 = arith.constant 0 : index
    %33 = vector.load %arg2[%c5, %c0_39, %c0_40] : memref<9x16x128xbf16, #tpu.memory_space<vmem>>, vector<1x16x128xbf16>
    %34 = vector.shape_cast %33 : vector<1x16x128xbf16> to vector<16x128xbf16>
    %cst_41 = arith.constant dense<0.000000e+00> : vector<256x128xf32>
    %35 = tpu.matmul %32, %34, %cst_41 {dimension_numbers = #tpu.dot_dimension_numbers<[1], [0], [0], [1], [0, 0, 1, 1], [], []>} : vector<256x16xbf16>, vector<16x128xbf16>, vector<256x128xf32> -> vector<256x128xf32>
    %36 = arith.addf %30, %35 : vector<256x128xf32>
    %c0_42 = arith.constant 0 : index
    %c2_43 = arith.constant 2 : index
    %c0_44 = arith.constant 0 : index
    %c0_45 = arith.constant 0 : index
    %37 = vector.load %arg1[%c0_42, %c2_43, %c0_44, %c0_45] : memref<1x18x18x16xbf16, #tpu.memory_space<vmem>>, vector<1x16x16x16xbf16>
    %38 = vector.shape_cast %37 : vector<1x16x16x16xbf16> to vector<256x16xbf16>
    %c6 = arith.constant 6 : index
    %c0_46 = arith.constant 0 : index
    %c0_47 = arith.constant 0 : index
    %39 = vector.load %arg2[%c6, %c0_46, %c0_47] : memref<9x16x128xbf16, #tpu.memory_space<vmem>>, vector<1x16x128xbf16>
    %40 = vector.shape_cast %39 : vector<1x16x128xbf16> to vector<16x128xbf16>
    %cst_48 = arith.constant dense<0.000000e+00> : vector<256x128xf32>
    %41 = tpu.matmul %38, %40, %cst_48 {dimension_numbers = #tpu.dot_dimension_numbers<[1], [0], [0], [1], [0, 0, 1, 1], [], []>} : vector<256x16xbf16>, vector<16x128xbf16>, vector<256x128xf32> -> vector<256x128xf32>
    %42 = arith.addf %36, %41 : vector<256x128xf32>
    %c0_49 = arith.constant 0 : index
    %c2_50 = arith.constant 2 : index
    %c1_51 = arith.constant 1 : index
    %c0_52 = arith.constant 0 : index
    %43 = vector.load %arg1[%c0_49, %c2_50, %c1_51, %c0_52] : memref<1x18x18x16xbf16, #tpu.memory_space<vmem>>, vector<1x16x16x16xbf16>
    %44 = vector.shape_cast %43 : vector<1x16x16x16xbf16> to vector<256x16xbf16>
    %c7 = arith.constant 7 : index
    %c0_53 = arith.constant 0 : index
    %c0_54 = arith.constant 0 : index
    %45 = vector.load %arg2[%c7, %c0_53, %c0_54] : memref<9x16x128xbf16, #tpu.memory_space<vmem>>, vector<1x16x128xbf16>
    %46 = vector.shape_cast %45 : vector<1x16x128xbf16> to vector<16x128xbf16>
    %cst_55 = arith.constant dense<0.000000e+00> : vector<256x128xf32>
    %47 = tpu.matmul %44, %46, %cst_55 {dimension_numbers = #tpu.dot_dimension_numbers<[1], [0], [0], [1], [0, 0, 1, 1], [], []>} : vector<256x16xbf16>, vector<16x128xbf16>, vector<256x128xf32> -> vector<256x128xf32>
    %48 = arith.addf %42, %47 : vector<256x128xf32>
    %c0_56 = arith.constant 0 : index
    %c2_57 = arith.constant 2 : index
    %c2_58 = arith.constant 2 : index
    %c0_59 = arith.constant 0 : index
    %49 = vector.load %arg1[%c0_56, %c2_57, %c2_58, %c0_59] : memref<1x18x18x16xbf16, #tpu.memory_space<vmem>>, vector<1x16x16x16xbf16>
    %50 = vector.shape_cast %49 : vector<1x16x16x16xbf16> to vector<256x16xbf16>
    %c8 = arith.constant 8 : index
    %c0_60 = arith.constant 0 : index
    %c0_61 = arith.constant 0 : index
    %51 = vector.load %arg2[%c8, %c0_60, %c0_61] : memref<9x16x128xbf16, #tpu.memory_space<vmem>>, vector<1x16x128xbf16>
    %52 = vector.shape_cast %51 : vector<1x16x128xbf16> to vector<16x128xbf16>
    %cst_62 = arith.constant dense<0.000000e+00> : vector<256x128xf32>
    %53 = tpu.matmul %50, %52, %cst_62 {dimension_numbers = #tpu.dot_dimension_numbers<[1], [0], [0], [1], [0, 0, 1, 1], [], []>} : vector<256x16xbf16>, vector<16x128xbf16>, vector<256x128xf32> -> vector<256x128xf32>
    %54 = arith.addf %48, %53 : vector<256x128xf32>
    %55 = vector.shape_cast %54 : vector<256x128xf32> to vector<1x16x16x128xf32>
    %c0_63 = arith.constant 0 : index
    %c0_64 = arith.constant 0 : index
    %c0_65 = arith.constant 0 : index
    %c0_66 = arith.constant 0 : index
    %56 = vector.load %arg3[%c0_63, %c0_64, %c0_65, %c0_66] : memref<1x16x16x128xf32, #tpu.memory_space<vmem>>, vector<1x16x16x128xf32>
    tpu.vector_store %arg3[%c0_63, %c0_64, %c0_65, %c0_66], %55 {strides = array<i32>} : memref<1x16x16x128xf32, #tpu.memory_space<vmem>>, vector<1x16x16x128xf32>,
    %cst_67 = arith.constant dense<0.000000e+00> : vector<128xf32>
    %57 = vector.multi_reduction <add>, %54, %cst_67 [0] : vector<256x128xf32> to vector<128xf32>
    %58 = vector.shape_cast %57 : vector<128xf32> to vector<1x128xf32>
    %59 = vector.shape_cast %58 : vector<1x128xf32> to vector<1x1x128xf32>
    %c0_68 = arith.constant 0 : index
    %c0_69 = arith.constant 0 : index
    %c0_70 = arith.constant 0 : index
    %60 = vector.load %arg4[%c0_68, %c0_69, %c0_70] : memref<1x2x128xf32, #tpu.memory_space<vmem>>, vector<1x1x128xf32>
    tpu.vector_store %arg4[%c0_68, %c0_69, %c0_70], %59 {strides = array<i32>} : memref<1x2x128xf32, #tpu.memory_space<vmem>>, vector<1x1x128xf32>,
    %61 = arith.mulf %54, %54 : vector<256x128xf32>
    %cst_71 = arith.constant dense<0.000000e+00> : vector<128xf32>
    %62 = vector.multi_reduction <add>, %61, %cst_71 [0] : vector<256x128xf32> to vector<128xf32>
    %63 = vector.shape_cast %62 : vector<128xf32> to vector<1x128xf32>
    %64 = vector.shape_cast %63 : vector<1x128xf32> to vector<1x1x128xf32>
    %c0_72 = arith.constant 0 : index
    %c1_73 = arith.constant 1 : index
    %c0_74 = arith.constant 0 : index
    %65 = vector.load %arg4[%c0_72, %c1_73, %c0_74] : memref<1x2x128xf32, #tpu.memory_space<vmem>>, vector<1x1x128xf32>
    tpu.vector_store %arg4[%c0_72, %c1_73, %c0_74], %64 {strides = array<i32>} : memref<1x2x128xf32, #tpu.memory_space<vmem>>, vector<1x1x128xf32>,
    return
  }
  func.func @transform_0(%arg0: i32) -> (i32, i32, i32, i32) {
    %c0_i32 = arith.constant 0 : i32
    %c0_i32_0 = arith.constant 0 : i32
    %c0_i32_1 = arith.constant 0 : i32
    %c0_i32_2 = arith.constant 0 : i32
    return %arg0, %c0_i32, %c0_i32_0, %c0_i32_1 : i32, i32, i32, i32
  }
  func.func @transform_1(%arg0: i32) -> (i32, i32, i32) {
    %c0_i32 = arith.constant 0 : i32
    %c0_i32_0 = arith.constant 0 : i32
    %c0_i32_1 = arith.constant 0 : i32
    %c0_i32_2 = arith.constant 0 : i32
    return %c0_i32, %c0_i32_0, %c0_i32_1 : i32, i32, i32
  }
  func.func @transform_2(%arg0: i32) -> (i32, i32, i32, i32) {
    %c0_i32 = arith.constant 0 : i32
    %c0_i32_0 = arith.constant 0 : i32
    %c0_i32_1 = arith.constant 0 : i32
    %c0_i32_2 = arith.constant 0 : i32
    return %arg0, %c0_i32, %c0_i32_0, %c0_i32_1 : i32, i32, i32, i32
  }
  func.func @transform_3(%arg0: i32) -> (i32, i32, i32) {
    %c0_i32 = arith.constant 0 : i32
    %c0_i32_0 = arith.constant 0 : i32
    %c0_i32_1 = arith.constant 0 : i32
    return %arg0, %c0_i32, %c0_i32_0 : i32, i32, i32
  }
}

</mosaic_0001>

<bundles_post_ra>
// kernel: tpu_custom_call.1
= control target key start
LH: loop header
LB: loop body
LE: loop exit
PB: predicated region body
PF: predicated region fallthrough
CT: control target
= control target key end

     0   :  { %9 = vsyncpa [#allocation3], 0  ;;  %s8949_s0 = inlined_call_operand.vmem [shape: bf16[2,18,18,16], index: 0, kind: input, shape index: {}]   ;;  %s8950_s1 = inlined_call_operand.vmem [shape: bf16[9,16,128], index: 1, kind: input, shape index: {}]   ;;  %s8951_s2 = inlined_call_operand.hbm [shape: f32[2,16,16,128], index: 2, kind: output, shape index: {0}]   ;;  %s8952_s3 = inlined_call_operand.hbm [shape: f32[2,2,128], index: 3, kind: output, shape index: {1}]  }
   0x1   :  { %11 = vsyncpa [#allocation3 + $0x1], 0 }
   0x2   :  { %12 = vsyncpa [#allocation5], 0 }
   0x3   :  { %14 = vsyncpa [#allocation5 + $0x1], 0  ;;  %s6295_s12 = smov 0   ;;  %s6297_s13 = smov 0  }
   0x4   :  { %s6299_s14 = smov 0   ;;  %s6301_s15 = smov 0  }
   0x5 LB: > { %s6316_s16 = sadd.s32 4294967295, %s6269_s15   ;;  %s5041_s17 = sadd.s32 4294967294, %s6269_s15   ;;  %s6269_s15 = sphi %s6301_s15, %s9202_s15   ;;  %s6265_s14 = sphi %s6299_s14, %s9201_s14   ;;  %s6261_s13 = sphi %s6297_s13, %s9200_s13   ;;  %s6257_s12 = sphi %s6295_s12, %s9199_s12  }
   0x6   : > { %s6320_s18 = sadd.s32 1, %s6269_s15   ;;  %s74_s19 = sadd.s32 1, %s6265_s14 }
   0x7   : > { %s71_s20 = ssub.s32 %s6269_s15, %s6320_s18  ;;  %p84_p0 = scmp.ne.s32.totalorder %s6265_s14, %s6261_s13 }
   0x8   : > { %p72_p1 = scmp.eq.s32.totalorder %s71_s20, 0  ;;  %p85_p2 = scmp.eq.s32.totalorder %s6316_s16, 1 }
   0x9   : > { %p90_p3 = scmp.ne.s32.totalorder %s6261_s13, %s6257_s12  ;;  %p91_p4 = scmp.eq.s32.totalorder %s5041_s17, 1 }
   0xa   : > { %s6331_s21 = scalar_select %p72_p1, %s6265_s14, %s74_s19  }
   0xb   : > { %p6333_p5 = por %p85_p2, %p84_p0  ;;  %p6337_p6 = por %p91_p4, %p90_p3 }
   0xc   : > { %p5044_p7 = scmp.ge.s32.totalorder %s6269_s15, 1  ;;  %p146_p8 = scmp.lt.s32.totalorder %s6269_s15, 3 }
   0xe   : > { %p147_p9 = pnand %p5044_p7, %p146_p8 }
  0x10   : > { %150 = sbr.rel (%p147_p9) target bundleno = 607 (0x25f), region = 28 }
  0x15   : > { %v6117_v0 = vld [vmem:[%s8950_s1 + $0x8] sm:$0xff]   ;;  %p175_p10 = scmp.lt.s32.totalorder %s6316_s16, 1  ;;  %v6350_v1 = vld [vmem:[%s8950_s1] sm:$0xff]   ;;  %v6356_v2 = vld [vmem:[%s8950_s1 + $0x10] sm:$0xff]   ;;  %vm231_vm0 = vsmask.f32 3328 }
  0x16   : > { %6068 = vmatprep.subr.bf16.mxu1 %v6117_v0  ;;  %5762 = vmatprep.subr.bf16.mxu0 %v6117_v0  ;;  %vm232_vm1 = vsmask.f32 7440  ;;  %vm675_vm2 = vcmask 130048   ;;  %vm1228_vm4 = vcmask 1042432   ;;  %vm1229_vm5 = vcmask 1046532   ;;  %s8750_s29 = sand.u32 1, %s6261_s13  }
  0x17   : > { %s176_s28 = scalar_select %p175_p10, %s6316_s16, 1  ;;  %6069 = vmatpush3.bf16.msra.mxu1 %v6117_v0  ;;  %5763 = vmatpush3.bf16.msra.mxu0 %v6117_v0  ;;  %vm6401_vm3 = vmor %vm231_vm0, %vm232_vm1 }
  0x18   : > { %5796 = vmatprep.subr.bf16.mxu1 %v6350_v1  ;;  %5830 = vmatprep.subr.bf16.mxu0 %v6356_v2  ;;  %vm6677_vm6 = vmor %vm1228_vm4, %vm1229_vm5  ;;  %s5045_s30 = sshll.u32 %s8750_s29, 8  ;;  %s5608_s5 = sshll.u32 %s6316_s16, 12 }
  0x19   : > { %s6070_s4 = smul.u32 216, %s176_s28  ;;  %s8885_s9 = scalar_lea.hbm %s8951_s2, %s5608_s5 }
  0x1a   : > { %s4916_s10 = scalar_lea.sflag [#allocation3], %s8750_s29  ;;  %s6271_s17 = smov [#allocation2]  }
  0x1b   : > { %s6363_s7 = scalar_lea.vmem %s8949_s0, %s6070_s4  ;;  %s8768_s4 = scalar_lea.vmem [#allocation2], %s5045_s30 }
  0x1c   : > { %v6366_v3 = vld [vmem:[%s6363_s7] sm:$0xf]  ;;  %v6369_v4 = vld [vmem:[%s6363_s7 + $0x4] sm:$0xf]  ;;  %v6372_v5 = vld [vmem:[%s6363_s7 + $0x8] sm:$0x1] }
  0x1d   : > { %v235_v6 = vshrl.u32 %v6366_v3, 16  ;;  %v238_v7 = vshll.u32 %v6366_v3, 16  ;;  %v244_v8 = vshll.u32 %v6369_v4, 16  ;;  %v248_v9 = vshrl.u32 %v6369_v4, 16  ;;  %v6379_v10 = vld [vmem:[%s6363_s7 + $0x60] sm:$0xf] }
  0x1e   : > { %v254_v11 = vshll.u32 %v6372_v5, 16  ;;  %v6383_v12 = vld [vmem:[%s6363_s7 + $0x64] sm:$0xf]  ;;  %v6386_v13 = vld [vmem:[%s6363_s7 + $0x68] sm:$0x1]  ;;  %v427_v19 = vshrl.u32 %v6379_v10, 16 }
  0x1f   : > { %v237_v14 = vrot.slane %v235_v6, 4  ;;  %v240_v15 = vrot.slane %v238_v7, 5  ;;  %v246_v16 = vrot.slane %v244_v8, 5  ;;  %v250_v17 = vrot.slane %v248_v9, 4  ;;  %v6394_v26 = vld [vmem:[%s6363_s7 + $0xc] sm:$0xf] }
  0x20   : > { %v256_v18 = vrot.slane %v254_v11, 5  ;;  %v430_v20 = vshll.u32 %v6379_v10, 16  ;;  %v436_v21 = vshll.u32 %v6383_v12, 16  ;;  %v440_v24 = vshrl.u32 %v6383_v12, 16  ;;  %v6397_v27 = vld [vmem:[%s6363_s7 + $0x10] sm:$0xf] }
  0x21   : > { %v241_v22 = vor.u32 %v240_v15, %v237_v14  ;;  %v251_v23 = vor.u32 %v250_v17, %v246_v16  ;;  %v446_v25 = vshll.u32 %v6386_v13, 16  ;;  %v429_v30 = vrot.slane %v427_v19, 4  ;;  %v6407_v38 = vld [vmem:[%s6363_s7 + $0x14] sm:$0x1]  ;;  %v199_v50 = vld [vmem:[%s6363_s7 + $0x6c] sm:$0xf] }
  0x22   : > { %v432_v31 = vrot.slane %v430_v20, 5  ;;  %v438_v32 = vrot.slane %v436_v21, 5  ;;  %v442_v35 = vrot.slane %v440_v24, 4  ;;  %v259_v39 = vshrl.u32 %v6394_v26, 16  ;;  %v6420_v55 = vld [vmem:[%s6363_s7 + $0x70] sm:$0xf] }
  0x23   : > { %v242_v33 = vrot.slane %v241_v22, 4  ;;  %v252_v34 = vrot.slane %v251_v23, 4  ;;  %v448_v36 = vrot.slane %v446_v25, 5  ;;  %v262_v40 = vshll.u32 %v6394_v26, 16  ;;  %v6428_v60 = vld [vmem:[%s6363_s7 + $0x74] sm:$0x1] }
  0x24   : > { %v433_v37 = vor.u32 %v432_v31, %v429_v30  ;;  %v268_v41 = vshll.u32 %v6397_v27, 16  ;;  %v443_v44 = vor.u32 %v442_v35, %v438_v32  ;;  %v272_v45 = vshrl.u32 %v6397_v27, 16  ;;  %v6433_v6 = vld [vmem:[%s6363_s7 + $0x18] sm:$0xf]  ;;  %v6445_v22 = vld [vmem:[%s6363_s7 + $0x20] sm:$0x1] }
  0x25   : > { %v247_v42 = vsel %vm6401_vm3, %v242_v33, %v246_v16  ;;  %v257_v43 = vsel %vm6401_vm3, %v252_v34, %v256_v18  ;;  %v261_v48 = vrot.slane %v259_v39, 4  ;;  %v264_v49 = vrot.slane %v262_v40, 5  ;;  %v6439_v18 = vld [vmem:[%s6363_s7 + $0x1c] sm:$0xf]  ;;  %s4934_s6 = sshll.u32 %s8768_s4, 4  ;;  %s6183_s19 = sshll.u32 %s6271_s17, 4  ;;  %s8887_s6 = int_to_ptr.vmem [resolvable:$true] %s4934_s6  ;;  %s6184_s19 = int_to_ptr.vmem [resolvable:$false] %s6183_s19 }
  0x26   : > { %v5050_v46 = vcombine.low %v247_v42, %v257_v43  ;;  %v434_v47 = vrot.slane %v433_v37, 4  ;;  %v444_v51 = vrot.slane %v443_v44, 4  ;;  %v270_v52 = vrot.slane %v268_v41, 5  ;;  %v6456_v37 = vld [vmem:[%s8950_s1 + $0x20] sm:$0xff]   ;;  %v6461_v43 = vld [vmem:[%s6363_s7 + $0x7c] sm:$0xf]  ;;  %p6186_p0 = scmp.lt.s32.totalorder %s8887_s6, %s6184_s19 }
  0x27   : > { %v274_v53 = vrot.slane %v272_v45, 4  ;;  %v278_v54 = vshll.u32 %v6407_v38, 16  ;;  %v265_v57 = vor.u32 %v264_v49, %v261_v48  ;;  %v451_v0 = vshrl.u32 %v199_v50, 16  ;;  %8984 = vst [vmem:[#allocation8_spill] sm:$0xff] %v6461_v43  ;;  %s6179_s11 = scalar_lea.vmem %s8887_s6, 4096  ;;  %s6185_s20 = scalar_lea.vmem %s6184_s19, 8192 }
  0x28   : > { %5764 = vmatprep.mubr.msk.bf16.mxu0 %vm675_vm2, %v5050_v46  ;;  %v439_v56 = vsel %vm6401_vm3, %v434_v47, %v438_v32  ;;  %v449_v61 = vsel %vm6401_vm3, %v444_v51, %v448_v36  ;;  %v454_v9 = vshll.u32 %v199_v50, 16  ;;  %v460_v11 = vshll.u32 %v6420_v55, 16  ;;  %v201_v32 = vld [vmem:[%s6363_s7 + $0x78] sm:$0xf]  ;;  %p6180_p11 = scmp.ne.s32.totalorder %s8887_s6, %s6179_s11  ;;  %p6187_p1 = scmp.lt.s32.totalorder %s6185_s20, %s6179_s11 }
  0x29   : > { %v275_v62 = vor.u32 %v274_v53, %v270_v52  ;;  %v280_v63 = vrot.slane %v278_v54, 5  ;;  %v5058_v7 = vcombine.low %v439_v56, %v449_v61  ;;  %v266_v8 = vrot.slane %v265_v57, 4  ;;  %v6472_v61 = vld [vmem:[%s6363_s7 + $0x24] sm:$0xf] }
  0x2a   : > { %v453_v15 = vrot.slane %v451_v0, 4  ;;  %v464_v16 = vshrl.u32 %v6420_v55, 16  ;;  %v470_v17 = vshll.u32 %v6428_v60, 16  ;;  %v456_v20 = vrot.slane %v454_v9, 5  ;;  %p6181_p12 = pnand %p6180_p11, %p6333_p5  ;;  %p6188_p2 = por %p6187_p1, %p6186_p0 }
  0x2b   : > { %v276_v14 = vrot.slane %v275_v62, 4  ;;  %5780 = vmatprep.mubr.msk.bf16.mxu1 %vm675_vm2, %v5058_v7  ;;  %v271_v19 = vsel %vm6401_vm3, %v266_v8, %v270_v52  ;;  %v462_v21 = vrot.slane %v460_v11, 5  ;;  %v283_v23 = vshrl.u32 %v6433_v6, 16  ;;  %v6466_v52 = vld [vmem:[%s6363_s7 + $0x80] sm:$0x1] }
  0x2c   : > { %v466_v25 = vrot.slane %v464_v16, 4  ;;  %v472_v30 = vrot.slane %v470_v17, 5  ;;  %v286_v31 = vshll.u32 %v6433_v6, 16  ;;  %v457_v34 = vor.u32 %v456_v20, %v453_v15  ;;  %8985 = vst [vmem:[#allocation9_spill] sm:$0xff] %v6466_v52  ;;  %v6479_v7 = vld [vmem:[%s6363_s7 + $0x28] sm:$0xf]  ;;  %p6182_p13 = pneg %p6181_p12 }
  0x2d   : > { %v281_v24 = vsel %vm6401_vm3, %v276_v14, %v280_v63  ;;  %v285_v35 = vrot.slane %v283_v23, 4  ;;  %v292_v36 = vshll.u32 %v6439_v18, 16  ;;  %v296_v41 = vshrl.u32 %v6439_v18, 16  ;;  %v6485_v15 = vld [vmem:[%s8950_s1 + $0x18] sm:$0xff]   ;;  %v6490_v20 = vld [vmem:[%s6363_s7 + $0x2c] sm:$0x1] }
  0x2e   : > { %v5051_v33 = vcombine.low %v271_v19, %v281_v24  ;;  %v467_v39 = vor.u32 %v466_v25, %v462_v21  ;;  %v288_v40 = vrot.slane %v286_v31, 5  ;;  %v302_v42 = vshll.u32 %v6445_v22, 16  ;;  %v6497_v31 = vld [vmem:[%s6363_s7 + $0x84] sm:$0xf]  ;;  %p6189_p3 = pnand %p6188_p2, %p6182_p13 }
  0x2f   : > { %v458_v44 = vrot.slane %v457_v34, 4  ;;  %v294_v45 = vrot.slane %v292_v36, 5  ;;  %v475_v46 = vshrl.u32 %v201_v32, 16  ;;  %v478_v47 = vshll.u32 %v201_v32, 16  ;;  %v6504_v36 = vld [vmem:[%s6363_s7 + $0x88] sm:$0xf] }
  0x30   : > { %5765 = vmatmul.mubr.msk.bf16.vlgmr.msra.gmra.mxu0 %vm675_vm2, %v5051_v33  ;;  %v468_v48 = vrot.slane %v467_v39, 4  ;;  %v289_v49 = vor.u32 %v288_v40, %v285_v35  ;;  %v298_v50 = vrot.slane %v296_v41, 4  ;;  %v304_v51 = vrot.slane %v302_v42, 5 }
  0x31   : > { %5831 = vmatpush3.bf16.msra.mxu0 %v6356_v2  ;;  %v463_v53 = vsel %vm6401_vm3, %v458_v44, %v462_v21  ;;  %v477_v54 = vrot.slane %v475_v46, 4  ;;  %v480_v56 = vrot.slane %v478_v47, 5  ;;  %v484_v57 = vshll.u32 %v6461_v43, 16  ;;  %v6511_v46 = vld [vmem:[%s6363_s7 + $0x8c] sm:$0x1] }
  0x32   : > { %5898 = vmatprep.subr.bf16.mxu0 %v6456_v37  ;;  %v473_v2 = vsel %vm6401_vm3, %v468_v48, %v472_v30  ;;  %v290_v62 = vrot.slane %v289_v49, 4  ;;  %v299_v63 = vor.u32 %v298_v50, %v294_v45  ;;  %v488_v0 = vshrl.u32 %v6461_v43, 16 }
  0x33   : > { %v5059_v8 = vcombine.low %v463_v53, %v473_v2  ;;  %v481_v9 = vor.u32 %v480_v56, %v477_v54  ;;  %v486_v11 = vrot.slane %v484_v57, 5  ;;  %v494_v14 = vshll.u32 %v6466_v52, 16  ;;  %v6519_v53 = vld [vmem:[%s6363_s7 + $0x30] sm:$0xf] }
  0x34   : > { %v295_v16 = vsel %vm6401_vm3, %v290_v62, %v294_v45  ;;  %v300_v17 = vrot.slane %v299_v63, 4  ;;  %v490_v19 = vrot.slane %v488_v0, 4  ;;  %v307_v21 = vshrl.u32 %v6472_v61, 16  ;;  %v6524_v62 = vld [vmem:[%s6363_s7 + $0x34] sm:$0xf] }
  0x35   : > { %5781 = vmatmul.mubr.msk.bf16.vlgmr.msra.gmra.mxu1 %vm675_vm2, %v5059_v8  ;;  %v482_v23 = vrot.slane %v481_v9, 4  ;;  %v496_v24 = vrot.slane %v494_v14, 5  ;;  %v310_v25 = vshll.u32 %v6472_v61, 16  ;;  %v316_v30 = vshll.u32 %v6479_v7, 16 }
  0x36   : > { %5797 = vmatpush3.bf16.msra.mxu1 %v6350_v1  ;;  %v305_v32 = vsel %vm6401_vm3, %v300_v17, %v304_v51  ;;  %v491_v33 = vor.u32 %v490_v19, %v486_v11  ;;  %v309_v34 = vrot.slane %v307_v21, 4  ;;  %v320_v35 = vshrl.u32 %v6479_v7, 16 }
  0x37   : > { %v5052_v39 = vcombine.low %v295_v16, %v305_v32  ;;  %v487_v40 = vsel %vm6401_vm3, %v482_v23, %v486_v11  ;;  %v312_v41 = vrot.slane %v310_v25, 5  ;;  %v318_v42 = vrot.slane %v316_v30, 5  ;;  %5864 = vmatprep.subr.bf16.mxu1 %v6485_v15  ;;  %v6532_v23 = vld [vmem:[%s6363_s7 + $0x38] sm:$0x1]  ;;  %v6537_v30 = vld [vmem:[%s6363_s7 + $0x90] sm:$0xf] }
  0x38   : > { %v492_v1 = vrot.slane %v491_v33, 4  ;;  %v322_v44 = vrot.slane %v320_v35, 4  ;;  %v326_v45 = vshll.u32 %v6490_v20, 16  ;;  %v499_v47 = vshrl.u32 %v6497_v31, 16 }
  0x39   : > { %5768 = vmatprep.mubr.msk.bf16.mxu0 %vm675_vm2, %v5052_v39  ;;  %v313_v48 = vor.u32 %v312_v41, %v309_v34  ;;  %v502_v49 = vshll.u32 %v6497_v31, 16  ;;  %v508_v50 = vshll.u32 %v6504_v36, 16  ;;  %v512_v51 = vshrl.u32 %v6504_v36, 16  ;;  %v6542_v39 = vld [vmem:[%s6363_s7 + $0x94] sm:$0xf] }
  0x3a   : > { %v497_v54 = vsel %vm6401_vm3, %v492_v1, %v496_v24  ;;  %v323_v56 = vor.u32 %v322_v44, %v318_v42  ;;  %v328_v57 = vrot.slane %v326_v45, 5  ;;  %v501_v2 = vrot.slane %v499_v47, 4 }
  0x3b   : > { %v5060_v63 = vcombine.low %v487_v40, %v497_v54  ;;  %v314_v0 = vrot.slane %v313_v48, 4  ;;  %v504_v8 = vrot.slane %v502_v49, 5  ;;  %v510_v9 = vrot.slane %v508_v50, 5 }
  0x3c   : > { %v324_v11 = vrot.slane %v323_v56, 4  ;;  %v514_v14 = vrot.slane %v512_v51, 4  ;;  %v518_v16 = vshll.u32 %v6511_v46, 16  ;;  %v331_v17 = vshrl.u32 %v6519_v53, 16  ;;  %v6551_v51 = vld [vmem:[%s6363_s7 + $0x98] sm:$0x1] }
  0x3d   : > { %5784 = vmatprep.mubr.msk.bf16.mxu1 %vm675_vm2, %v5060_v63  ;;  %v319_v19 = vsel %vm6401_vm3, %v314_v0, %v318_v42  ;;  %v505_v21 = vor.u32 %v504_v8, %v501_v2  ;;  %v334_v24 = vshll.u32 %v6519_v53, 16  ;;  %v340_v25 = vshll.u32 %v6524_v62, 16  ;;  %8986 = vst [vmem:[#allocation10_spill] sm:$0xff] %v6551_v51 }
  0x3e   : > { %v329_v32 = vsel %vm6401_vm3, %v324_v11, %v328_v57  ;;  %v515_v33 = vor.u32 %v514_v14, %v510_v9  ;;  %v520_v34 = vrot.slane %v518_v16, 5  ;;  %v333_v35 = vrot.slane %v331_v17, 4  ;;  %v6556_v57 = vld [vmem:[%s6363_s7 + $0x3c] sm:$0xf]  ;;  %v6561_v11 = vld [vmem:[%s6363_s7 + $0x40] sm:$0xf] }
  0x3f   : > { %v5053_v40 = vcombine.low %v319_v19, %v329_v32  ;;  %v506_v41 = vrot.slane %v505_v21, 4  ;;  %v336_v42 = vrot.slane %v334_v24, 5  ;;  %v342_v1 = vrot.slane %v340_v25, 5 }
  0x40   : > { %v516_v44 = vrot.slane %v515_v33, 4  ;;  %v344_v45 = vshrl.u32 %v6524_v62, 16  ;;  %v350_v47 = vshll.u32 %v6532_v23, 16  ;;  %v523_v48 = vshrl.u32 %v6537_v30, 16 }
  0x41   : > { %5769 = vmatmul.mubr.msk.bf16.gmra.mxu0 %vm675_vm2, %v5053_v40  ;;  %v511_v49 = vsel %vm6401_vm3, %v506_v41, %v510_v9  ;;  %v337_v50 = vor.u32 %v336_v42, %v333_v35  ;;  %v526_v54 = vshll.u32 %v6537_v30, 16  ;;  %v532_v56 = vshll.u32 %v6542_v39, 16  ;;  %v6575_v41 = vld [vmem:[%s6363_s7 + $0x9c] sm:$0xf] }
  0x42   : > { %v521_v2 = vsel %vm6401_vm3, %v516_v44, %v520_v34  ;;  %v346_v63 = vrot.slane %v344_v45, 4  ;;  %v352_v0 = vrot.slane %v350_v47, 5  ;;  %v525_v8 = vrot.slane %v523_v48, 4  ;;  %v6570_v34 = vld [vmem:[%s6363_s7 + $0x44] sm:$0x1]  ;;  %8987 = vst [vmem:[#allocation11_spill] sm:$0xff] %v6575_v41 }
  0x43   : > { %v5061_v9 = vcombine.low %v511_v49, %v521_v2  ;;  %v338_v14 = vrot.slane %v337_v50, 4  ;;  %v528_v16 = vrot.slane %v526_v54, 5  ;;  %v534_v17 = vrot.slane %v532_v56, 5  ;;  %v6579_v54 = vld [vmem:[%s6363_s7 + $0xa0] sm:$0xf] }
  0x44   : > { %v347_v19 = vor.u32 %v346_v63, %v342_v1  ;;  %v536_v21 = vshrl.u32 %v6542_v39, 16  ;;  %v542_v24 = vshll.u32 %v6551_v51, 16  ;;  %v355_v25 = vshrl.u32 %v6556_v57, 16  ;;  %8988 = vst [vmem:[#allocation12_spill] sm:$0xff] %v6579_v54  ;;  %v1181_v51 = vld [vmem:[%s6363_s7 + $0xc] sm:$0xe] }
  0x45   : > { %5785 = vmatmul.mubr.msk.bf16.gmra.mxu1 %vm675_vm2, %v5061_v9  ;;  %v343_v32 = vsel %vm6401_vm3, %v338_v14, %v342_v1  ;;  %v529_v33 = vor.u32 %v528_v16, %v525_v8  ;;  %v358_v35 = vshll.u32 %v6556_v57, 16  ;;  %v364_v40 = vshll.u32 %v6561_v11, 16  ;;  %v6585_v8 = vld [vmem:[%s6363_s7 + $0xa4] sm:$0x1]  ;;  %v6589_v14 = vld [vmem:[%s6363_s7 + $0x48] sm:$0xf] }
  0x46   : > { %v348_v42 = vrot.slane %v347_v19, 4  ;;  %v538_v44 = vrot.slane %v536_v21, 4  ;;  %v544_v45 = vrot.slane %v542_v24, 5  ;;  %v357_v47 = vrot.slane %v355_v25, 4  ;;  %8989 = vst [vmem:[#allocation13_spill] sm:$0xff] %v6585_v8 }
  0x47   : > { %v530_v48 = vrot.slane %v529_v33, 4  ;;  %v360_v49 = vrot.slane %v358_v35, 5  ;;  %v366_v50 = vrot.slane %v364_v40, 5  ;;  %v368_v1 = vshrl.u32 %v6561_v11, 16 }
  0x48   : > { %v353_v56 = vsel %vm6401_vm3, %v348_v42, %v352_v0  ;;  %v539_v2 = vor.u32 %v538_v44, %v534_v17  ;;  %v374_v63 = vshll.u32 %v6570_v34, 16  ;;  %v547_v9 = vshrl.u32 %v6575_v41, 16 }
  0x49   : > { %v5054_v16 = vcombine.low %v343_v32, %v353_v56  ;;  %v535_v19 = vsel %vm6401_vm3, %v530_v48, %v534_v17  ;;  %v361_v21 = vor.u32 %v360_v49, %v357_v47  ;;  %v370_v24 = vrot.slane %v368_v1, 4  ;;  %v6598_v56 = vld [vmem:[%s6363_s7 + $0x4c] sm:$0xf]  ;;  %v6604_v49 = vld [vmem:[%s6363_s7 + $0x50] sm:$0x1] }
  0x4a   : > { %v540_v25 = vrot.slane %v539_v2, 4  ;;  %v376_v33 = vrot.slane %v374_v63, 5  ;;  %v549_v0 = vrot.slane %v547_v9, 4  ;;  %v550_v35 = vshll.u32 %v6575_v41, 16 }
  0x4b   : > { %5772 = vmatprep.mubr.msk.bf16.mxu0 %vm675_vm2, %v5054_v16  ;;  %v362_v40 = vrot.slane %v361_v21, 4  ;;  %v371_v42 = vor.u32 %v370_v24, %v366_v50  ;;  %v556_v44 = vshll.u32 %v6579_v54, 16  ;;  %v560_v32 = vshrl.u32 %v6579_v54, 16 }
  0x4c   : > { %v545_v17 = vsel %vm6401_vm3, %v540_v25, %v544_v45  ;;  %v552_v47 = vrot.slane %v550_v35, 5  ;;  %v566_v48 = vshll.u32 %v6585_v8, 16  ;;  %v379_v1 = vshrl.u32 %v6589_v14, 16  ;;  %v6610_v45 = vld [vmem:[%s6363_s7 + $0xa8] sm:$0xf] }
  0x4d   : > { %v5062_v2 = vcombine.low %v535_v19, %v545_v17  ;;  %v367_v63 = vsel %vm6401_vm3, %v362_v40, %v366_v50  ;;  %v372_v9 = vrot.slane %v371_v42, 4  ;;  %v558_v16 = vrot.slane %v556_v44, 5  ;;  %8990 = vst [vmem:[#allocation14_spill] sm:$0xff] %v6610_v45  ;;  %v6619_v40 = vld [vmem:[%s6363_s7 + $0xac] sm:$0xf] }
  0x4e   : > { %v553_v21 = vor.u32 %v552_v47, %v549_v0  ;;  %v562_v24 = vrot.slane %v560_v32, 4  ;;  %v568_v59 = vrot.slane %v566_v48, 5  ;;  %v381_v29 = vrot.slane %v379_v1, 4  ;;  %8991 = vst [vmem:[#allocation15_spill] sm:$0xff] %v6619_v40  ;;  %v6623_v17 = vld [vmem:[%s6363_s7 + $0xb0] sm:$0x1] }
  0x4f   : > { %5788 = vmatprep.mubr.msk.bf16.mxu1 %vm675_vm2, %v5062_v2  ;;  %v377_v25 = vsel %vm6401_vm3, %v372_v9, %v376_v33  ;;  %v382_v35 = vshll.u32 %v6589_v14, 16  ;;  %v388_v19 = vshll.u32 %v6598_v56, 16  ;;  %v392_v50 = vshrl.u32 %v6598_v56, 16  ;;  %8992 = vst [vmem:[#allocation16_spill] sm:$0xff] %v6623_v17 }
  0x50   : > { %v5055_v42 = vcombine.low %v367_v63, %v377_v25  ;;  %v554_v0 = vrot.slane %v553_v21, 4  ;;  %v563_v44 = vor.u32 %v562_v24, %v558_v16  ;;  %v398_v32 = vshll.u32 %v6604_v49, 16 }
  0x51   : > { %v384_v47 = vrot.slane %v382_v35, 5  ;;  %v390_v48 = vrot.slane %v388_v19, 5  ;;  %v394_v1 = vrot.slane %v392_v50, 4  ;;  %v571_v33 = vshrl.u32 %v6610_v45, 16  ;;  %v6632_v19 = vld [vmem:[%s6363_s7 + $0x54] sm:$0xf] }
  0x52   : > { %5773 = vmatmul.mubr.msk.bf16.gmra.mxu0 %vm675_vm2, %v5055_v42  ;;  %v559_v2 = vsel %vm6401_vm3, %v554_v0, %v558_v16  ;;  %v564_v9 = vrot.slane %v563_v44, 4  ;;  %v400_v63 = vrot.slane %v398_v32, 5  ;;  %v574_v21 = vshll.u32 %v6610_v45, 16  ;;  %v6639_v44 = vld [vmem:[%s6363_s7 + $0x58] sm:$0xf] }
  0x53   : > { %v385_v24 = vor.u32 %v384_v47, %v381_v29  ;;  %v395_v25 = vor.u32 %v394_v1, %v390_v48  ;;  %v573_v58 = vrot.slane %v571_v33, 4  ;;  %v580_v35 = vshll.u32 %v6619_v40, 16  ;;  %v6642_v33 = vld [vmem:[%s6363_s7 + $0x5c] sm:$0x1] }
  0x54   : > { %v569_v50 = vsel %vm6401_vm3, %v564_v9, %v568_v59  ;;  %v576_v42 = vrot.slane %v574_v21, 5  ;;  %v584_v16 = vshrl.u32 %v6619_v40, 16  ;;  %v590_v0 = vshll.u32 %v6623_v17, 16  ;;  %v1180_v17 = vld [vmem:[%s6363_s7] sm:$0xe] }
  0x55   : > { %v5063_v29 = vcombine.low %v559_v2, %v569_v50  ;;  %v386_v32 = vrot.slane %v385_v24, 4  ;;  %v396_v47 = vrot.slane %v395_v25, 4  ;;  %v582_v1 = vrot.slane %v580_v35, 5  ;;  %v6653_v25 = vld [vmem:[%s6363_s7 + $0xb4] sm:$0xf] }
  0x56   : > { %v577_v52 = vor.u32 %v576_v42, %v573_v58  ;;  %v586_v45 = vrot.slane %v584_v16, 4  ;;  %v592_v8 = vrot.slane %v590_v0, 5  ;;  %v403_v59 = vshrl.u32 %v6632_v19, 16  ;;  %8993 = vst [vmem:[#allocation17_spill] sm:$0xff] %v6653_v25  ;;  %v6656_v16 = vld [vmem:[%s6363_s7 + $0xb8] sm:$0xf] }
  0x57   : > { %5789 = vmatmul.mubr.msk.bf16.gmra.mxu1 %vm675_vm2, %v5063_v29  ;;  %v391_v9 = vsel %vm6401_vm3, %v386_v32, %v390_v48  ;;  %v401_v2 = vsel %vm6401_vm3, %v396_v47, %v400_v63  ;;  %v406_v21 = vshll.u32 %v6632_v19, 16  ;;  %v412_v24 = vshll.u32 %v6639_v44, 16  ;;  %v6661_v63 = vld [vmem:[%s6363_s7 + $0xbc] sm:$0x1] }
  0x58   : > { %v5056_v58 = vcombine.low %v391_v9, %v401_v2  ;;  %v578_v35 = vrot.slane %v577_v52, 4  ;;  %v587_v50 = vor.u32 %v586_v45, %v582_v1  ;;  %v405_v42 = vrot.slane %v403_v59, 4 }
  0x59   : > { %v408_v0 = vrot.slane %v406_v21, 5  ;;  %v414_v29 = vrot.slane %v412_v24, 5  ;;  %v416_v48 = vshrl.u32 %v6639_v44, 16  ;;  %v422_v32 = vshll.u32 %v6642_v33, 16 }
  0x5a   : > { %5776 = vmatprep.mubr.msk.bf16.mxu0 %vm675_vm2, %v5056_v58  ;;  %v583_v47 = vsel %vm6401_vm3, %v578_v35, %v582_v1  ;;  %v588_v9 = vrot.slane %v587_v50, 4  ;;  %v595_v52 = vshrl.u32 %v6653_v25, 16  ;;  %v598_v45 = vshll.u32 %v6653_v25, 16 }
  0x5b   : > { %v409_v59 = vor.u32 %v408_v0, %v405_v42  ;;  %v418_v2 = vrot.slane %v416_v48, 4  ;;  %v424_v21 = vrot.slane %v422_v32, 5  ;;  %v604_v24 = vshll.u32 %v6656_v16, 16 }
  0x5c   : > { %v593_v40 = vsel %vm6401_vm3, %v588_v9, %v592_v8  ;;  %v597_v43 = vrot.slane %v595_v52, 4  ;;  %v600_v58 = vrot.slane %v598_v45, 5  ;;  %v608_v41 = vshrl.u32 %v6656_v16, 16 }
  0x5d   : > { %v5064_v1 = vcombine.low %v583_v47, %v593_v40  ;;  %v410_v35 = vrot.slane %v409_v59, 4  ;;  %v419_v50 = vor.u32 %v418_v2, %v414_v29  ;;  %v606_v54 = vrot.slane %v604_v24, 5  ;;  %v1182_v59 = vld [vmem:[%s6363_s7 + $0x18] sm:$0xe] }
  0x5e   : > { %v601_v25 = vor.u32 %v600_v58, %v597_v43  ;;  %v610_v42 = vrot.slane %v608_v41, 4  ;;  %v614_v0 = vshll.u32 %v6661_v63, 16  ;;  %v8994_v48 = vmov 0 }
  0x5f   : > { %v8995_v48 = vsel %vm6677_vm6, 4294967295, %v8994_v48  ;;  %v5116_v8 = vrot.slane %v1180_v17, 9  ;;  %5792 = vmatprep.mubr.msk.bf16.mxu1 %vm675_vm2, %v5064_v1  ;;  %v415_v40 = vsel %vm6401_vm3, %v410_v35, %v414_v29  ;;  %v420_v32 = vrot.slane %v419_v50, 4 }
  0x60   : > { %8996 = vst [vmem:[#allocation18_spill] sm:$0xff] %v8995_v48  ;;  %v1233_v47 = vrot.slane %v6369_v4, 5  ;;  %v5084_v43 = vcombine.low %v6394_v26, %v6397_v27  ;;  %v602_v41 = vrot.slane %v601_v25, 4  ;;  %v611_v9 = vor.u32 %v610_v42, %v606_v54 }
  0x61   : > { %v616_v52 = vrot.slane %v614_v0, 5  ;;  %v5117_v45 = vrot.slane %v1181_v51, 9  ;;  %v425_v17 = vsel %vm6401_vm3, %v420_v32, %v424_v21  ;;  %v8997_v29 = vrot.slane %v6397_v27, 5  ;;  %v1183_v0 = vld [vmem:[%s6363_s7 + $0x24] sm:$0xe] }
  0x62   : > { %v1234_v2 = vsel %vm6677_vm6, %v5116_v8, %v1233_v47  ;;  %v1235_v24 = vrot.slane %v1233_v47, 4  ;;  %v5057_v1 = vcombine.low %v415_v40, %v425_v17  ;;  %v607_v35 = vsel %vm6401_vm3, %v602_v41, %v606_v54  ;;  %v1184_v17 = vld [vmem:[%s6363_s7 + $0x30] sm:$0xe] }
  0x63   : > { %v1242_v58 = vrot.slane %v8997_v29, 4  ;;  %v612_v25 = vrot.slane %v611_v9, 4  ;;  %v8998_v50 = vrot.slane %v6372_v5, 5  ;;  %v5085_v21 = vcombine.low %v6433_v6, %v6439_v18 }
  0x64   : > { %v5118_v42 = vrot.slane %v1182_v59, 9  ;;  %5777 = vmatmul.mubr.msk.bf16.gmra.mxu0 %vm675_vm2, %v5057_v1  ;;  %v5083_v40 = vcombine.low %v6366_v3, %v6369_v4  ;;  %v1247_v5 = vrot.slane %v6439_v18, 5  ;;  %v8999_v47 = vmov %v8997_v29  ;;  %v1185_v29 = vld [vmem:[%s6363_s7 + $0x3c] sm:$0xe] }
  0x65   : > { %v1237_v51 = vsel %vm6677_vm6, %v1235_v24, %v8998_v50  ;;  %v617_v8 = vsel %vm6401_vm3, %v612_v25, %v616_v52  ;;  %v1241_v41 = vsel %vm6677_vm6, %v5117_v45, %v8999_v47  ;;  %v9000_v9 = vrot.slane %v6407_v38, 5  ;;  %v1187_v47 = vld [vmem:[%s6363_s7 + $0x54] sm:$0xe] }
  0x66   : > { %v5134_v54 = vcombine.low %v1234_v2, %v1237_v51  ;;  %v5065_v32 = vcombine.low %v607_v35, %v617_v8  ;;  %v1250_v52 = vrot.slane %v6445_v22, 5  ;;  %v1248_v3 = vsel %vm6677_vm6, %v5118_v42, %v1247_v5  ;;  %v1186_v35 = vld [vmem:[%s6363_s7 + $0x48] sm:$0xe] }
  0x67   : > { %v1244_v59 = vsel %vm6677_vm6, %v1242_v58, %v9000_v9  ;;  %v1249_v4 = vrot.slane %v1247_v5, 4  ;;  %v5119_v2 = vrot.slane %v1183_v0, 9  ;;  %v1254_v24 = vrot.slane %v6479_v7, 5 }
  0x68   : > { %5832 = vmatprep.mubr.msk.bf16.mxu0 %vm675_vm2, %v5134_v54  ;;  %5793 = vmatmul.mubr.msk.bf16.gmra.mxu1 %vm675_vm2, %v5065_v32  ;;  %v1257_v38 = vrot.slane %v6490_v20, 5  ;;  %v1261_v45 = vrot.slane %v6524_v62, 5  ;;  %v5135_v22 = vcombine.low %v1241_v41, %v1244_v59  ;;  %v5120_v50 = vrot.slane %v1184_v17, 9 }
  0x69   : > { %5798 = vmatprep.mubr.msk.bf16.mxu1 %vm675_vm2, %v5083_v40  ;;  %v1251_v58 = vsel %vm6677_vm6, %v1249_v4, %v1250_v52  ;;  %v1256_v1 = vrot.slane %v1254_v24, 4  ;;  %v1264_v51 = vrot.slane %v6532_v23, 5  ;;  %v1255_v42 = vsel %vm6677_vm6, %v5119_v2, %v1254_v24  ;;  %v6738_v40 = vld [vmem:[%s8950_s1 + $0x30] sm:$0xff]   ;;  %v6758_v4 = vld [vmem:[%s8950_s1 + $0x28] sm:$0xff]  }
  0x6a   : > { %v5136_v25 = vcombine.low %v1248_v3, %v1251_v58  ;;  %v1263_v20 = vrot.slane %v1261_v45, 4  ;;  %v5121_v0 = vrot.slane %v1185_v29, 9  ;;  %v1268_v8 = vrot.slane %v6561_v11, 5  ;;  %v1188_v3 = vld [vmem:[%s6363_s7 + $0x60] sm:$0xe] }
  0x6b   : > { %v1258_v54 = vsel %vm6677_vm6, %v1256_v1, %v1257_v38  ;;  %v1271_v5 = vrot.slane %v6570_v34, 5  ;;  %v5122_v32 = vrot.slane %v1186_v35, 9  ;;  %v1275_v23 = vrot.slane %v6598_v56, 5 }
  0x6c   : > { %5833 = vmatmul.mubr.msk.bf16.vlgmr.msra.gmra.mxu0 %vm675_vm2, %v5135_v22  ;;  %v1270_v41 = vrot.slane %v1268_v8, 4  ;;  %v1278_v9 = vrot.slane %v6604_v49, 5  ;;  %v1292_v59 = vrot.slane %v6386_v13, 5  ;;  %v5086_v52 = vcombine.low %v6472_v61, %v6479_v7  ;;  %v1189_v7 = vld [vmem:[%s6363_s7 + $0x6c] sm:$0xe] }
  0x6d   : > { %5899 = vmatpush3.bf16.msra.mxu0 %v6456_v37  ;;  %5836 = vmatprep.mubr.msk.bf16.mxu0 %vm675_vm2, %v5136_v25  ;;  %v1262_v34 = vsel %vm6677_vm6, %v5120_v50, %v1261_v45  ;;  %v1277_v17 = vrot.slane %v1275_v23, 4  ;;  %v5137_v49 = vcombine.low %v1255_v42, %v1258_v54  ;;  %v1265_v13 = vsel %vm6677_vm6, %v1263_v20, %v1264_v51  ;;  %v1192_v42 = vld [vmem:[%s6363_s7 + $0x90] sm:$0xe]  ;;  %v6902_v54 = vld [vmem:[%s6363_s7 + $0x14] sm:$0x1] }
  0x6e   : > { %v6764_v37 = vsel %vm6677_vm6, %v5121_v0, %v1268_v8  ;;  %v1282_v61 = vrot.slane %v6639_v44, 5  ;;  %5966 = vmatprep.subr.bf16.mxu0 %v6738_v40  ;;  %v6775_v2 = vsel %vm6677_vm6, %v5122_v32, %v1275_v23  ;;  %v5123_v24 = vrot.slane %v1187_v47, 9 }
  0x6f   : > { %v1285_v38 = vrot.slane %v6642_v33, 5  ;;  %v1289_v45 = vrot.slane %v6383_v12, 5  ;;  %v1272_v26 = vsel %vm6677_vm6, %v1270_v41, %v1271_v5  ;;  %v6788_v27 = vsel %vm6677_vm6, %v1277_v17, %v1278_v9  ;;  %v1193_v41 = vld [vmem:[%s6363_s7 + $0x9c] sm:$0xe]  ;;  %v1194_v17 = vld [vmem:[%s6363_s7 + $0xa8] sm:$0xe] }
  0x70   : > { %5799 = vmatmul.mubr.msk.bf16.vlgmr.msra.gmra.mxu1 %vm675_vm2, %v5084_v43  ;;  %v1284_v43 = vrot.slane %v1282_v61, 4  ;;  %v5124_v29 = vrot.slane %v1188_v3, 9  ;;  %v5087_v33 = vcombine.low %v6519_v53, %v6524_v62  ;;  %v5088_v6 = vcombine.low %v6556_v57, %v6561_v11  ;;  %v1191_v53 = vld [vmem:[%s6363_s7 + $0x84] sm:$0xe] }
  0x71   : > { %5865 = vmatpush3.bf16.msra.mxu1 %v6485_v15  ;;  %5802 = vmatprep.mubr.msk.bf16.mxu1 %vm675_vm2, %v5085_v21  ;;  %v5138_v15 = vcombine.low %v1262_v34, %v1265_v13  ;;  %v5089_v18 = vcombine.low %v6589_v14, %v6598_v56  ;;  %v6797_v21 = vld [vmem:[%s6363_s7 + $0x78] sm:$0xe]  ;;  %v5090_v22 = vcombine.low %v6632_v19, %v6639_v44  ;;  %v1291_v1 = vrot.slane %v1289_v45, 4 }
  0x72   : > { %5932 = vmatprep.subr.bf16.mxu1 %v6758_v4  ;;  %v5091_v58 = vcombine.low %v6379_v10, %v6383_v12  ;;  %v5125_v35 = vrot.slane %v1189_v7, 9  ;;  %v5139_v62 = vcombine.low %v6764_v37, %v1272_v26  ;;  %v5140_v25 = vcombine.low %v6775_v2, %v6788_v27  ;;  %v9001_v37 = vld [vmem:[#allocation10_spill] sm:$0xff]  ;;  %v9002_v7 = vld [vmem:[#allocation12_spill] sm:$0xff]  ;;  %v9003_v2 = vld [vmem:[#allocation11_spill] sm:$0xff] }
  0x73   : > { %v6810_v50 = vsel %vm6677_vm6, %v5123_v24, %v1282_v61  ;;  %v6814_v51 = vsel %vm6677_vm6, %v1284_v43, %v1285_v38  ;;  %v6820_v20 = vsel %vm6677_vm6, %v5124_v29, %v1289_v45  ;;  %v1296_v0 = vrot.slane %v6420_v55, 5  ;;  %v9004_v45 = vld [vmem:[#allocation8_spill] sm:$0xff]  ;;  %v6174_v10 = vld [vmem:[%s6363_s7 + $0x6c] sm:$0xf]  ;;  %v6175_v12 = vld [vmem:[%s6363_s7 + $0x70] sm:$0xf] }
  0x74   : > { %5837 = vmatmul.mubr.msk.bf16.gmra.mxu0 %vm675_vm2, %v5137_v49  ;;  %v1299_v8 = vrot.slane %v6428_v60, 5  ;;  %v5126_v5 = vrot.slane %v6797_v21, 9  ;;  %v5127_v32 = vrot.slane %v1191_v53, 9  ;;  %v1310_v23 = vrot.slane %v6504_v36, 5  ;;  %v9007_v53 = vld [vmem:[#allocation14_spill] sm:$0xff] }
  0x75   : > { %5840 = vmatprep.mubr.msk.bf16.mxu0 %vm675_vm2, %v5138_v15  ;;  %v1313_v47 = vrot.slane %v6511_v46, 5  ;;  %v5141_v9 = vcombine.low %v6810_v50, %v6814_v51  ;;  %v6835_v55 = vsel %vm6677_vm6, %v1291_v1, %v1292_v59  ;;  %v6839_v60 = vsel %vm6677_vm6, %v5125_v35, %v1296_v0  ;;  %v9005_v15 = vld [vmem:[#allocation13_spill] sm:$0xff]  ;;  %v9006_v35 = vld [vmem:[#allocation15_spill] sm:$0xff] }
  0x76   : > { %v6847_v46 = vsel %vm6677_vm6, %v5127_v32, %v1310_v23  ;;  %v1312_v3 = vrot.slane %v1310_v23, 4  ;;  %v5128_v49 = vrot.slane %v1192_v42, 9  ;;  %v1317_v13 = vrot.slane %v6542_v39, 5  ;;  %v9010_v42 = vld [vmem:[#allocation9_spill] sm:$0xff] }
  0x77   : > { %v1298_v59 = vrot.slane %v1296_v0, 4  ;;  %v1320_v61 = vrot.slane %v9001_v37, 5  ;;  %v5129_v38 = vrot.slane %v1193_v41, 9  ;;  %v1327_v1 = vrot.slane %v9005_v15, 5  ;;  %v6887_v15 = vld [vmem:[%s6363_s7 + $0x10] sm:$0xf] }
  0x78   : > { %5803 = vmatmul.mubr.msk.bf16.gmra.mxu1 %vm675_vm2, %v5086_v52  ;;  %v1303_v52 = vrot.slane %v9004_v45, 5  ;;  %v6857_v26 = vsel %vm6677_vm6, %v1312_v3, %v1313_v47  ;;  %v6861_v27 = vsel %vm6677_vm6, %v5128_v49, %v1317_v13  ;;  %v1319_v43 = vrot.slane %v1317_v13, 4  ;;  %v9008_v47 = vld [vmem:[#allocation16_spill] sm:$0xff]  ;;  %v5234_v3 = vld [vmem:[%s6363_s7 + $0xc] sm:$0xf] }
  0x79   : > { %5806 = vmatprep.mubr.msk.bf16.mxu1 %vm675_vm2, %v5087_v33  ;;  %v1324_v33 = vrot.slane %v9002_v7, 5  ;;  %v5130_v32 = vrot.slane %v1194_v17, 9  ;;  %v1331_v23 = vrot.slane %v9006_v35, 5  ;;  %v1334_v41 = vrot.slane %v9008_v47, 5 }
  0x7a   : > { %v6871_v0 = vsel %vm6677_vm6, %v1319_v43, %v1320_v61  ;;  %v9009_v61 = vld [vmem:[#allocation17_spill] sm:$0xff]  ;;  %v1195_v43 = vld [vmem:[%s6363_s7 + $0xb4] sm:$0xe]  ;;  %v1305_v47 = vrot.slane %v1303_v52, 4  ;;  %v1338_v17 = vrot.slane %v6656_v16, 5  ;;  %v2056_v49 = vshll.u32 %v5234_v3, 16 }
  0x7b   : > { %v6881_v13 = vsel %vm6677_vm6, %v5129_v38, %v1324_v33  ;;  %v1326_v37 = vrot.slane %v1324_v33, 4  ;;  %v6893_v24 = vsel %vm6677_vm6, %v5130_v32, %v1331_v23  ;;  %v1333_v34 = vrot.slane %v1331_v23, 4  ;;  %v5237_v38 = vld [vmem:[%s6363_s7 + $0x18] sm:$0xf] }
  0x7c   : > { %5841 = vmatmul.mubr.msk.bf16.gmra.mxu0 %vm675_vm2, %v5139_v62  ;;  %v1306_v62 = vrot.slane %v9010_v42, 5  ;;  %v5142_v42 = vcombine.low %v6820_v20, %v6835_v55  ;;  %v2062_v20 = vshll.u32 %v6887_v15, 16  ;;  %v5131_v55 = vrot.slane %v1195_v43, 9 }
  0x7d   : > { %5844 = vmatprep.mubr.msk.bf16.mxu0 %vm675_vm2, %v5140_v25  ;;  %v6898_v33 = vsel %vm6677_vm6, %v1326_v37, %v1327_v1  ;;  %v2053_v25 = vshrl.u32 %v5234_v3, 16  ;;  %v6912_v1 = vsel %vm6677_vm6, %v1298_v59, %v1299_v8  ;;  %v6918_v23 = vsel %vm6677_vm6, %v1333_v34, %v1334_v41  ;;  %v5238_v3 = vld [vmem:[%s6363_s7 + $0x1c] sm:$0xf]  ;;  %v5239_v8 = vld [vmem:[%s6363_s7 + $0x20] sm:$0x1] }
  0x7e   : > { %v1341_v59 = vrot.slane %v6661_v63, 5  ;;  %v2066_v34 = vshrl.u32 %v6887_v15, 16  ;;  %v2077_v41 = vshrl.u32 %v5237_v38, 16  ;;  %v5240_v37 = vld [vmem:[%s6363_s7 + $0x24] sm:$0xf]  ;;  %v1304_v14 = vsel %vm6677_vm6, %v5126_v5, %v1303_v52 }
  0x7f   : > { %v2055_v11 = vrot.slane %v2053_v25, 4  ;;  %v1307_v56 = vsel %vm6677_vm6, %v1305_v47, %v1306_v62  ;;  %v6939_v25 = vld [vmem:[%s6363_s7 + $0x28] sm:$0xf]  ;;  %v6941_v57 = vrot.slane %v2062_v20, 5  ;;  %v2072_v63 = vshll.u32 %v6902_v54, 16 }
  0x80   : > { %5807 = vmatmul.mubr.msk.bf16.gmra.mxu1 %vm675_vm2, %v5088_v6  ;;  %v2058_v6 = vrot.slane %v2056_v49, 5  ;;  %v2080_v49 = vshll.u32 %v5237_v38, 16  ;;  %v2068_v43 = vrot.slane %v2066_v34, 4  ;;  %v2079_v32 = vrot.slane %v2077_v41, 4 }
  0x81   : > { %5810 = vmatprep.mubr.msk.bf16.mxu1 %vm675_vm2, %v5089_v18  ;;  %v1340_v18 = vrot.slane %v1338_v17, 4  ;;  %v2086_v52 = vshll.u32 %v5238_v3, 16  ;;  %v2090_v47 = vshrl.u32 %v5238_v3, 16  ;;  %v2096_v62 = vshll.u32 %v5239_v8, 16  ;;  %v6969_v3 = vld [vmem:[%s6363_s7 + $0x34] sm:$0xf] }
  0x82   : > { %v2059_v21 = vor.u32 %v2058_v6, %v2055_v11  ;;  %v2082_v5 = vrot.slane %v2080_v49, 5  ;;  %v2101_v38 = vshrl.u32 %v5240_v37, 16  ;;  %v2104_v20 = vshll.u32 %v5240_v37, 16  ;;  %9011 = vst [vmem:[#allocation10_spill] sm:$0xff] %v6969_v3  ;;  %v6980_v11 = vld [vmem:[%s6363_s7 + $0x2c] sm:$0x1] }
  0x83   : > { %v5143_v34 = vcombine.low %v6839_v60, %v6912_v1  ;;  %v5144_v41 = vcombine.low %v1304_v14, %v1307_v56  ;;  %v6953_v50 = vsel %vm6677_vm6, %v5131_v55, %v1338_v17  ;;  %v6957_v51 = vsel %vm6677_vm6, %v1340_v18, %v1341_v59  ;;  %v5246_v37 = vld [vmem:[%s6363_s7 + $0x3c] sm:$0xf]  ;;  %v6176_v14 = vld [vmem:[%s6363_s7 + $0x78] sm:$0xf] }
  0x84   : > { %5845 = vmatmul.mubr.msk.bf16.gmra.mxu0 %vm675_vm2, %v5141_v9  ;;  %v5243_v9 = vld [vmem:[%s6363_s7 + $0x30] sm:$0xf]  ;;  %v6965_v60 = vrot.slane %v2072_v63, 5  ;;  %v2083_v1 = vor.u32 %v2082_v5, %v2079_v32  ;;  %v2110_v17 = vshll.u32 %v6939_v25, 16  ;;  %v6975_v19 = vrot.slane %v2059_v21, 4 }
  0x85   : > { %5848 = vmatprep.mubr.msk.bf16.mxu0 %vm675_vm2, %v5142_v42  ;;  %v2069_v42 = vor.u32 %v2068_v43, %v6941_v57  ;;  %v6977_v44 = vrot.slane %v2086_v52, 5  ;;  %v2114_v32 = vshrl.u32 %v6939_v25, 16  ;;  %v6983_v6 = vrot.slane %v2096_v62, 5  ;;  %v6993_v43 = vld [vmem:[%s6363_s7 + $0x38] sm:$0x1] }
  0x86   : > { %v2103_v8 = vrot.slane %v2101_v38, 4  ;;  %v2106_v55 = vrot.slane %v2104_v20, 5  ;;  %v2125_v59 = vshrl.u32 %v5243_v9, 16  ;;  %v5093_v56 = vcombine.low %v6176_v14, %v9004_v45  ;;  %9012 = vst [vmem:[#allocation12_spill] sm:$0xff] %v6993_v43 }
  0x87   : > { %v6990_v18 = vrot.slane %v2110_v17, 5  ;;  %v2116_v49 = vrot.slane %v2114_v32, 4  ;;  %v2070_v63 = vrot.slane %v2069_v42, 4  ;;  %v6995_v21 = vrot.slane %v2083_v1, 4  ;;  %v5249_v17 = vld [vmem:[%s6363_s7 + $0x48] sm:$0xf] }
  0x88   : > { %5811 = vmatmul.mubr.msk.bf16.gmra.mxu1 %vm675_vm2, %v5090_v22  ;;  %v2092_v22 = vrot.slane %v2090_v47, 4  ;;  %v2127_v5 = vrot.slane %v2125_v59, 4  ;;  %v2128_v52 = vshll.u32 %v5243_v9, 16  ;;  %v6998_v47 = vld [vmem:[%s6363_s7 + $0x40] sm:$0xf]  ;;  %v2065_v45 = vsel %vm6401_vm3, %v6975_v19, %v6941_v57 }
  0x89   : > { %5814 = vmatprep.mubr.msk.bf16.mxu1 %vm675_vm2, %v5091_v58  ;;  %v5092_v58 = vcombine.low %v6174_v10, %v6175_v12  ;;  %v2134_v38 = vshll.u32 %v6969_v3, 16  ;;  %v2138_v20 = vshrl.u32 %v6969_v3, 16  ;;  %v2107_v42 = vor.u32 %v2106_v55, %v2103_v8  ;;  %v7019_v12 = vld [vmem:[%s6363_s7 + $0x44] sm:$0x1]  ;;  %v7023_v55 = vld [vmem:[%s6363_s7 + $0x4c] sm:$0xf] }
  0x8a   : > { %v2093_v9 = vor.u32 %v2092_v22, %v6977_v44  ;;  %v2130_v1 = vrot.slane %v2128_v52, 5  ;;  %v2117_v32 = vor.u32 %v2116_v49, %v6990_v18  ;;  %v2149_v19 = vshrl.u32 %v5246_v37, 16 }
  0x8b   : > { %v7014_v59 = vrot.slane %v2134_v38, 5  ;;  %v2140_v57 = vrot.slane %v2138_v20, 4  ;;  %v2152_v22 = vshll.u32 %v5246_v37, 16  ;;  %v2158_v8 = vshll.u32 %v6998_v47, 16  ;;  %v5252_v37 = vld [vmem:[%s6363_s7 + $0x54] sm:$0xf] }
  0x8c   : > { %5849 = vmatmul.mubr.msk.bf16.gmra.mxu0 %vm675_vm2, %v5143_v34  ;;  %v2120_v34 = vshll.u32 %v6980_v11, 16  ;;  %v2131_v10 = vor.u32 %v2130_v1, %v2127_v5  ;;  %v2075_v14 = vsel %vm6401_vm3, %v2070_v63, %v6965_v60  ;;  %v2162_v5 = vshrl.u32 %v6998_v47, 16 }
  0x8d   : > { %5852 = vmatprep.mubr.msk.bf16.mxu0 %vm675_vm2, %v5144_v41  ;;  %v2144_v41 = vshll.u32 %v6993_v43, 16  ;;  %v2141_v49 = vor.u32 %v2140_v57, %v7014_v59  ;;  %v2094_v52 = vrot.slane %v2093_v9, 4  ;;  %v2108_v38 = vrot.slane %v2107_v42, 4 }
  0x8e   : > { %v2154_v20 = vrot.slane %v2152_v22, 5  ;;  %v7031_v1 = vrot.slane %v2158_v8, 5  ;;  %v2118_v62 = vrot.slane %v2117_v32, 4  ;;  %v2122_v29 = vrot.slane %v2120_v34, 5 }
  0x8f   : > { %v2164_v43 = vrot.slane %v2162_v5, 4  ;;  %v2132_v3 = vrot.slane %v2131_v10, 4  ;;  %v2142_v48 = vrot.slane %v2141_v49, 4  ;;  %v2146_v60 = vrot.slane %v2144_v41, 5  ;;  %v7055_v41 = vld [vmem:[%s6363_s7 + $0x58] sm:$0xf] }
  0x90   : > { %5815 = vmatmul.mubr.msk.bf16.gmra.mxu1 %vm675_vm2, %v5092_v58  ;;  %v2151_v58 = vrot.slane %v2149_v19, 4  ;;  %v2176_v63 = vshll.u32 %v5249_v17, 16  ;;  %v9013_v57 = vcombine.low %v6847_v46, %v6857_v26  ;;  %v7038_v9 = vcombine.low %v2065_v45, %v2075_v14  ;;  %v7052_v45 = vld [vmem:[%s6363_s7 + $0x50] sm:$0x1]  ;;  %v7077_v49 = vld [vmem:[%s6363_s7 + $0x64] sm:$0xf] }
  0x91   : > { %5818 = vmatprep.mubr.msk.bf16.mxu1 %vm675_vm2, %v5093_v56  ;;  %v2173_v56 = vshrl.u32 %v5249_v17, 16  ;;  %v2168_v32 = vshll.u32 %v7019_v12, 16  ;;  %v2182_v34 = vshll.u32 %v7023_v55, 16  ;;  %v9014_v19 = vcombine.low %v6861_v27, %v6871_v0 }
  0x92   : > { %v2155_v42 = vor.u32 %v2154_v20, %v2151_v58  ;;  %v2089_v46 = vsel %vm6401_vm3, %v6995_v21, %v6977_v44  ;;  %v2165_v26 = vor.u32 %v2164_v43, %v7031_v1  ;;  %v2178_v10 = vrot.slane %v2176_v63, 5  ;;  %v5255_v21 = vld [vmem:[%s6363_s7 + $0x60] sm:$0xf] }
  0x93   : > { %v2175_v17 = vrot.slane %v2173_v56, 4  ;;  %v2099_v27 = vsel %vm6401_vm3, %v2094_v52, %v6983_v6  ;;  %v2113_v0 = vsel %vm6401_vm3, %v2108_v38, %v6990_v18  ;;  %v2186_v22 = vshrl.u32 %v7023_v55, 16 }
  0x94   : > { %5853 = vmatmul.mubr.msk.bf16.gmra.mxu0 %vm675_vm2, %v9013_v57  ;;  %v2197_v44 = vshrl.u32 %v5252_v37, 16  ;;  %v9015_v43 = vcombine.low %v6497_v31, %v6504_v36  ;;  %v2123_v8 = vsel %vm6401_vm3, %v2118_v62, %v2122_v29  ;;  %v2137_v6 = vsel %vm6401_vm3, %v2132_v3, %v7014_v59 }
  0x95   : > { %5856 = vmatprep.mubr.msk.bf16.mxu0 %vm675_vm2, %v9014_v19  ;;  %v2147_v14 = vsel %vm6401_vm3, %v2142_v48, %v2146_v60  ;;  %v2200_v18 = vshll.u32 %v5252_v37, 16  ;;  %v9016_v58 = vcombine.low %v6537_v30, %v6542_v39  ;;  %v2156_v31 = vrot.slane %v2155_v42, 4  ;;  %v5258_v30 = vld [vmem:[%s6363_s7 + $0x6c] sm:$0xf] }
  0x96   : > { %v2170_v36 = vrot.slane %v2168_v32, 5  ;;  %v7083_v5 = vrot.slane %v2182_v34, 5  ;;  %v2206_v29 = vshll.u32 %v7055_v41, 16  ;;  %v2166_v62 = vrot.slane %v2165_v26, 4  ;;  %v7104_v34 = vld [vmem:[%s6363_s7 + $0x5c] sm:$0x1] }
  0x97   : > { %v2179_v3 = vor.u32 %v2178_v10, %v2175_v17  ;;  %v2188_v59 = vrot.slane %v2186_v22, 4  ;;  %v2192_v48 = vshll.u32 %v7052_v45, 16  ;;  %v2199_v52 = vrot.slane %v2197_v44, 4  ;;  %v7118_v10 = vld [vmem:[%s6363_s7 + $0x68] sm:$0x1] }
  0x98   : > { %5819 = vmatmul.mubr.msk.bf16.gmra.mxu1 %vm675_vm2, %v9015_v43  ;;  %v2202_v38 = vrot.slane %v2200_v18, 5  ;;  %v2210_v20 = vshrl.u32 %v7055_v41, 16  ;;  %v2221_v37 = vshrl.u32 %v5255_v21, 16  ;;  %v7089_v39 = vcombine.low %v2089_v46, %v2099_v27  ;;  %v7122_v27 = vld [vmem:[%s6363_s7 + $0x70] sm:$0xf] }
  0x99   : > { %5822 = vmatprep.mubr.msk.bf16.mxu1 %vm675_vm2, %v9016_v58  ;;  %v7091_v56 = vcombine.low %v2113_v0, %v2123_v8  ;;  %v2224_v60 = vshll.u32 %v5255_v21, 16  ;;  %v2230_v63 = vshll.u32 %v7077_v49, 16  ;;  %v9017_v57 = vcombine.low %v6881_v13, %v6898_v33 }
  0x9a   : > { %v7098_v42 = vcombine.low %v2137_v6, %v2147_v14  ;;  %v2161_v32 = vsel %vm6401_vm3, %v2156_v31, %v7031_v1  ;;  %v7106_v19 = vrot.slane %v2206_v29, 5  ;;  %v2212_v46 = vrot.slane %v2210_v20, 4  ;;  %v7134_v14 = vld [vmem:[%s6363_s7 + $0x74] sm:$0x1] }
  0x9b   : > { %v9018_v26 = vcombine.low %v6893_v24, %v6918_v23  ;;  %v2171_v13 = vsel %vm6401_vm3, %v2166_v62, %v2170_v36  ;;  %v7114_v33 = vrot.slane %v2179_v3, 4  ;;  %v2189_v17 = vor.u32 %v2188_v59, %v7083_v5  ;;  %v5261_v36 = vld [vmem:[%s6363_s7 + $0x78] sm:$0xf] }
  0x9c   : > { %5857 = vmatmul.mubr.msk.bf16.gmra.mxu0 %vm675_vm2, %v9017_v57  ;;  %v2234_v1 = vshrl.u32 %v7077_v49, 16  ;;  %v2203_v0 = vor.u32 %v2202_v38, %v2199_v52  ;;  %v2223_v22 = vrot.slane %v2221_v37, 4  ;;  %v2226_v24 = vrot.slane %v2224_v60, 5 }
  0x9d   : > { %5860 = vmatprep.mubr.msk.bf16.mxu0 %vm675_vm2, %v9018_v26  ;;  %v2245_v23 = vshrl.u32 %v5258_v30, 16  ;;  %v9019_v44 = vcombine.low %v9003_v2, %v9002_v7  ;;  %v7128_v21 = vrot.slane %v2192_v48, 5  ;;  %v2216_v43 = vshll.u32 %v7104_v34, 16 }
  0x9e   : > { %v7131_v8 = vrot.slane %v2230_v63, 5  ;;  %v2236_v6 = vrot.slane %v2234_v1, 4  ;;  %v9020_v18 = vcombine.low %v9007_v53, %v9006_v35  ;;  %v7140_v58 = vcombine.low %v2161_v32, %v2171_v13  ;;  %v7151_v53 = vld [vmem:[%s6363_s7 + $0x7c] sm:$0xf]  ;;  %v6138_v63 = vld [vmem:[%s6363_s7 + $0xc] sm:$0xff]  }
  0x9f   : > { %v2213_v7 = vor.u32 %v2212_v46, %v7106_v19  ;;  %v2247_v2 = vrot.slane %v2245_v23, 4  ;;  %v2248_v31 = vshll.u32 %v5258_v30, 16  ;;  %v2185_v29 = vsel %vm6401_vm3, %v7114_v33, %v7083_v5  ;;  %v5264_v13 = vld [vmem:[%s6363_s7 + $0x84] sm:$0xf]  ;;  %v7176_v23 = vld [vmem:[%s6363_s7 + $0x88] sm:$0xf] }
  0xa0   : > { %5823 = vmatmul.mubr.msk.bf16.gmra.mxu1 %vm675_vm2, %v9019_v44  ;;  %v2190_v62 = vrot.slane %v2189_v17, 4  ;;  %v2254_v3 = vshll.u32 %v7122_v27, 16  ;;  %v2258_v35 = vshrl.u32 %v7122_v27, 16  ;;  %v2204_v59 = vrot.slane %v2203_v0, 4 }
  0xa1   : > { %5826 = vmatprep.mubr.msk.bf16.mxu1 %vm675_vm2, %v9020_v18  ;;  %v2227_v48 = vor.u32 %v2226_v24, %v2223_v22  ;;  %v2240_v52 = vshll.u32 %v7118_v10, 16  ;;  %v2250_v38 = vrot.slane %v2248_v31, 5  ;;  %v2218_v20 = vrot.slane %v2216_v43, 5 }
  0xa2   : > { %v2237_v37 = vor.u32 %v2236_v6, %v7131_v8  ;;  %v7155_v30 = vrot.slane %v2254_v3, 5  ;;  %v2269_v60 = vshrl.u32 %v5261_v36, 16  ;;  %v9021_v5 = vcombine.low %v6953_v50, %v6957_v51 }
  0xa3   : > { %v2214_v57 = vrot.slane %v2213_v7, 4  ;;  %v2251_v32 = vor.u32 %v2250_v38, %v2247_v2  ;;  %v2260_v46 = vrot.slane %v2258_v35, 4  ;;  %v2264_v26 = vshll.u32 %v7134_v14, 16  ;;  %v7197_v35 = vld [vmem:[%s6363_s7 + $0x94] sm:$0xf] }
  0xa4   : > { %5861 = vmatmul.mubr.msk.bf16.gmra.mxu0 %vm675_vm2, %v9021_v5  ;;  %v2195_v33 = vsel %vm6401_vm3, %v2190_v62, %v7128_v21  ;;  %v2272_v17 = vshll.u32 %v5261_v36, 16  ;;  %v2278_v50 = vshll.u32 %v7151_v53, 16  ;;  %v2282_v51 = vshrl.u32 %v7151_v53, 16  ;;  %v7183_v21 = vld [vmem:[%s6363_s7 + $0x80] sm:$0x1] }
  0xa5   : > { %5900 = vmatprep.mubr.msk.bf16.mxu0 %vm675_vm2, %v7038_v9  ;;  %v2209_v1 = vsel %vm6401_vm3, %v2204_v59, %v7106_v19  ;;  %v2228_v0 = vrot.slane %v2227_v48, 4  ;;  %v2242_v22 = vrot.slane %v2240_v52, 5  ;;  %v2261_v24 = vor.u32 %v2260_v46, %v7155_v30 }
  0xa6   : > { %v9022_v9 = vcombine.low %v9009_v61, %v6656_v16  ;;  %v2238_v44 = vrot.slane %v2237_v37, 4  ;;  %v2271_v43 = vrot.slane %v2269_v60, 4  ;;  %v2274_v6 = vrot.slane %v2272_v17, 5  ;;  %v5267_v61 = vld [vmem:[%s6363_s7 + $0x90] sm:$0xf]  ;;  %v6140_v37 = vld [vmem:[%s6363_s7 + $0x18] sm:$0xff]  }
  0xa7   : > { %v2293_v18 = vshrl.u32 %v5264_v13, 16  ;;  %v2219_v19 = vsel %vm6401_vm3, %v2214_v57, %v2218_v20  ;;  %v7188_v7 = vrot.slane %v2251_v32, 4  ;;  %v7190_v2 = vrot.slane %v2264_v26, 5  ;;  %v7204_v20 = vld [vmem:[%s8950_s1 + $0x40] sm:$0xff]  }
  0xa8   : > { %5827 = vmatmul.mubr.msk.bf16.gmra.mxu1 %vm675_vm2, %v9022_v9  ;;  %v2296_v16 = vshll.u32 %v5264_v13, 16  ;;  %v7193_v31 = vrot.slane %v2278_v50, 5  ;;  %v2284_v36 = vrot.slane %v2282_v51, 4  ;;  %v2302_v3 = vshll.u32 %v7176_v23, 16  ;;  %9023 = vst [vmem:[#allocation11_spill] sm:$0xff] %v7204_v20  ;;  %v6142_v32 = vld [vmem:[%s6363_s7 + $0x24] sm:$0xff]  }
  0xa9   : > { %5866 = vmatprep.mubr.msk.bf16.mxu1 %vm675_vm2, %v6138_v63  ;;  %v2295_v62 = vrot.slane %v2293_v18, 4  ;;  %v2262_v59 = vrot.slane %v2261_v24, 4  ;;  %v2288_v48 = vshll.u32 %v7183_v21, 16  ;;  %v2306_v38 = vshrl.u32 %v7176_v23, 16  ;;  %v7222_v13 = vld [vmem:[%s6363_s7 + $0x8c] sm:$0x1] }
  0xaa   : > { %v2298_v52 = vrot.slane %v2296_v16, 5  ;;  %v2233_v60 = vsel %vm6401_vm3, %v2228_v0, %v7131_v8  ;;  %v2243_v5 = vsel %vm6401_vm3, %v2238_v44, %v2242_v22  ;;  %v2275_v63 = vor.u32 %v2274_v6, %v2271_v43  ;;  %v7247_v24 = vld [vmem:[%s6363_s7 + $0xa0] sm:$0xf]  ;;  %v7259_v6 = vld [vmem:[%s6363_s7 + $0x98] sm:$0x1] }
  0xab   : > { %v7212_v57 = vrot.slane %v2302_v3, 5  ;;  %v7217_v46 = vcombine.low %v2185_v29, %v2195_v33  ;;  %v7219_v26 = vcombine.low %v2209_v1, %v2219_v19  ;;  %v2308_v17 = vrot.slane %v2306_v38, 4  ;;  %v5270_v29 = vld [vmem:[%s6363_s7 + $0x9c] sm:$0xf]  ;;  %9025 = vst [vmem:[#allocation13_spill] sm:$0xff] %v7247_v24 }
  0xac   : > { %5901 = vmatmul.mubr.msk.bf16.vlgmr.msra.gmra.mxu0 %vm675_vm2, %v7089_v39  ;;  %v2317_v8 = vshrl.u32 %v5267_v61, 16  ;;  %v2285_v50 = vor.u32 %v2284_v36, %v7193_v31  ;;  %v2299_v51 = vor.u32 %v2298_v52, %v2295_v62  ;;  %v2320_v0 = vshll.u32 %v5267_v61, 16  ;;  %v7233_v33 = vld [vmem:[%s8950_s1 + $0x38] sm:$0xff]   ;;  %v7272_v38 = vld [vmem:[%s6363_s7 + $0xac] sm:$0xf] }
  0xad   : > { %5967 = vmatpush3.bf16.msra.mxu0 %v6738_v40  ;;  %5904 = vmatprep.mubr.msk.bf16.mxu0 %vm675_vm2, %v7091_v56  ;;  %v2326_v39 = vshll.u32 %v7197_v35, 16  ;;  %9024 = vst [vmem:[#allocation8_spill] sm:$0xff] %v7233_v33  ;;  %v7235_v1 = vcombine.low %v2233_v60, %v2243_v5  ;;  %v2257_v40 = vsel %vm6401_vm3, %v7188_v7, %v7155_v30  ;;  %v7244_v22 = vrot.slane %v2288_v48, 5 }
  0xae   : > { %v2267_v56 = vsel %vm6401_vm3, %v2262_v59, %v7190_v2  ;;  %6034 = vmatprep.subr.bf16.mxu0 %v7204_v20  ;;  %v7251_v9 = vrot.slane %v2275_v63, 4  ;;  %v2309_v44 = vor.u32 %v2308_v17, %v7212_v57  ;;  %v2312_v43 = vshll.u32 %v7222_v13, 16  ;;  %9026 = vst [vmem:[#allocation15_spill] sm:$0xff] %v7272_v38  ;;  %v6144_v17 = vld [vmem:[%s6363_s7 + $0x3c] sm:$0xff]   ;;  %v7338_v20 = vld [vmem:[%s6363_s7 + $0xc4] sm:$0xf] }
  0xaf   : > { %v2330_v30 = vshrl.u32 %v7197_v35, 16  ;;  %v2319_v18 = vrot.slane %v2317_v8, 4  ;;  %v2322_v19 = vrot.slane %v2320_v0, 5  ;;  %v2341_v7 = vshrl.u32 %v5270_v29, 16 }
  0xb0   : > { %5867 = vmatmul.mubr.msk.bf16.vlgmr.msra.gmra.mxu1 %vm675_vm2, %v6140_v37  ;;  %v2344_v2 = vshll.u32 %v5270_v29, 16  ;;  %v7261_v16 = vrot.slane %v2285_v50, 4  ;;  %v7263_v61 = vrot.slane %v2299_v51, 4  ;;  %v7265_v36 = vrot.slane %v2326_v39, 5  ;;  %v6143_v37 = vld [vmem:[%s6363_s7 + $0x30] sm:$0xff]  }
  0xb1   : > { %5933 = vmatpush3.bf16.msra.mxu1 %v6758_v4  ;;  %5870 = vmatprep.mubr.msk.bf16.mxu1 %vm675_vm2, %v6142_v32  ;;  %v2350_v62 = vshll.u32 %v7247_v24, 16  ;;  %v5273_v4 = vld [vmem:[%s6363_s7 + $0xa8] sm:$0xf]  ;;  %v2332_v3 = vrot.slane %v2330_v30, 4  ;;  %v2343_v59 = vrot.slane %v2341_v7, 4  ;;  %v2354_v52 = vshrl.u32 %v7247_v24, 16 }
  0xb2   : > { %6000 = vmatprep.subr.bf16.mxu1 %v7233_v33  ;;  %v2346_v48 = vrot.slane %v2344_v2, 5  ;;  %v7275_v60 = vcombine.low %v2257_v40, %v2267_v56  ;;  %v7277_v5 = vrot.slane %v2309_v44, 4  ;;  %v7279_v63 = vrot.slane %v2312_v43, 5  ;;  %v7286_v50 = vld [vmem:[%s6363_s7 + $0xa4] sm:$0x1] }
  0xb3   : > { %v2336_v32 = vshll.u32 %v7259_v6, 16  ;;  %v2323_v8 = vor.u32 %v2322_v19, %v2319_v18  ;;  %9027 = vst [vmem:[#allocation14_spill] sm:$0xff] %v7286_v50  ;;  %v7288_v51 = vrot.slane %v2350_v62, 5  ;;  %v2356_v0 = vrot.slane %v2354_v52, 4  ;;  %v7307_v30 = vld [vmem:[%s6363_s7 + $0xb0] sm:$0x1] }
  0xb4   : > { %5905 = vmatmul.mubr.msk.bf16.gmra.mxu0 %vm675_vm2, %v7098_v42  ;;  %v2365_v39 = vshrl.u32 %v5273_v4, 16  ;;  %v2291_v42 = vsel %vm6401_vm3, %v7261_v16, %v7244_v22  ;;  %v2368_v40 = vshll.u32 %v5273_v4, 16  ;;  %v2374_v56 = vshll.u32 %v7272_v38, 16  ;;  %9028 = vst [vmem:[#allocation16_spill] sm:$0xff] %v7307_v30  ;;  %v5276_v19 = vld [vmem:[%s6363_s7 + $0xb4] sm:$0xf] }
  0xb5   : > { %5908 = vmatprep.mubr.msk.bf16.mxu0 %vm675_vm2, %v7140_v58  ;;  %v2333_v58 = vor.u32 %v2332_v3, %v7265_v36  ;;  %v2347_v43 = vor.u32 %v2346_v48, %v2343_v59  ;;  %v2360_v22 = vshll.u32 %v7286_v50, 16  ;;  %v2378_v16 = vshrl.u32 %v7272_v38, 16  ;;  %v7316_v62 = vld [vmem:[%s6363_s7 + $0xb8] sm:$0xf]  ;;  %v7347_v24 = vld [vmem:[%s6363_s7 + $0xc8] sm:$0x1] }
  0xb6   : > { %v2367_v18 = vrot.slane %v2365_v39, 4  ;;  %v2370_v7 = vrot.slane %v2368_v40, 5  ;;  %v7312_v2 = vrot.slane %v2374_v56, 5  ;;  %9029 = vst [vmem:[#allocation17_spill] sm:$0xff] %v7316_v62  ;;  %v2315_v4 = vsel %vm6401_vm3, %v7277_v5, %v7279_v63  ;;  %v7330_v39 = vld [vmem:[%s6363_s7 + $0xbc] sm:$0x1] }
  0xb7   : > { %v7323_v3 = vrot.slane %v2323_v8, 4  ;;  %v7325_v59 = vrot.slane %v2336_v32, 5  ;;  %v2357_v48 = vor.u32 %v2356_v0, %v7288_v51  ;;  %v2380_v52 = vrot.slane %v2378_v16, 4  ;;  %v5279_v63 = vld [vmem:[%s6363_s7 + $0xc0] sm:$0xf]  ;;  %v6145_v32 = vld [vmem:[%s6363_s7 + $0x48] sm:$0xff]  }
  0xb8   : > { %5871 = vmatmul.mubr.msk.bf16.gmra.mxu1 %vm675_vm2, %v6143_v37  ;;  %v2384_v37 = vshll.u32 %v7307_v30, 16  ;;  %v2389_v40 = vshrl.u32 %v5276_v19, 16  ;;  %v2334_v56 = vrot.slane %v2333_v58, 4  ;;  %v2371_v44 = vor.u32 %v2370_v7, %v2367_v18 }
  0xb9   : > { %5874 = vmatprep.mubr.msk.bf16.mxu1 %vm675_vm2, %v6144_v17  ;;  %v2392_v17 = vshll.u32 %v5276_v19, 16  ;;  %v2398_v29 = vshll.u32 %v7316_v62, 16  ;;  %v2402_v5 = vshrl.u32 %v7316_v62, 16  ;;  %v2348_v8 = vrot.slane %v2347_v43, 4  ;;  %v6146_v19 = vld [vmem:[%s6363_s7 + $0x54] sm:$0xff]  }
  0xba   : > { %v2362_v33 = vrot.slane %v2360_v22, 5  ;;  %v2381_v0 = vor.u32 %v2380_v52, %v7312_v2  ;;  %v2391_v16 = vrot.slane %v2389_v40, 4  ;;  %v2408_v30 = vshll.u32 %v7330_v39, 16 }
  0xbb   : > { %v2394_v58 = vrot.slane %v2392_v17, 5  ;;  %v2400_v18 = vrot.slane %v2398_v29, 5  ;;  %v2404_v7 = vrot.slane %v2402_v5, 4  ;;  %v2358_v43 = vrot.slane %v2357_v48, 4 }
  0xbc   : > { %5909 = vmatmul.mubr.msk.bf16.gmra.mxu0 %vm675_vm2, %v7217_v46  ;;  %v2386_v22 = vrot.slane %v2384_v37, 5  ;;  %v2413_v62 = vshrl.u32 %v5279_v63, 16  ;;  %v2416_v52 = vshll.u32 %v5279_v63, 16  ;;  %v2372_v40 = vrot.slane %v2371_v44, 4 }
  0xbd   : > { %5912 = vmatprep.mubr.msk.bf16.mxu0 %vm675_vm2, %v7219_v26  ;;  %v2395_v38 = vor.u32 %v2394_v58, %v2391_v16  ;;  %v2405_v50 = vor.u32 %v2404_v7, %v2400_v18  ;;  %v2422_v46 = vshll.u32 %v7338_v20, 16  ;;  %v2382_v29 = vrot.slane %v2381_v0, 4 }
  0xbe   : > { %v2415_v17 = vrot.slane %v2413_v62, 4  ;;  %v2418_v5 = vrot.slane %v2416_v52, 5  ;;  %v2426_v26 = vshrl.u32 %v7338_v20, 16  ;;  %v2410_v44 = vrot.slane %v2408_v30, 5 }
  0xbf   : > { %v2396_v48 = vrot.slane %v2395_v38, 4  ;;  %v2406_v37 = vrot.slane %v2405_v50, 4  ;;  %v7353_v63 = vrot.slane %v2422_v46, 5  ;;  %v2432_v58 = vshll.u32 %v7347_v24, 16 }
  0xc0   : > { %5875 = vmatmul.mubr.msk.bf16.gmra.mxu1 %vm675_vm2, %v6145_v32  ;;  %v9030_v32 = vsel %vm6401_vm3, %v7251_v9, %v7193_v31  ;;  %v2419_v62 = vor.u32 %v2418_v5, %v2415_v17  ;;  %v2428_v16 = vrot.slane %v2426_v26, 4  ;;  %v9031_v38 = vsel %vm6401_vm3, %v7263_v61, %v7212_v57 }
  0xc1   : > { %5878 = vmatprep.mubr.msk.bf16.mxu1 %vm675_vm2, %v6146_v19  ;;  %v5293_v0 = vcombine.low %v9030_v32, %v2291_v42  ;;  %v5294_v50 = vcombine.low %v9031_v38, %v2315_v4  ;;  %v2329_v30 = vsel %vm6401_vm3, %v7323_v3, %v7265_v36  ;;  %v2339_v31 = vsel %vm6401_vm3, %v2334_v56, %v7325_v59  ;;  %v5319_v42 = vld [vmem:[%s6363_s7 + $0x24] sm:$0xe]  ;;  %v7387_v3 = vld [vmem:[%s6363_s7 + $0xc] sm:$0xe] }
  0xc2   : > { %v2353_v9 = vsel %vm6401_vm3, %v2348_v8, %v7288_v51  ;;  %v6147_v19 = vld [vmem:[%s6363_s7 + $0x60] sm:$0xff]   ;;  %v2363_v57 = vsel %vm6401_vm3, %v2358_v43, %v2362_v33  ;;  %v2377_v61 = vsel %vm6401_vm3, %v2372_v40, %v7312_v2  ;;  %v2387_v36 = vsel %vm6401_vm3, %v2382_v29, %v2386_v22  ;;  %v6148_v51 = vld [vmem:[%s6363_s7 + $0x6c] sm:$0xff]   ;;  %v5321_v29 = vld [vmem:[%s6363_s7 + $0x3c] sm:$0xe] }
  0xc3   : > { %v2429_v4 = vor.u32 %v2428_v16, %v7353_v63  ;;  %v2401_v59 = vsel %vm6401_vm3, %v2396_v48, %v2400_v18  ;;  %v2411_v33 = vsel %vm6401_vm3, %v2406_v37, %v2410_v44  ;;  %v7396_v56 = vrot.slane %v2419_v62, 4  ;;  %v5320_v8 = vld [vmem:[%s6363_s7 + $0x30] sm:$0xe]  ;;  %v5322_v48 = vld [vmem:[%s6363_s7 + $0x48] sm:$0xe]  ;;  %v9033_v16 = vld [vmem:[#allocation10_spill] sm:$0xff] }
  0xc4   : > { %5913 = vmatmul.mubr.msk.bf16.gmra.mxu0 %vm675_vm2, %v7235_v1  ;;  %v2800_v2 = vrot.slane %v6887_v15, 5  ;;  %v7402_v7 = vcombine.low %v2329_v30, %v2339_v31  ;;  %v7406_v43 = vrot.slane %v2432_v58, 5  ;;  %v5335_v22 = vrot.slane %v5319_v42, 9  ;;  %v9034_v38 = vld [vmem:[#allocation12_spill] sm:$0xff] }
  0xc5   : > { %5916 = vmatprep.mubr.msk.bf16.mxu0 %vm675_vm2, %v7275_v60  ;;  %v7404_v1 = vrot.slane %v2429_v4, 4  ;;  %v7408_v18 = vcombine.low %v2353_v9, %v2363_v57  ;;  %v7410_v52 = vcombine.low %v2377_v61, %v2387_v36  ;;  %v5333_v40 = vrot.slane %v7387_v3, 9  ;;  %v5323_v9 = vld [vmem:[%s6363_s7 + $0x54] sm:$0xe]  ;;  %v6149_v36 = vld [vmem:[%s6363_s7 + $0x78] sm:$0xff]   ;;  %v6155_v15 = vld [vmem:[%s6363_s7 + $0xc0] sm:$0xff]  }
  0xc6   : > { %v2814_v46 = vrot.slane %v6939_v25, 5  ;;  %v7416_v60 = vcombine.low %v2401_v59, %v2411_v33  ;;  %v2803_v17 = vrot.slane %v6902_v54, 5  ;;  %v2817_v5 = vrot.slane %v6980_v11, 5 }
  0xc7   : > { %v5336_v26 = vrot.slane %v5320_v8, 9  ;;  %v2425_v25 = vsel %vm6401_vm3, %v7396_v56, %v7353_v63  ;;  %v7428_v37 = vrot.slane %v2800_v2, 4  ;;  %v2435_v62 = vsel %vm6401_vm3, %v7404_v1, %v7406_v43  ;;  %v5324_v8 = vld [vmem:[%s6363_s7 + $0x60] sm:$0xe]  ;;  %v6156_v56 = vld [vmem:[%s6363_s7 + $0x18] sm:$0xff]  }
  0xc8   : > { %5879 = vmatmul.mubr.msk.bf16.gmra.mxu1 %vm675_vm2, %v6147_v19  ;;  %v7432_v32 = vsel %vm6677_vm6, %v5335_v22, %v2814_v46  ;;  %v2816_v11 = vrot.slane %v2814_v46, 4  ;;  %v2821_v58 = vrot.slane %v9033_v16, 5  ;;  %v2824_v30 = vrot.slane %v9034_v38, 5  ;;  %v5318_v43 = vld [vmem:[%s6363_s7 + $0x18] sm:$0xe] }
  0xc9   : > { %5882 = vmatprep.mubr.msk.bf16.mxu1 %vm675_vm2, %v6148_v51  ;;  %v5337_v31 = vrot.slane %v5321_v29, 9  ;;  %v2828_v19 = vrot.slane %v6998_v47, 5  ;;  %v2831_v57 = vrot.slane %v7019_v12, 5  ;;  %v5338_v61 = vrot.slane %v5322_v48, 9  ;;  %v6150_v47 = vld [vmem:[%s6363_s7 + $0x84] sm:$0xff]  }
  0xca   : > { %v7443_v42 = vsel %vm6677_vm6, %v2816_v11, %v2817_v5  ;;  %v7452_v51 = vsel %vm6677_vm6, %v5336_v26, %v2821_v58  ;;  %v2823_v59 = vrot.slane %v2821_v58, 4  ;;  %v2835_v33 = vrot.slane %v7023_v55, 5  ;;  %v5325_v48 = vld [vmem:[%s6363_s7 + $0x6c] sm:$0xe]  ;;  %v5326_v58 = vld [vmem:[%s6363_s7 + $0x78] sm:$0xe] }
  0xcb   : > { %v5353_v4 = vcombine.low %v7432_v32, %v7443_v42  ;;  %v7460_v12 = vsel %vm6677_vm6, %v5337_v31, %v2828_v19  ;;  %v2830_v22 = vrot.slane %v2828_v19, 4  ;;  %v2838_v46 = vrot.slane %v7052_v45, 5 }
  0xcc   : > { %5917 = vmatmul.mubr.msk.bf16.gmra.mxu0 %vm675_vm2, %v5293_v0  ;;  %v5339_v29 = vrot.slane %v5323_v9, 9  ;;  %v7466_v5 = vsel %vm6677_vm6, %v2823_v59, %v2824_v30  ;;  %v7470_v55 = vsel %vm6677_vm6, %v5338_v61, %v2835_v33  ;;  %v2837_v0 = vrot.slane %v2835_v33, 4  ;;  %v5327_v61 = vld [vmem:[%s6363_s7 + $0x84] sm:$0xe] }
  0xcd   : > { %5920 = vmatprep.mubr.msk.bf16.mxu0 %vm675_vm2, %v5294_v50  ;;  %v2842_v26 = vrot.slane %v7055_v41, 5  ;;  %v5354_v11 = vcombine.low %v7452_v51, %v7466_v5  ;;  %v7478_v45 = vsel %vm6677_vm6, %v2830_v22, %v2831_v57  ;;  %v2845_v50 = vrot.slane %v7104_v34, 5  ;;  %v7730_v34 = vld [vmem:[%s6363_s7 + $0x38] sm:$0x1] }
  0xce   : > { %v5340_v16 = vrot.slane %v5324_v8, 9  ;;  %v5355_v38 = vcombine.low %v7460_v12, %v7478_v45  ;;  %v7487_v41 = vsel %vm6677_vm6, %v2837_v0, %v2838_v46  ;;  %v2849_v9 = vrot.slane %v7077_v49, 5  ;;  %v5328_v46 = vld [vmem:[%s6363_s7 + $0x90] sm:$0xe] }
  0xcf   : > { %v7491_v30 = vsel %vm6677_vm6, %v5339_v29, %v2842_v26  ;;  %v2844_v31 = vrot.slane %v2842_v26, 4  ;;  %v2852_v19 = vrot.slane %v7118_v10, 5  ;;  %v5341_v57 = vrot.slane %v5325_v48, 9  ;;  %v6151_v29 = vld [vmem:[%s6363_s7 + $0x90] sm:$0xff]   ;;  %v6152_v48 = vld [vmem:[%s6363_s7 + $0x9c] sm:$0xff]  }
  0xd0   : > { %5883 = vmatmul.mubr.msk.bf16.gmra.mxu1 %vm675_vm2, %v6149_v36  ;;  %v2856_v59 = vrot.slane %v7122_v27, 5  ;;  %v2859_v33 = vrot.slane %v7134_v14, 5  ;;  %v5342_v8 = vrot.slane %v5326_v58, 9  ;;  %v7509_v49 = vsel %vm6677_vm6, %v5340_v16, %v2849_v9 }
  0xd1   : > { %5886 = vmatprep.mubr.msk.bf16.mxu1 %vm675_vm2, %v6150_v47  ;;  %v7501_v36 = vsel %vm6677_vm6, %v2844_v31, %v2845_v50  ;;  %v2851_v10 = vrot.slane %v2849_v9, 4  ;;  %v2863_v22 = vrot.slane %v7151_v53, 5  ;;  %v2866_v14 = vrot.slane %v7183_v21, 5  ;;  %v5329_v31 = vld [vmem:[%s6363_s7 + $0x9c] sm:$0xe] }
  0xd2   : > { %v7516_v0 = vsel %vm6677_vm6, %v5341_v57, %v2856_v59  ;;  %v2858_v27 = vrot.slane %v2856_v59, 4  ;;  %v5343_v26 = vrot.slane %v5327_v61, 9  ;;  %v2870_v58 = vrot.slane %v7176_v23, 5  ;;  %v5330_v57 = vld [vmem:[%s6363_s7 + $0xa8] sm:$0xe] }
  0xd3   : > { %v7524_v50 = vsel %vm6677_vm6, %v2851_v10, %v2852_v19  ;;  %v7528_v53 = vsel %vm6677_vm6, %v5342_v8, %v2863_v22  ;;  %v2865_v16 = vrot.slane %v2863_v22, 4  ;;  %v2873_v9 = vrot.slane %v7222_v13, 5  ;;  %v5331_v22 = vld [vmem:[%s6363_s7 + $0xb4] sm:$0xe]  ;;  %v5332_v13 = vld [vmem:[%s6363_s7 + $0xc0] sm:$0xe] }
  0xd4   : > { %5921 = vmatmul.mubr.msk.bf16.gmra.mxu0 %vm675_vm2, %v7402_v7  ;;  %v7538_v7 = vsel %vm6677_vm6, %v2858_v27, %v2859_v33  ;;  %v5344_v19 = vrot.slane %v5328_v46, 9  ;;  %v2872_v59 = vrot.slane %v2870_v58, 4  ;;  %v2877_v33 = vrot.slane %v7197_v35, 5  ;;  %v9035_v27 = vld [vmem:[#allocation13_spill] sm:$0xff] }
  0xd5   : > { %5924 = vmatprep.mubr.msk.bf16.mxu0 %vm675_vm2, %v7408_v18  ;;  %v7546_v23 = vsel %vm6677_vm6, %v2865_v16, %v2866_v14  ;;  %v7550_v18 = vsel %vm6677_vm6, %v5343_v26, %v2870_v58  ;;  %v2880_v8 = vrot.slane %v7259_v6, 5  ;;  %v5345_v10 = vrot.slane %v5329_v31, 9  ;;  %v9036_v26 = vld [vmem:[#allocation14_spill] sm:$0xff]  ;;  %v9037_v31 = vld [vmem:[#allocation15_spill] sm:$0xff]  ;;  %v6153_v61 = vld [vmem:[%s6363_s7 + $0xa8] sm:$0xff]  }
  0xd6   : > { %v7561_v46 = vsel %vm6677_vm6, %v2872_v59, %v2873_v9  ;;  %v2884_v14 = vrot.slane %v9035_v27, 5  ;;  %v5346_v16 = vrot.slane %v5330_v57, 9  ;;  %v7569_v6 = vsel %vm6677_vm6, %v5344_v19, %v2877_v33  ;;  %v9038_v27 = vld [vmem:[#allocation16_spill] sm:$0xff] }
  0xd7   : > { %v2879_v58 = vrot.slane %v2877_v33, 4  ;;  %v5347_v57 = vrot.slane %v5331_v22, 9  ;;  %v2801_v1 = vsel %vm6677_vm6, %v5333_v40, %v2800_v2  ;;  %v2804_v63 = vsel %vm6677_vm6, %v7428_v37, %v2803_v17  ;;  %v6178_v17 = vld [vmem:[%s6363_s7 + $0x20] sm:$0x1] }
  0xd8   : > { %5887 = vmatmul.mubr.msk.bf16.gmra.mxu1 %vm675_vm2, %v6151_v29  ;;  %v2887_v29 = vrot.slane %v9036_v26, 5  ;;  %v7575_v9 = vsel %vm6677_vm6, %v5345_v10, %v2884_v14  ;;  %v2886_v59 = vrot.slane %v2884_v14, 4  ;;  %v2894_v26 = vrot.slane %v9038_v27, 5  ;;  %v6154_v10 = vld [vmem:[%s6363_s7 + $0xb4] sm:$0xff]  }
  0xd9   : > { %5890 = vmatprep.mubr.msk.bf16.mxu1 %vm675_vm2, %v6152_v48  ;;  %v2891_v48 = vrot.slane %v9037_v31, 5  ;;  %v7581_v35 = vsel %vm6677_vm6, %v2879_v58, %v2880_v8  ;;  %v9039_v31 = vld [vmem:[#allocation17_spill] sm:$0xff]  ;;  %v2901_v8 = vrot.slane %v7330_v39, 5  ;;  %v5348_v58 = vrot.slane %v5332_v13, 9 }
  0xda   : > { %v2898_v21 = vrot.slane %v9039_v31, 5  ;;  %v7595_v14 = vsel %vm6677_vm6, %v2886_v59, %v2887_v29  ;;  %v2905_v13 = vrot.slane %v7338_v20, 5  ;;  %v6177_v59 = vld [vmem:[%s6363_s7 + $0x1c] sm:$0xf]  ;;  %v5299_v20 = vcombine.low %v2425_v25, %v2435_v62  ;;  %v6160_v31 = vld [vmem:[%s6363_s7 + $0x30] sm:$0xff]  }
  0xdb   : > { %v7585_v19 = vsel %vm6677_vm6, %v5346_v16, %v2891_v48  ;;  %v2893_v33 = vrot.slane %v2891_v48, 4  ;;  %v2807_v27 = vrot.slane %v6177_v59, 5  ;;  %v5351_v54 = vcombine.low %v2801_v1, %v2804_v63 }
  0xdc   : > { %5925 = vmatmul.mubr.msk.bf16.gmra.mxu0 %vm675_vm2, %v7410_v52  ;;  %v7608_v48 = vsel %vm6677_vm6, %v5347_v57, %v2898_v21  ;;  %v2900_v29 = vrot.slane %v2898_v21, 4  ;;  %v7635_v21 = vsel %vm6677_vm6, %v5348_v58, %v2905_v13  ;;  %v5334_v2 = vrot.slane %v5318_v43, 9 }
  0xdd   : > { %5928 = vmatprep.mubr.msk.bf16.mxu0 %vm675_vm2, %v7416_v60  ;;  %v7604_v52 = vsel %vm6677_vm6, %v2893_v33, %v2894_v26  ;;  %v2908_v60 = vrot.slane %v7347_v24, 5  ;;  %v2809_v40 = vrot.slane %v2807_v27, 4  ;;  %v2810_v37 = vrot.slane %v6178_v17, 5  ;;  %v6158_v33 = vld [vmem:[%s6363_s7 + $0x24] sm:$0xff]  }
  0xde   : > { %v7618_v26 = vsel %vm6677_vm6, %v2900_v29, %v2901_v8  ;;  %v2808_v62 = vsel %vm6677_vm6, %v5334_v2, %v2807_v27  ;;  %v7670_v8 = vld [vmem:[%s6363_s7 + $0x1c] sm:$0xf]  ;;  %v5454_v29 = vld [vmem:[%s6363_s7 + $0x24] sm:$0xf]  ;;  %v6162_v2 = vld [vmem:[%s6363_s7 + $0x48] sm:$0xff]  }
  0xdf   : > { %v2811_v57 = vsel %vm6677_vm6, %v2809_v40, %v2810_v37  ;;  %v3644_v1 = vshrl.u32 %v5454_v29, 16  ;;  %v3647_v63 = vshll.u32 %v5454_v29, 16  ;;  %v5453_v40 = vld [vmem:[%s6363_s7 + $0x20] sm:$0x1] }
  0xe0   : > { %5891 = vmatmul.mubr.msk.bf16.gmra.mxu1 %vm675_vm2, %v6153_v61  ;;  %v2907_v61 = vrot.slane %v2905_v13, 4  ;;  %v5352_v58 = vcombine.low %v2808_v62, %v2811_v57  ;;  %v7675_v13 = vld [vmem:[%s6363_s7 + $0x28] sm:$0xf]  ;;  %v3639_v42 = vshll.u32 %v5453_v40, 16 }
  0xe1   : > { %5894 = vmatprep.mubr.msk.bf16.mxu1 %vm675_vm2, %v6154_v10  ;;  %v5451_v10 = vld [vmem:[%s6363_s7 + $0x18] sm:$0xf]  ;;  %v3657_v43 = vshrl.u32 %v7675_v13, 16 }
  0xe2   : > { %v7652_v25 = vsel %vm6677_vm6, %v2907_v61, %v2908_v60  ;;  %v9040_v60 = vld [vmem:[#allocation11_spill] sm:$0xff]  ;;  %v3620_v59 = vshrl.u32 %v5451_v10, 16  ;;  %v3623_v27 = vshll.u32 %v5451_v10, 16  ;;  %v3633_v61 = vshrl.u32 %v7670_v8, 16  ;;  %v5457_v10 = vld [vmem:[%s6363_s7 + $0x30] sm:$0xf] }
  0xe3   : > { %v3659_v29 = vrot.slane %v3657_v43, 4  ;;  %v4374_v43 = vrot.slane %v7675_v13, 5  ;;  %v3641_v51 = vrot.slane %v3639_v42, 5 }
  0xe4   : > { %5929 = vmatmul.mubr.msk.bf16.gmra.mxu0 %vm675_vm2, %v5299_v20  ;;  %v3629_v20 = vshll.u32 %v7670_v8, 16  ;;  %v3622_v17 = vrot.slane %v3620_v59, 4  ;;  %v3625_v37 = vrot.slane %v3623_v27, 5  ;;  %v3635_v57 = vrot.slane %v3633_v61, 4  ;;  %v7703_v59 = vld [vmem:[%s6363_s7 + $0x34] sm:$0xf] }
  0xe5   : > { %5968 = vmatprep.mubr.msk.bf16.mxu0 %vm675_vm2, %v6156_v56  ;;  %v3653_v56 = vshll.u32 %v7675_v13, 16  ;;  %v5534_v61 = vld [vmem:[%s6363_s7 + $0x18] sm:$0xe]  ;;  %v4376_v22 = vrot.slane %v4374_v43, 4 }
  0xe6   : > { %v7692_v62 = vrot.slane %v3629_v20, 5  ;;  %v3626_v27 = vor.u32 %v3625_v37, %v3622_v17  ;;  %v3677_v17 = vshll.u32 %v7703_v59, 16  ;;  %v3681_v37 = vshrl.u32 %v7703_v59, 16  ;;  %v6163_v13 = vld [vmem:[%s6363_s7 + $0x54] sm:$0xff]  }
  0xe7   : > { %v5550_v5 = vrot.slane %v5534_v61, 9 }
  0xe8   : > { %5895 = vmatmul.mubr.msk.bf16.gmra.mxu1 %vm675_vm2, %v6155_v15  ;;  %v9041_v15 = vld [vmem:[#allocation8_spill] sm:$0xff]  ;;  %v3636_v20 = vor.u32 %v3635_v57, %v7692_v62  ;;  %v7732_v42 = vrot.slane %v3677_v17, 5  ;;  %v7766_v17 = vld [vmem:[%s6363_s7 + $0x40] sm:$0xf] }
  0xe9   : > { %5934 = vmatprep.mubr.msk.bf16.mxu1 %vm675_vm2, %v5351_v54  ;;  %v6161_v54 = vld [vmem:[%s6363_s7 + $0x3c] sm:$0xff]  }
  0xec   : > { %5969 = vmatmul.mubr.msk.bf16.vlgmr.msra.gmra.mxu0 %vm675_vm2, %v6158_v33  ;;  %v3646_v33 = vrot.slane %v3644_v1, 4  ;;  %v3668_v1 = vshrl.u32 %v5457_v10, 16 }
  0xed   : > { %6035 = vmatpush3.bf16.msra.mxu0 %v9040_v60  ;;  %5972 = vmatprep.mubr.msk.bf16.mxu0 %vm675_vm2, %v6160_v31  ;;  %v3649_v31 = vrot.slane %v3647_v63, 5  ;;  %v5456_v60 = vld [vmem:[%s6363_s7 + $0x2c] sm:$0x1]  ;;  %v3671_v63 = vshll.u32 %v5457_v10, 16  ;;  %v3627_v10 = vrot.slane %v3626_v27, 4 }
  0xee   : > { %v3670_v3 = vrot.slane %v3668_v1, 4  ;;  %v4377_v12 = vrot.slane %v5456_v60, 5 }
  0xef   : > { %v3673_v24 = vrot.slane %v3671_v63, 5  ;;  %v3632_v61 = vsel %vm6401_vm3, %v3627_v10, %v7692_v62 }
  0xf0   : > { %5935 = vmatmul.mubr.msk.bf16.vlgmr.msra.gmra.mxu1 %vm675_vm2, %v5352_v58  ;;  %v7695_v58 = vrot.slane %v3653_v56, 5  ;;  %v7698_v32 = vpop.f32.mrf.mxu0  ;;  %v3650_v56 = vor.u32 %v3649_v31, %v3646_v33  ;;  %v4370_v33 = vrot.slane %v5453_v40, 5  ;;  %v6164_v31 = vld [vmem:[%s6363_s7 + $0x60] sm:$0xff]   ;;  %v3683_v40 = vrot.slane %v3681_v37, 4 }
  0xf1   : > { %6001 = vmatpush3.bf16.msra.mxu1 %v9041_v15  ;;  %5938 = vmatprep.mubr.msk.bf16.mxu1 %vm675_vm2, %v5353_v4  ;;  %v4367_v4 = vrot.slane %v7670_v8, 5  ;;  %v7761_v62 = vsel %vm6677_vm6, %v4376_v22, %v4377_v12  ;;  %v3705_v12 = vshrl.u32 %v7766_v17, 16 }
  0xf2   : > { %v3660_v15 = vor.u32 %v3659_v29, %v7695_v58  ;;  %v7724_v57 = vpop.f32.mrf.mxu0  ;;  %v3637_v29 = vrot.slane %v3636_v20, 4  ;;  %v3651_v39 = vrot.slane %v3650_v56, 4  ;;  %v3674_v56 = vor.u32 %v3673_v24, %v3670_v3 }
  0xf3   : > { %v7739_v20 = vsel %vm6677_vm6, %v5550_v5, %v4367_v4  ;;  %v9044_v24 = vcombine.low %v7470_v55, %v7487_v41  ;;  %v3684_v22 = vor.u32 %v3683_v40, %v7732_v42  ;;  %v6165_v55 = vld [vmem:[%s6363_s7 + $0x6c] sm:$0xff]   ;;  %v6166_v41 = vld [vmem:[%s6363_s7 + $0x78] sm:$0xff]  }
  0xf4   : > { %5973 = vmatmul.mubr.msk.bf16.gmra.mxu0 %vm675_vm2, %v6161_v54  ;;  %v3663_v54 = vshll.u32 %v5456_v60, 16  ;;  %v7735_v27 = vpop.f32.mrf.mxu0  ;;  %v5536_v60 = vld [vmem:[%s6363_s7 + $0x30] sm:$0xe]  ;;  %v3642_v1 = vsel %vm6401_vm3, %v3637_v29, %v3641_v51  ;;  %v5463_v51 = vld [vmem:[%s6363_s7 + $0x48] sm:$0xf]  ;;  %v7791_v5 = vrot.slane %v3674_v56, 4 }
  0xf5   : > { %5976 = vmatprep.mubr.msk.bf16.mxu0 %vm675_vm2, %v6162_v2  ;;  %v7713_v8 = vpop.f32.mrf.mxu1  ;;  %v5535_v2 = vld [vmem:[%s6363_s7 + $0x24] sm:$0xe]  ;;  %v5552_v3 = vrot.slane %v5536_v60, 9  ;;  %v7802_v29 = vld [vmem:[%s6363_s7 + $0x44] sm:$0x1]  ;;  %v3685_v40 = vrot.slane %v3684_v22, 4 }
  0xf6   : > { %9042 = vst [vmem:[#allocation9_spill] sm:$0xff] %v7713_v8  ;;  %v5551_v16 = vrot.slane %v5535_v2, 9  ;;  %v3665_v47 = vrot.slane %v3663_v54, 5  ;;  %v3687_v54 = vshll.u32 %v7730_v34, 16  ;;  %v5460_v2 = vld [vmem:[%s6363_s7 + $0x3c] sm:$0xf]  ;;  %v7784_v37 = vpop.f32.mrf.mxu0 }
  0xf7   : > { %v7727_v45 = vpop.f32.mrf.mxu1  ;;  %v5466_v56 = vld [vmem:[%s6363_s7 + $0x54] sm:$0xf]  ;;  %v7819_v22 = vld [vmem:[%s6363_s7 + $0x58] sm:$0xf] }
  0xf8   : > { %5939 = vmatmul.mubr.msk.bf16.gmra.mxu1 %vm675_vm2, %v5354_v11  ;;  %v4369_v11 = vrot.slane %v4367_v4, 4  ;;  %9043 = vst [vmem:[#allocation18_spill] sm:$0xff] %v7727_v45  ;;  %v3656_v4 = vsel %vm6401_vm3, %v3651_v39, %v7695_v58  ;;  %v4381_v58 = vrot.slane %v7703_v59, 5  ;;  %v3692_v59 = vshrl.u32 %v5460_v2, 16 }
  0xf9   : > { %5942 = vmatprep.mubr.msk.bf16.mxu1 %vm675_vm2, %v5355_v38  ;;  %v3661_v38 = vrot.slane %v3660_v15, 4  ;;  %v7757_v15 = vsel %vm6677_vm6, %v5551_v16, %v4374_v43  ;;  %v7772_v39 = vpop.f32.mrf.mxu1  ;;  %v9046_v43 = vcombine.low %v7491_v30, %v7501_v36  ;;  %v3701_v30 = vshll.u32 %v7766_v17, 16  ;;  %v7795_v36 = vld [vmem:[%s6363_s7 + $0x4c] sm:$0xf] }
  0xfa   : > { %v7750_v63 = vsel %vm6677_vm6, %v4369_v11, %v4370_v33  ;;  %9045 = vst [vmem:[#allocation10_spill] sm:$0xff] %v7772_v39  ;;  %v3695_v11 = vshll.u32 %v5460_v2, 16  ;;  %v3689_v10 = vrot.slane %v3687_v54, 5  ;;  %v7809_v60 = vsel %vm6677_vm6, %v5552_v3, %v4381_v58  ;;  %v6167_v39 = vld [vmem:[%s6363_s7 + $0x84] sm:$0xff]  }
  0xfb   : > { %v3666_v16 = vsel %vm6401_vm3, %v3661_v38, %v3665_v47  ;;  %v7805_v38 = vpop.f32.mrf.mxu1  ;;  %v3716_v54 = vshrl.u32 %v5463_v51, 16  ;;  %v3719_v2 = vshll.u32 %v5463_v51, 16  ;;  %v3694_v3 = vrot.slane %v3692_v59, 4  ;;  %v5537_v51 = vld [vmem:[%s6363_s7 + $0x3c] sm:$0xe] }
  0xfc   : > { %5977 = vmatmul.mubr.msk.bf16.gmra.mxu0 %vm675_vm2, %v6163_v13  ;;  %v7786_v13 = vcombine.low %v3632_v61, %v3642_v1  ;;  %v7797_v33 = vcombine.low %v3656_v4, %v3666_v16  ;;  %9047 = vst [vmem:[#allocation12_spill] sm:$0xff] %v7805_v38  ;;  %v4383_v61 = vrot.slane %v4381_v58, 4  ;;  %v4384_v1 = vrot.slane %v7730_v34, 5 }
  0xfd   : > { %5980 = vmatprep.mubr.msk.bf16.mxu0 %vm675_vm2, %v6164_v31  ;;  %v3729_v16 = vshrl.u32 %v7795_v36, 16  ;;  %v3680_v34 = vsel %vm6401_vm3, %v7791_v5, %v7732_v42  ;;  %v3697_v58 = vrot.slane %v3695_v11, 5  ;;  %v4388_v31 = vrot.slane %v7766_v17, 5 }
  0xfe   : > { %v3740_v47 = vshrl.u32 %v5466_v56, 16  ;;  %v3743_v38 = vshll.u32 %v5466_v56, 16  ;;  %v7839_v42 = vsel %vm6677_vm6, %v4383_v61, %v4384_v1  ;;  %v3711_v5 = vshll.u32 %v7802_v29, 16  ;;  %v6168_v56 = vld [vmem:[%s6363_s7 + $0x90] sm:$0xff]  }
  0xff   : > { %v3749_v59 = vshll.u32 %v7819_v22, 16  ;;  %v3753_v17 = vshrl.u32 %v7819_v22, 16  ;;  %v9051_v11 = vcombine.low %v7516_v0, %v7538_v7  ;;  %v3731_v1 = vrot.slane %v3729_v16, 4 }
 0x100   : > { %5943 = vmatmul.mubr.msk.bf16.gmra.mxu1 %vm675_vm2, %v9044_v24  ;;  %v3725_v24 = vshll.u32 %v7795_v36, 16  ;;  %v5553_v8 = vrot.slane %v5537_v51, 9  ;;  %v4391_v0 = vrot.slane %v7802_v29, 5  ;;  %v7877_v51 = vld [vmem:[%s6363_s7 + $0x5c] sm:$0x1] }
 0x101   : > { %5946 = vmatprep.mubr.msk.bf16.mxu1 %vm675_vm2, %v9046_v43  ;;  %v7814_v4 = vpop.f32.mrf.mxu0  ;;  %v7826_v43 = vrot.slane %v3701_v30, 5  ;;  %v3718_v30 = vrot.slane %v3716_v54, 4  ;;  %v5469_v54 = vld [vmem:[%s6363_s7 + $0x60] sm:$0xf] }
 0x102   : > { %9048 = vst [vmem:[#allocation13_spill] sm:$0xff] %v7814_v4  ;;  %v7853_v61 = vrot.slane %v3725_v24, 5  ;;  %v3745_v4 = vrot.slane %v3743_v38, 5  ;;  %v3767_v24 = vshll.u32 %v5469_v54, 16 }
 0x104   : > { %5981 = vmatmul.mubr.msk.bf16.gmra.mxu0 %vm675_vm2, %v6165_v55  ;;  %v3707_v55 = vrot.slane %v3705_v12, 4  ;;  %v3721_v12 = vrot.slane %v3719_v2, 5  ;;  %v3732_v38 = vor.u32 %v3731_v1, %v7853_v61  ;;  %v7893_v1 = vld [vmem:[%s6363_s7 + $0x64] sm:$0xf] }
 0x105   : > { %5984 = vmatprep.mubr.msk.bf16.mxu0 %vm675_vm2, %v6166_v41  ;;  %v9049_v41 = vcombine.low %v7509_v49, %v7524_v50  ;;  %v7835_v45 = vpop.f32.mrf.mxu1  ;;  %v7848_v49 = vpop.f32.mrf.mxu0  ;;  %v7851_v50 = vld [vmem:[%s6363_s7 + $0x50] sm:$0x1] }
 0x106   : > { %9050 = vst [vmem:[#allocation14_spill] sm:$0xff] %v7835_v45  ;;  %9052 = vst [vmem:[#allocation15_spill] sm:$0xff] %v7848_v49  ;;  %v3698_v45 = vor.u32 %v3697_v58, %v3694_v3  ;;  %v3708_v7 = vor.u32 %v3707_v55, %v7826_v43  ;;  %v3742_v49 = vrot.slane %v3740_v47, 4  ;;  %v3735_v16 = vshll.u32 %v7851_v50, 16  ;;  %v5538_v58 = vld [vmem:[%s6363_s7 + $0x48] sm:$0xe] }
 0x107   : > { %v7861_v2 = vpop.f32.mrf.mxu1  ;;  %v7869_v29 = vpop.f32.mrf.mxu0  ;;  %v3722_v47 = vor.u32 %v3721_v12, %v3718_v30  ;;  %v4395_v55 = vrot.slane %v7795_v36, 5  ;;  %v7886_v30 = vsel %vm6677_vm6, %v5553_v8, %v4388_v31 }
 0x108   : > { %5947 = vmatmul.mubr.msk.bf16.gmra.mxu1 %vm675_vm2, %v9049_v41  ;;  %v3690_v41 = vsel %vm6401_vm3, %v3685_v40, %v3689_v10  ;;  %9053 = vst [vmem:[#allocation16_spill] sm:$0xff] %v7861_v2  ;;  %v7866_v10 = vrot.slane %v3749_v59, 5  ;;  %v3755_v40 = vrot.slane %v3753_v17, 4  ;;  %v7880_v59 = vrot.slane %v3698_v45, 4 }
 0x109   : > { %5950 = vmatprep.mubr.msk.bf16.mxu1 %vm675_vm2, %v9051_v11  ;;  %v4390_v11 = vrot.slane %v4388_v31, 4  ;;  %v7871_v3 = vcombine.low %v3680_v34, %v3690_v41  ;;  %v7882_v17 = vrot.slane %v3711_v5, 5  ;;  %v3709_v34 = vrot.slane %v3708_v7, 4  ;;  %v7899_v5 = vpop.f32.mrf.mxu1  ;;  %v6170_v7 = vld [vmem:[%s6363_s7 + $0xa8] sm:$0xff]  }
 0x10a   : > { %v3746_v12 = vor.u32 %v3745_v4, %v3742_v49  ;;  %v9054_v45 = vcombine.low %v7528_v53, %v7546_v23  ;;  %9055 = vst [vmem:[#allocation17_spill] sm:$0xff] %v7899_v5  ;;  %v5554_v41 = vrot.slane %v5538_v58, 9  ;;  %v3756_v8 = vor.u32 %v3755_v40, %v7866_v10  ;;  %v6169_v4 = vld [vmem:[%s6363_s7 + $0x9c] sm:$0xff]   ;;  %v7908_v49 = vpop.f32.mrf.mxu0 }
 0x10b   : > { %v7890_v36 = vsel %vm6677_vm6, %v4390_v11, %v4391_v0  ;;  %v3759_v31 = vshll.u32 %v7877_v51, 16  ;;  %v9056_v0 = vcombine.low %v7550_v18, %v7561_v46  ;;  %9057 = vst [vmem:[#allocation11_spill] sm:$0xff] %v7908_v49  ;;  %v3723_v53 = vrot.slane %v3722_v47, 4 }
 0x10c   : > { %5985 = vmatmul.mubr.msk.bf16.gmra.mxu0 %vm675_vm2, %v6167_v39  ;;  %v3764_v39 = vshrl.u32 %v5469_v54, 16  ;;  %v3733_v23 = vrot.slane %v3732_v38, 4  ;;  %v4397_v11 = vrot.slane %v4395_v55, 4  ;;  %v4398_v54 = vrot.slane %v7851_v50, 5  ;;  %v7923_v38 = vpop.f32.mrf.mxu1 }
 0x10d   : > { %5988 = vmatprep.mubr.msk.bf16.mxu0 %vm675_vm2, %v6168_v56  ;;  %v3737_v56 = vrot.slane %v3735_v16, 5  ;;  %v5539_v16 = vld [vmem:[%s6363_s7 + $0x54] sm:$0xe]  ;;  %v3769_v40 = vrot.slane %v3767_v24, 5  ;;  %v3777_v5 = vshrl.u32 %v7893_v1, 16  ;;  %v3704_v18 = vsel %vm6401_vm3, %v7880_v59, %v7826_v43  ;;  %9058 = vst [vmem:[#allocation8_spill] sm:$0xff] %v7923_v38 }
 0x10e   : > { %v3766_v58 = vrot.slane %v3764_v39, 4  ;;  %v3714_v46 = vsel %vm6401_vm3, %v3709_v34, %v7882_v17  ;;  %v3747_v47 = vrot.slane %v3746_v12, 4  ;;  %v4402_v50 = vrot.slane %v7819_v22, 5  ;;  %v5472_v59 = vld [vmem:[%s6363_s7 + $0x6c] sm:$0xf] }
 0x10f   : > { %v7929_v39 = vsel %vm6677_vm6, %v5554_v41, %v4395_v55  ;;  %v3761_v43 = vrot.slane %v3759_v31, 5  ;;  %v3728_v22 = vsel %vm6401_vm3, %v3723_v53, %v7853_v61  ;;  %v3738_v34 = vsel %vm6401_vm3, %v3733_v23, %v3737_v56  ;;  %v7945_v41 = vld [vmem:[%s6363_s7 + $0x68] sm:$0x1]  ;;  %v7953_v53 = vld [vmem:[%s6363_s7 + $0x70] sm:$0xf] }
 0x110   : > { %5951 = vmatmul.mubr.msk.bf16.gmra.mxu1 %vm675_vm2, %v9054_v45  ;;  %v3773_v45 = vshll.u32 %v7893_v1, 16  ;;  %v7942_v12 = vsel %vm6677_vm6, %v4397_v11, %v4398_v54  ;;  %v5555_v55 = vrot.slane %v5539_v16, 9  ;;  %v4405_v31 = vrot.slane %v7877_v51, 5 }
 0x111   : > { %5954 = vmatprep.mubr.msk.bf16.mxu1 %vm675_vm2, %v9056_v0  ;;  %v3757_v0 = vrot.slane %v3756_v8, 4  ;;  %v5540_v8 = vld [vmem:[%s6363_s7 + $0x60] sm:$0xe]  ;;  %v3779_v61 = vrot.slane %v3777_v5, 4  ;;  %v3752_v56 = vsel %vm6401_vm3, %v3747_v47, %v7866_v10  ;;  %v4404_v23 = vrot.slane %v4402_v50, 4 }
 0x112   : > { %v7933_v17 = vpop.f32.mrf.mxu0  ;;  %v7950_v24 = vrot.slane %v3773_v45, 5  ;;  %v3788_v11 = vshrl.u32 %v5472_v59, 16  ;;  %v3791_v54 = vshll.u32 %v5472_v59, 16  ;;  %v3783_v16 = vshll.u32 %v7945_v41, 16  ;;  %v6172_v59 = vld [vmem:[%s6363_s7 + $0xc0] sm:$0xff]  }
 0x113   : > { %9059 = vst [vmem:[#allocation19_spill] sm:$0xff] %v7933_v17  ;;  %v3762_v5 = vsel %vm6401_vm3, %v3757_v0, %v3761_v43  ;;  %v4409_v10 = vrot.slane %v7893_v1, 5  ;;  %v7975_v45 = vcombine.low %v3704_v18, %v3714_v46  ;;  %v7977_v47 = vcombine.low %v3728_v22, %v3738_v34  ;;  %v5475_v46 = vld [vmem:[%s6363_s7 + $0x78] sm:$0xf]  ;;  %v8002_v1 = vld [vmem:[%s6363_s7 + $0x7c] sm:$0xf] }
 0x114   : > { %5989 = vmatmul.mubr.msk.bf16.gmra.mxu0 %vm675_vm2, %v6169_v4  ;;  %v3770_v4 = vor.u32 %v3769_v40, %v3766_v58  ;;  %v5556_v58 = vrot.slane %v5540_v8, 9  ;;  %v9062_v40 = vcombine.low %v7575_v9, %v7595_v14  ;;  %v3797_v0 = vshll.u32 %v7953_v53, 16  ;;  %v7999_v8 = vld [vmem:[%s6363_s7 + $0x74] sm:$0x1] }
 0x115   : > { %5992 = vmatprep.mubr.msk.bf16.mxu0 %vm675_vm2, %v6170_v7  ;;  %v9060_v7 = vcombine.low %v7569_v6, %v7581_v35  ;;  %v6171_v35 = vld [vmem:[%s6363_s7 + $0xb4] sm:$0xff]   ;;  %v7973_v6 = vpop.f32.mrf.mxu0  ;;  %v3801_v43 = vshrl.u32 %v7953_v53, 16  ;;  %v7986_v9 = vsel %vm6677_vm6, %v5555_v55, %v4402_v50  ;;  %v3780_v18 = vor.u32 %v3779_v61, %v7950_v24 }
 0x116   : > { %9063 = vst [vmem:[#allocation21_spill] sm:$0xff] %v7973_v6  ;;  %v7988_v14 = vrot.slane %v3770_v4, 4  ;;  %v7992_v22 = vcombine.low %v3752_v56, %v3762_v5  ;;  %v7996_v34 = vsel %vm6677_vm6, %v4404_v23, %v4405_v31  ;;  %v8006_v55 = vrot.slane %v3783_v16, 5  ;;  %v5478_v56 = vld [vmem:[%s6363_s7 + $0x84] sm:$0xf] }
 0x117   : > { %v7962_v51 = vpop.f32.mrf.mxu1  ;;  %v8010_v4 = vsel %vm6677_vm6, %v5556_v58, %v4409_v10  ;;  %v4411_v61 = vrot.slane %v4409_v10, 4  ;;  %v4412_v31 = vrot.slane %v7945_v41, 5  ;;  %v8015_v23 = vpop.f32.mrf.mxu0  ;;  %v3812_v5 = vshrl.u32 %v5475_v46, 16  ;;  %v5541_v58 = vld [vmem:[%s6363_s7 + $0x6c] sm:$0xe] }
 0x118   : > { %5955 = vmatmul.mubr.msk.bf16.gmra.mxu1 %vm675_vm2, %v9060_v7  ;;  %9061 = vst [vmem:[#allocation20_spill] sm:$0xff] %v7962_v51  ;;  %9064 = vst [vmem:[#allocation22_spill] sm:$0xff] %v7992_v22  ;;  %v3790_v7 = vrot.slane %v3788_v11, 4  ;;  %v8017_v11 = vrot.slane %v3797_v0, 5  ;;  %v8020_v51 = vld [vmem:[%s6363_s7 + $0x88] sm:$0xf] }
 0x119   : > { %5958 = vmatprep.mubr.msk.bf16.mxu1 %vm675_vm2, %v9062_v40  ;;  %v3793_v40 = vrot.slane %v3791_v54, 5  ;;  %v8004_v50 = vpop.f32.mrf.mxu1  ;;  %9066 = vst [vmem:[#allocation24_spill] sm:$0xff] %v8015_v23  ;;  %v3803_v54 = vrot.slane %v3801_v43, 4  ;;  %v8027_v41 = vrot.slane %v3780_v18, 4  ;;  %v3821_v10 = vshll.u32 %v8002_v1, 16 }
 0x11a   : > { %9065 = vst [vmem:[#allocation23_spill] sm:$0xff] %v8004_v50  ;;  %v3815_v50 = vshll.u32 %v5475_v46, 16  ;;  %v4416_v43 = vrot.slane %v7953_v53, 5  ;;  %v3836_v46 = vshrl.u32 %v5478_v56, 16  ;;  %v3839_v38 = vshll.u32 %v5478_v56, 16 }
 0x11b   : > { %v3794_v0 = vor.u32 %v3793_v40, %v3790_v7  ;;  %v8037_v16 = vpop.f32.mrf.mxu1  ;;  %v8041_v18 = vsel %vm6677_vm6, %v4411_v61, %v4412_v31  ;;  %v3807_v2 = vshll.u32 %v7999_v8, 16  ;;  %v3845_v7 = vshll.u32 %v8020_v51, 16  ;;  %v8046_v40 = vpop.f32.mrf.mxu0  ;;  %v5477_v61 = vld [vmem:[%s6363_s7 + $0x80] sm:$0x1]  ;;  %v5542_v22 = vld [vmem:[%s6363_s7 + $0x78] sm:$0xe] }
 0x11c   : > { %5993 = vmatmul.mubr.msk.bf16.gmra.mxu0 %vm675_vm2, %v6171_v35  ;;  %v3825_v35 = vshrl.u32 %v8002_v1, 16  ;;  %9068 = vst [vmem:[#allocation25_spill] sm:$0xff] %v8037_v16  ;;  %v3849_v53 = vshrl.u32 %v8020_v51, 16  ;;  %9069 = vst [vmem:[#allocation26_spill] sm:$0xff] %v8046_v40  ;;  %v3804_v56 = vor.u32 %v3803_v54, %v8017_v11  ;;  %v3814_v31 = vrot.slane %v3812_v5, 4 }
 0x11d   : > { %5996 = vmatprep.mubr.msk.bf16.mxu0 %vm675_vm2, %v6172_v59  ;;  %v9067_v59 = vcombine.low %v7585_v19, %v7604_v52  ;;  %v9070_v19 = vcombine.low %v7608_v48, %v7618_v26  ;;  %v6173_v52 = vld [vmem:[%s6363_s7 + $0xcc] sm:$0xff]   ;;  %v3817_v16 = vrot.slane %v3815_v50, 5  ;;  %v4419_v23 = vrot.slane %v7999_v8, 5  ;;  %v8062_v54 = vpop.f32.mrf.mxu1 }
 0x11e   : > { %v8056_v6 = vrot.slane %v3821_v10, 5  ;;  %v3827_v17 = vrot.slane %v3825_v35, 4  ;;  %v4423_v40 = vrot.slane %v8002_v1, 5  ;;  %v8060_v49 = vrot.slane %v3794_v0, 4  ;;  %9071 = vst [vmem:[#allocation27_spill] sm:$0xff] %v8062_v54 }
 0x11f   : > { %v4418_v48 = vrot.slane %v4416_v43, 4  ;;  %v3838_v26 = vrot.slane %v3836_v46, 4  ;;  %v3786_v50 = vsel %vm6401_vm3, %v8027_v41, %v8006_v55  ;;  %v8068_v8 = vrot.slane %v3807_v2, 5  ;;  %v8071_v5 = vld [vmem:[%s6363_s7 + $0x8c] sm:$0x1] }
 0x120   : > { %5959 = vmatmul.mubr.msk.bf16.gmra.mxu1 %vm675_vm2, %v9067_v59  ;;  %v5557_v59 = vrot.slane %v5541_v58, 9  ;;  %v8073_v58 = vrot.slane %v3845_v7, 5  ;;  %v3851_v1 = vrot.slane %v3849_v53, 4  ;;  %v3818_v35 = vor.u32 %v3817_v16, %v3814_v31  ;;  %v5481_v54 = vld [vmem:[%s6363_s7 + $0x90] sm:$0xf] }
 0x121   : > { %5962 = vmatprep.mubr.msk.bf16.mxu1 %vm675_vm2, %v9070_v19  ;;  %v3841_v19 = vrot.slane %v3839_v38, 5  ;;  %v3805_v38 = vrot.slane %v3804_v56, 4  ;;  %v3831_v0 = vshll.u32 %v5477_v61, 16  ;;  %v5558_v46 = vrot.slane %v5542_v22, 9 }
 0x122   : > { %v9072_v2 = vcombine.low %v7739_v20, %v7750_v63  ;;  %v8085_v55 = vsel %vm6677_vm6, %v5557_v59, %v4416_v43  ;;  %v3828_v41 = vor.u32 %v3827_v17, %v8056_v6  ;;  %v4425_v7 = vrot.slane %v4423_v40, 4  ;;  %v8100_v43 = vld [vmem:[%s6363_s7 + $0x94] sm:$0xf] }
 0x123   : > { %v4426_v53 = vrot.slane %v5477_v61, 5  ;;  %v3800_v22 = vsel %vm6401_vm3, %v8060_v49, %v8017_v11  ;;  %v8096_v20 = vsel %vm6677_vm6, %v4418_v48, %v4419_v23  ;;  %v3842_v63 = vor.u32 %v3841_v19, %v3838_v26  ;;  %v5543_v61 = vld [vmem:[%s6363_s7 + $0x84] sm:$0xe] }
 0x124   : > { %v8075_v10 = vpop.f32.mrf.mxu0  ;;  %5997 = vmatmul.mubr.msk.bf16.gmra.mxu0 %vm675_vm2, %v6173_v52  ;;  %v3855_v16 = vshll.u32 %v8071_v5, 16  ;;  %v9073_v17 = vcombine.low %v7635_v21, %v7652_v25  ;;  %v3852_v59 = vor.u32 %v3851_v1, %v8073_v58  ;;  %v4430_v49 = vrot.slane %v8020_v51, 5 }
 0x125   : > { %6036 = vmatprep.mubr.msk.bf16.mxu0 %vm675_vm2, %v9072_v2  ;;  %v3860_v11 = vshrl.u32 %v5481_v54, 16  ;;  %v3863_v23 = vshll.u32 %v5481_v54, 16  ;;  %v3810_v48 = vsel %vm6401_vm3, %v3805_v38, %v8068_v8  ;;  %v3819_v26 = vrot.slane %v3818_v35, 4  ;;  %v9108_v28 = vld [vmem:[#allocation27_spill] sm:$0xff] }
 0x126   : > { %v8088_v52 = vpop.f32.mrf.mxu0  ;;  %v3833_v21 = vrot.slane %v3831_v0, 5  ;;  %v8120_v25 = vsel %vm6677_vm6, %v5558_v46, %v4423_v40  ;;  %v3829_v51 = vrot.slane %v3828_v41, 4  ;;  %v8126_v54 = vsel %vm6677_vm6, %v4425_v7, %v4426_v53 }
 0x127   : > { %v3869_v1 = vshll.u32 %v8100_v43, 16  ;;  %v3843_v8 = vrot.slane %v3842_v63, 4  ;;  %v3857_v38 = vrot.slane %v3855_v16, 5  ;;  %v5559_v35 = vrot.slane %v5543_v61, 9 }
 0x128   : > { %v8102_v56 = vpop.f32.mrf.mxu1  ;;  %5963 = vmatmul.mubr.msk.bf16.gmra.mxu1 %vm675_vm2, %v9073_v17  ;;  %v8111_v31 = vpop.f32.mrf.mxu0  ;;  %v4433_v40 = vrot.slane %v8071_v5, 5  ;;  %v3853_v46 = vrot.slane %v3852_v59, 4  ;;  %v4432_v41 = vrot.slane %v4430_v49, 4  ;;  %v3862_v17 = vrot.slane %v3860_v11, 4 }
 0x129   : > { %6002 = vmatprep.mubr.msk.bf16.mxu1 %vm675_vm2, %v7786_v13  ;;  %v3873_v13 = vshrl.u32 %v8100_v43, 16  ;;  %v3865_v7 = vrot.slane %v3863_v23, 5  ;;  %v5573_v63 = vcombine.low %v7986_v9, %v7996_v34  ;;  %v9076_v5 = vsel %vm6401_vm3, %v7988_v14, %v7950_v24 }
 0x12a   : > { %v8122_v19 = vpop.f32.mrf.mxu1  ;;  %v8130_v2 = vpop.f32.mrf.mxu0  ;;  %v8146_v16 = vcombine.low %v9076_v5, %v3786_v50  ;;  %v9077_v11 = vcombine.low %v7809_v60, %v7839_v42  ;;  %v3824_v24 = vsel %vm6401_vm3, %v3819_v26, %v8056_v6  ;;  %v3834_v14 = vsel %vm6401_vm3, %v3829_v51, %v3833_v21  ;;  %v8181_v26 = vld [vmem:[%s6363_s7 + $0xa0] sm:$0xf]  ;;  %v5487_v60 = vld [vmem:[%s6363_s7 + $0xa8] sm:$0xf] }
 0x12b   : > { %9074 = vst [vmem:[#allocation28_spill] sm:$0xff] %v8122_v19  ;;  %v9075_v19 = vcombine.low %v7757_v15, %v7761_v62  ;;  %v8153_v15 = vld [vmem:[%s6363_s7 + $0x98] sm:$0x1]  ;;  %v8166_v50 = vrot.slane %v3869_v1, 5  ;;  %v3875_v23 = vrot.slane %v3873_v13, 4  ;;  %v8169_v61 = vcombine.low %v3800_v22, %v3810_v48 }
 0x12c   : > { %v8133_v0 = vpop.f32.mrf.mxu1  ;;  %v5834_v53 = vpop.f32.mrf.mxu0  ;;  %v3848_v42 = vsel %vm6401_vm3, %v3843_v8, %v8073_v58  ;;  %v8178_v6 = vsel %vm6677_vm6, %v5559_v35, %v4430_v49  ;;  %v3858_v22 = vsel %vm6401_vm3, %v3853_v46, %v3857_v38  ;;  %v8189_v48 = vsel %vm6677_vm6, %v4432_v41, %v4433_v40  ;;  %v5544_v8 = vld [vmem:[%s6363_s7 + $0x90] sm:$0xe] }
 0x12d   : > { %6037 = vmatmul.mubr.msk.bf16.vlgmr.msra.gmra.mxu0 %vm675_vm2, %v9075_v19  ;;  %v5484_v19 = vld [vmem:[%s6363_s7 + $0x9c] sm:$0xf]  ;;  %v3866_v51 = vor.u32 %v3865_v7, %v3862_v17  ;;  %v3879_v58 = vshll.u32 %v8153_v15, 16  ;;  %v8195_v13 = vcombine.low %v3824_v24, %v3834_v14  ;;  %v3876_v46 = vor.u32 %v3875_v23, %v8166_v50 }
 0x12e   : > { %v8155_v62 = vpop.f32.mrf.mxu1  ;;  %6040 = vmatprep.mubr.msk.bf16.mxu0 %vm675_vm2, %v9077_v11  ;;  %v1482_v5 = vpop.f32.mrf.mxu0  ;;  %v3887_v35 = vshll.u32 %v5484_v19, 16  ;;  %v4437_v40 = vrot.slane %v8100_v43, 5  ;;  %v3893_v41 = vshll.u32 %v8181_v26, 16  ;;  %v3897_v17 = vshrl.u32 %v8181_v26, 16 }
 0x12f   : > { %v8205_v11 = vcombine.low %v3848_v42, %v3858_v22  ;;  %v3881_v23 = vrot.slane %v3879_v58, 5  ;;  %v5560_v43 = vrot.slane %v5544_v8, 9  ;;  %v9078_v42 = vcombine.low %v7886_v30, %v7890_v36 }
 0x130   : > { %v5800_v21 = vpop.f32.mrf.mxu1  ;;  %6003 = vmatmul.mubr.msk.bf16.vlgmr.msra.gmra.mxu1 %vm675_vm2, %v7797_v33  ;;  %v5835_v49 = vpop.f32.mrf.mxu0  ;;  %v3884_v33 = vshrl.u32 %v5484_v19, 16  ;;  %v8209_v19 = vrot.slane %v3866_v51, 4  ;;  %v8221_v51 = vld [vmem:[%s6363_s7 + $0xac] sm:$0xf]  ;;  %v4439_v8 = vrot.slane %v4437_v40, 4 }
 0x131   : > { %v1062_v1 = vadd.f32 %v5800_v21, %v7698_v32  ;;  %6006 = vmatprep.mubr.msk.bf16.mxu1 %vm675_vm2, %v7871_v3  ;;  %v4440_v21 = vrot.slane %v8153_v15, 5  ;;  %v9079_v15 = vcombine.low %v7929_v39, %v7942_v12  ;;  %v8243_v12 = vsel %vm6677_vm6, %v5560_v43, %v4437_v40 }
 0x132   : > { %v1053_v38 = vpop.f32.mrf.mxu1  ;;  %v1485_v3 = vpop.f32.mrf.mxu0  ;;  %v3886_v22 = vrot.slane %v3884_v33, 4  ;;  %v8233_v33 = vld [vmem:[%s6363_s7 + $0xa4] sm:$0x1]  ;;  %v3872_v39 = vsel %vm6401_vm3, %v8209_v19, %v8166_v50  ;;  %v4444_v50 = vrot.slane %v8181_v26, 5 }
 0x133   : > { %v8202_v32 = vadd.f32 %v5834_v53, %v1062_v1  ;;  %v1054_v7 = vadd.f32 %v1053_v38, %v7724_v57  ;;  %v3889_v1 = vrot.slane %v3887_v35, 5  ;;  %v8227_v38 = vrot.slane %v3893_v41, 5 }
 0x134   : > { %v5801_v14 = vpop.f32.mrf.mxu1  ;;  %v5838_v53 = vpop.f32.mrf.mxu0  ;;  %v3908_v35 = vshrl.u32 %v5487_v60, 16  ;;  %v8258_v43 = vsel %vm6677_vm6, %v4439_v8, %v4440_v21 }
 0x135   : > { %v8213_v59 = vadd.f32 %v1482_v5, %v1054_v7  ;;  %v1065_v57 = vadd.f32 %v5801_v14, %v7735_v27  ;;  %6041 = vmatmul.mubr.msk.bf16.gmra.mxu0 %vm675_vm2, %v9078_v42  ;;  %v3877_v5 = vrot.slane %v3876_v46, 4  ;;  %v3899_v27 = vrot.slane %v3897_v17, 4 }
 0x136   : > { %v1056_v58 = vpop.f32.mrf.mxu1  ;;  %6044 = vmatprep.mubr.msk.bf16.mxu0 %vm675_vm2, %v9079_v15  ;;  %v1498_v36 = vpop.f32.mrf.mxu0  ;;  %v3911_v14 = vshll.u32 %v5487_v60, 16  ;;  %v9080_v60 = vld [vmem:[#allocation13_spill] sm:$0xff]  ;;  %v3910_v26 = vrot.slane %v3908_v35, 4 }
 0x137   : > { %v8229_v7 = vadd.f32 %v5835_v49, %v1065_v57  ;;  %v1057_v30 = vadd.f32 %v1056_v58, %v7784_v37  ;;  %v3917_v37 = vshll.u32 %v8221_v51, 16  ;;  %v3921_v49 = vshrl.u32 %v8221_v51, 16  ;;  %v5545_v57 = vld [vmem:[%s6363_s7 + $0x9c] sm:$0xe] }
 0x138   : > { %v5804_v42 = vpop.f32.mrf.mxu1  ;;  %6007 = vmatmul.mubr.msk.bf16.gmra.mxu1 %vm675_vm2, %v7975_v45  ;;  %v5839_v17 = vpop.f32.mrf.mxu0  ;;  %v3890_v45 = vor.u32 %v3889_v1, %v3886_v22  ;;  %v3882_v40 = vsel %vm6401_vm3, %v3877_v5, %v3881_v23  ;;  %v3903_v58 = vshll.u32 %v8233_v33, 16  ;;  %v3913_v1 = vrot.slane %v3911_v14, 5 }
 0x139   : > { %v8247_v46 = vadd.f32 %v1485_v3, %v1057_v30  ;;  %v1078_v41 = vadd.f32 %v5804_v42, %v9080_v60  ;;  %6010 = vmatprep.mubr.msk.bf16.mxu1 %vm675_vm2, %v7977_v47  ;;  %v3900_v3 = vor.u32 %v3899_v27, %v8227_v38  ;;  %v9081_v30 = vld [vmem:[#allocation15_spill] sm:$0xff]  ;;  %v5561_v60 = vrot.slane %v5545_v57, 9 }
 0x13a   : > { %v1069_v19 = vpop.f32.mrf.mxu1  ;;  %v1501_v22 = vpop.f32.mrf.mxu0  ;;  %v4447_v23 = vrot.slane %v8233_v33, 5  ;;  %v8266_v5 = vrot.slane %v3917_v37, 5  ;;  %v3923_v21 = vrot.slane %v3921_v49, 4  ;;  %v8275_v35 = vrot.slane %v3890_v45, 4  ;;  %v5546_v33 = vld [vmem:[%s6363_s7 + $0xa8] sm:$0xe] }
 0x13b   : > { %v8262_v15 = vadd.f32 %v5838_v53, %v1078_v41  ;;  %v1070_v47 = vadd.f32 %v1069_v19, %v9081_v30  ;;  %v4446_v14 = vrot.slane %v4444_v50, 4  ;;  %v8278_v41 = vld [vmem:[%s6363_s7 + $0xb0] sm:$0x1]  ;;  %v8289_v34 = vrot.slane %v3900_v3, 4  ;;  %v9083_v45 = vld [vmem:[#allocation11_spill] sm:$0xff] }
 0x13c   : > { %v5805_v42 = vpop.f32.mrf.mxu1  ;;  %v5842_v53 = vpop.f32.mrf.mxu0  ;;  %v3914_v30 = vor.u32 %v3913_v1, %v3910_v26  ;;  %v3924_v3 = vor.u32 %v3923_v21, %v8266_v5  ;;  %v9085_v26 = vld [vmem:[#allocation19_spill] sm:$0xff] }
 0x13d   : > { %v8268_v8 = vadd.f32 %v1498_v36, %v1070_v47  ;;  %v1081_v27 = vadd.f32 %v5805_v42, %v7869_v29  ;;  %6045 = vmatmul.mubr.msk.bf16.gmra.mxu0 %vm675_vm2, %v5573_v63  ;;  %v9082_v36 = vcombine.low %v8010_v4, %v8041_v18  ;;  %v8285_v29 = vcombine.low %v3872_v39, %v3882_v40  ;;  %v5490_v4 = vld [vmem:[%s6363_s7 + $0xb4] sm:$0xf] }
 0x13e   : > { %v1072_v37 = vpop.f32.mrf.mxu1  ;;  %v8291_v63 = vrot.slane %v3903_v58, 5  ;;  %v1514_v19 = vpop.f32.mrf.mxu0  ;;  %v4451_v47 = vrot.slane %v8221_v51, 5  ;;  %v9084_v39 = vld [vmem:[#allocation22_spill] sm:$0xff]  ;;  %v8302_v40 = vsel %vm6677_vm6, %v5561_v60, %v4444_v50  ;;  %v5562_v58 = vrot.slane %v5546_v33, 9 }
 0x13f   : > { %6048 = vmatprep.mubr.msk.bf16.mxu0 %vm675_vm2, %v9082_v36  ;;  %v8293_v49 = vadd.f32 %v5839_v17, %v1081_v27  ;;  %v1073_v57 = vadd.f32 %v1072_v37, %v9083_v45  ;;  %v3927_v17 = vshll.u32 %v8278_v41, 16  ;;  %v3896_v50 = vsel %vm6401_vm3, %v8275_v35, %v8227_v38  ;;  %v8325_v33 = vld [vmem:[%s6363_s7 + $0xb8] sm:$0xf]  ;;  %v9086_v38 = vld [vmem:[#allocation21_spill] sm:$0xff] }
 0x140   : > { %v5808_v18 = vpop.f32.mrf.mxu1  ;;  %6011 = vmatmul.mubr.msk.bf16.gmra.mxu1 %vm675_vm2, %v9084_v39  ;;  %v5843_v51 = vpop.f32.mrf.mxu0  ;;  %v8317_v60 = vsel %vm6677_vm6, %v4446_v14, %v4447_v23  ;;  %v4454_v27 = vrot.slane %v8278_v41, 5  ;;  %v3935_v37 = vshll.u32 %v5490_v4, 16  ;;  %v3915_v23 = vrot.slane %v3914_v30, 4 }
 0x141   : > { %v8306_v42 = vadd.f32 %v1501_v22, %v1073_v57  ;;  %v1094_v1 = vadd.f32 %v5808_v18, %v9085_v26  ;;  %6014 = vmatprep.mubr.msk.bf16.mxu1 %vm675_vm2, %v8146_v16  ;;  %v3906_v22 = vsel %vm6401_vm3, %v8289_v34, %v8291_v63  ;;  %v3932_v16 = vshrl.u32 %v5490_v4, 16  ;;  %v5493_v57 = vld [vmem:[%s6363_s7 + $0xc0] sm:$0xf] }
 0x142   : > { %v1085_v21 = vpop.f32.mrf.mxu1  ;;  %v1517_v45 = vpop.f32.mrf.mxu0  ;;  %v4453_v14 = vrot.slane %v4451_v47, 4  ;;  %v3925_v63 = vrot.slane %v3924_v3, 4  ;;  %v3929_v41 = vrot.slane %v3927_v17, 5  ;;  %v8335_v39 = vsel %vm6677_vm6, %v5562_v58, %v4451_v47  ;;  %v8350_v17 = vld [vmem:[%s6363_s7 + $0xc4] sm:$0xf] }
 0x143   : > { %v8327_v36 = vadd.f32 %v5842_v53, %v1094_v1  ;;  %v1086_v35 = vadd.f32 %v1085_v21, %v9086_v38  ;;  %v9087_v53 = vld [vmem:[#allocation24_spill] sm:$0xff]  ;;  %v9088_v30 = vcombine.low %v8085_v55, %v8096_v20  ;;  %v8345_v21 = vld [vmem:[%s6363_s7 + $0xbc] sm:$0x1]  ;;  %v3941_v38 = vshll.u32 %v8325_v33, 16 }
 0x144   : > { %v5809_v18 = vpop.f32.mrf.mxu1  ;;  %v5846_v1 = vpop.f32.mrf.mxu0  ;;  %v3945_v3 = vshrl.u32 %v8325_v33, 16  ;;  %v3934_v58 = vrot.slane %v3932_v16, 4  ;;  %v3956_v55 = vshrl.u32 %v5493_v57, 16  ;;  %v3959_v20 = vshll.u32 %v5493_v57, 16  ;;  %v5547_v16 = vld [vmem:[%s6363_s7 + $0xb4] sm:$0xe] }
 0x145   : > { %v8337_v4 = vadd.f32 %v1514_v19, %v1086_v35  ;;  %v1097_v26 = vadd.f32 %v5809_v18, %v9087_v53  ;;  %6049 = vmatmul.mubr.msk.bf16.gmra.mxu0 %vm675_vm2, %v9088_v30  ;;  %v9089_v19 = vcombine.low %v8120_v25, %v8126_v54  ;;  %v3937_v35 = vrot.slane %v3935_v37, 5  ;;  %v9090_v53 = vld [vmem:[#allocation26_spill] sm:$0xff] }
 0x146   : > { %v1088_v47 = vpop.f32.mrf.mxu1  ;;  %v1530_v34 = vpop.f32.mrf.mxu0  ;;  %v3920_v9 = vsel %vm6401_vm3, %v3915_v23, %v8266_v5  ;;  %v8364_v24 = vsel %vm6677_vm6, %v4453_v14, %v4454_v27  ;;  %v3930_v54 = vsel %vm6401_vm3, %v3925_v63, %v3929_v41  ;;  %v3965_v37 = vshll.u32 %v8350_v17, 16 }
 0x147   : > { %6052 = vmatprep.mubr.msk.bf16.mxu0 %vm675_vm2, %v9089_v19  ;;  %v8356_v18 = vadd.f32 %v5843_v51, %v1097_v26  ;;  %v1089_v30 = vadd.f32 %v1088_v47, %v9090_v53  ;;  %v3951_v51 = vshll.u32 %v8345_v21, 16  ;;  %v3969_v57 = vshrl.u32 %v8350_v17, 16 }
 0x148   : > { %v5812_v25 = vpop.f32.mrf.mxu1  ;;  %6015 = vmatmul.mubr.msk.bf16.gmra.mxu1 %vm675_vm2, %v8169_v61  ;;  %v5847_v27 = vpop.f32.mrf.mxu0  ;;  %v8379_v23 = vrot.slane %v3941_v38, 5  ;;  %v3947_v61 = vrot.slane %v3945_v3, 4  ;;  %v3938_v63 = vor.u32 %v3937_v35, %v3934_v58  ;;  %v4458_v41 = vrot.slane %v8325_v33, 5 }
 0x149   : > { %v8374_v26 = vadd.f32 %v1517_v45, %v1089_v30  ;;  %v1110_v5 = vadd.f32 %v5812_v25, %v8075_v10  ;;  %6018 = vmatprep.mubr.msk.bf16.mxu1 %vm675_vm2, %v8195_v13  ;;  %v3958_v47 = vrot.slane %v3956_v55, 4  ;;  %v3961_v19 = vrot.slane %v3959_v20, 5 }
 0x14a   : > { %v1101_v14 = vpop.f32.mrf.mxu1  ;;  %v1533_v10 = vpop.f32.mrf.mxu0  ;;  %v8385_v30 = vcombine.low %v3896_v50, %v3906_v22  ;;  %v5563_v25 = vrot.slane %v5547_v16, 9  ;;  %v8387_v38 = vcombine.low %v3920_v9, %v3930_v54  ;;  %v5580_v3 = vcombine.low %v8335_v39, %v8364_v24  ;;  %v5495_v24 = vld [vmem:[%s6363_s7 + $0xc8] sm:$0x1]  ;;  %v5496_v39 = vld [vmem:[%s6363_s7 + $0xcc] sm:$0xf] }
 0x14b   : > { %v8382_v53 = vadd.f32 %v5846_v1, %v1110_v5  ;;  %v1102_v45 = vadd.f32 %v1101_v14, %v8088_v52  ;;  %v8391_v58 = vrot.slane %v3965_v37, 5  ;;  %v3971_v33 = vrot.slane %v3969_v57, 4  ;;  %v8413_v54 = vld [vmem:[%s6363_s7 + $0xd0] sm:$0xf] }
 0x14c   : > { %v5813_v13 = vpop.f32.mrf.mxu1  ;;  %v5850_v52 = vpop.f32.mrf.mxu0  ;;  %v9092_v50 = vcombine.low %v8178_v6, %v8189_v48  ;;  %v8400_v9 = vrot.slane %v3951_v51, 5  ;;  %v4461_v22 = vrot.slane %v8345_v21, 5  ;;  %v3948_v20 = vor.u32 %v3947_v61, %v8379_v23 }
 0x14d   : > { %v8393_v1 = vadd.f32 %v1530_v34, %v1102_v45  ;;  %v1113_v35 = vadd.f32 %v5813_v13, %v8111_v31  ;;  %v9093_v34 = vcombine.low %v8243_v12, %v8258_v43  ;;  %v8409_v31 = vrot.slane %v3938_v63, 4  ;;  %v5548_v12 = vld [vmem:[%s6363_s7 + $0xc0] sm:$0xe] }
 0x14e   : > { %6053 = vmatmul.mubr.msk.bf16.gmra.mxu0 %vm675_vm2, %v9092_v50  ;;  %v1104_v55 = vpop.f32.mrf.mxu1  ;;  %v4460_v6 = vrot.slane %v4458_v41, 4  ;;  %v3962_v48 = vor.u32 %v3961_v19, %v3958_v47  ;;  %v1546_v16 = vpop.f32.mrf.mxu0  ;;  %v8420_v37 = vsel %vm6677_vm6, %v5563_v25, %v4458_v41  ;;  %v4465_v43 = vrot.slane %v8350_v17, 5 }
 0x14f   : > { %9091 = vst [vmem:[#allocation13_spill] sm:$0xff] %v8393_v1  ;;  %6056 = vmatprep.mubr.msk.bf16.mxu0 %vm675_vm2, %v9093_v34  ;;  %v8415_v51 = vadd.f32 %v5847_v27, %v1113_v35  ;;  %v1105_v21 = vadd.f32 %v1104_v55, %v8130_v2  ;;  %v3972_v5 = vor.u32 %v3971_v33, %v8391_v58  ;;  %v3975_v61 = vshll.u32 %v5495_v24, 16  ;;  %v9096_v2 = vld [vmem:[#allocation9_spill] sm:$0xff] }
 0x150   : > { %v5816_v57 = vpop.f32.mrf.mxu1  ;;  %6019 = vmatmul.mubr.msk.bf16.gmra.mxu1 %vm675_vm2, %v8205_v11  ;;  %v3980_v14 = vshrl.u32 %v5496_v39, 16  ;;  %v3983_v27 = vshll.u32 %v5496_v39, 16  ;;  %v5851_v19 = vpop.f32.mrf.mxu0  ;;  %v3989_v41 = vshll.u32 %v8413_v54, 16  ;;  %v3993_v17 = vshrl.u32 %v8413_v54, 16 }
 0x151   : > { %9094 = vst [vmem:[#allocation15_spill] sm:$0xff] %v8415_v51  ;;  %v8427_v63 = vadd.f32 %v1533_v10, %v1105_v21  ;;  %v1126_v47 = vadd.f32 %v5816_v57, %v9096_v2  ;;  %6022 = vmatprep.mubr.msk.bf16.mxu1 %vm675_vm2, %v8285_v29  ;;  %v3949_v25 = vrot.slane %v3948_v20, 4  ;;  %v4462_v11 = vsel %vm6677_vm6, %v4460_v6, %v4461_v22  ;;  %v9097_v10 = vld [vmem:[#allocation18_spill] sm:$0xff] }
 0x152   : > { %v1117_v45 = vpop.f32.mrf.mxu1  ;;  %v3963_v13 = vrot.slane %v3962_v48, 4  ;;  %v5564_v33 = vrot.slane %v5548_v12, 9  ;;  %v1549_v39 = vpop.f32.mrf.mxu0  ;;  %v4467_v55 = vrot.slane %v4465_v43, 4  ;;  %v4468_v34 = vrot.slane %v5495_v24, 5  ;;  %v9098_v20 = vld [vmem:[#allocation10_spill] sm:$0xff] }
 0x153   : > { %9095 = vst [vmem:[#allocation11_spill] sm:$0xff] %v8427_v63  ;;  %v8436_v35 = vadd.f32 %v5850_v52, %v1126_v47  ;;  %v1118_v50 = vadd.f32 %v1117_v45, %v9097_v10  ;;  %v3973_v21 = vrot.slane %v3972_v5, 4  ;;  %v3977_v57 = vrot.slane %v3975_v61, 5  ;;  %v5498_v5 = vld [vmem:[%s6363_s7 + $0xd4] sm:$0x1]  ;;  %v9100_v61 = vld [vmem:[#allocation12_spill] sm:$0xff] }
 0x154   : > { %v5817_v29 = vpop.f32.mrf.mxu1  ;;  %v3982_v2 = vrot.slane %v3980_v14, 4  ;;  %v3985_v63 = vrot.slane %v3983_v27, 5  ;;  %v5854_v22 = vpop.f32.mrf.mxu0  ;;  %v9099_v52 = vcombine.low %v8302_v40, %v8317_v60  ;;  %v8446_v6 = vrot.slane %v3989_v41, 5  ;;  %v5549_v41 = vld [vmem:[%s6363_s7 + $0xcc] sm:$0xe] }
 0x155   : > { %v8439_v51 = vadd.f32 %v1546_v16, %v1118_v50  ;;  %v1129_v1 = vadd.f32 %v5817_v29, %v9098_v20  ;;  %v3995_v24 = vrot.slane %v3993_v17, 4  ;;  %v3944_v16 = vsel %vm6401_vm3, %v8409_v31, %v8379_v23  ;;  %v9102_v50 = vld [vmem:[#allocation16_spill] sm:$0xff] }
 0x156   : > { %6057 = vmatmul.mubr.msk.bf16.gmra.mxu0 %vm675_vm2, %v9099_v52  ;;  %v1120_v48 = vpop.f32.mrf.mxu1  ;;  %v3954_v12 = vsel %vm6401_vm3, %v3949_v25, %v8400_v9  ;;  %v4472_v40 = vrot.slane %v8413_v54, 5  ;;  %v1562_v27 = vpop.f32.mrf.mxu0  ;;  %v4469_v47 = vsel %vm6677_vm6, %v4467_v55, %v4468_v34  ;;  %v5581_v9 = vcombine.low %v8420_v37, %v4462_v11 }
 0x157   : > { %6060 = vmatprep.mubr.msk.bf16.mxu0 %vm675_vm2, %v5580_v3  ;;  %v8458_v60 = vadd.f32 %v5851_v19, %v1129_v1  ;;  %v1121_v14 = vadd.f32 %v1120_v48, %v9100_v61  ;;  %v4466_v3 = vsel %vm6677_vm6, %v5564_v33, %v4465_v43  ;;  %v3968_v1 = vsel %vm6401_vm3, %v3963_v13, %v8391_v58  ;;  %v9101_v43 = vld [vmem:[#allocation14_spill] sm:$0xff] }
 0x158   : > { %v5820_v23 = vpop.f32.mrf.mxu1  ;;  %6023 = vmatmul.mubr.msk.bf16.gmra.mxu1 %vm675_vm2, %v8385_v30  ;;  %v3978_v31 = vsel %vm6401_vm3, %v3973_v21, %v3977_v57  ;;  %v3986_v54 = vor.u32 %v3985_v63, %v3982_v2  ;;  %v5855_v45 = vpop.f32.mrf.mxu0  ;;  %v3996_v30 = vor.u32 %v3995_v24, %v8446_v6  ;;  %v3999_v25 = vshll.u32 %v5498_v5, 16 }
 0x159   : > { %v8474_v19 = vadd.f32 %v1549_v39, %v1121_v14  ;;  %v1142_v17 = vadd.f32 %v5820_v23, %v9101_v43  ;;  %6026 = vmatprep.mubr.msk.bf16.mxu1 %vm675_vm2, %v8387_v38  ;;  %v5582_v11 = vcombine.low %v4466_v3, %v4469_v47  ;;  %v5565_v33 = vrot.slane %v5549_v41, 9  ;;  %v9103_v38 = vld [vmem:[#allocation17_spill] sm:$0xff]  ;;  %v9105_v41 = vld [vmem:[#allocation20_spill] sm:$0xff] }
 0x15a   : > { %v1133_v37 = vpop.f32.mrf.mxu1  ;;  %v4474_v10 = vrot.slane %v4472_v40, 4  ;;  %v4475_v58 = vrot.slane %v5498_v5, 5  ;;  %v1565_v39 = vpop.f32.mrf.mxu0  ;;  %v5514_v34 = vcombine.low %v3944_v16, %v3954_v12  ;;  %v5515_v29 = vcombine.low %v3968_v1, %v3978_v31  ;;  %v9104_v5 = vld [vmem:[#allocation8_spill] sm:$0xff] }
 0x15b   : > { %v8480_v13 = vadd.f32 %v5854_v22, %v1142_v17  ;;  %v1134_v63 = vadd.f32 %v1133_v37, %v9102_v50  ;;  %v3987_v21 = vrot.slane %v3986_v54, 4  ;;  %v3997_v52 = vrot.slane %v3996_v30, 4  ;;  %v9106_v54 = vld [vmem:[#allocation23_spill] sm:$0xff] }
 0x15c   : > { %v5821_v55 = vpop.f32.mrf.mxu1  ;;  %v5858_v20 = vpop.f32.mrf.mxu0  ;;  %v4001_v24 = vrot.slane %v3999_v25, 5  ;;  %v4473_v22 = vsel %vm6677_vm6, %v5565_v33, %v4472_v40  ;;  %v4476_v16 = vsel %vm6677_vm6, %v4474_v10, %v4475_v58  ;;  %v9107_v25 = vld [vmem:[#allocation25_spill] sm:$0xff] }
 0x15d   : > { %v8483_v57 = vadd.f32 %v1562_v27, %v1134_v63  ;;  %v1145_v2 = vadd.f32 %v5821_v55, %v9103_v38  ;;  %v3992_v3 = vsel %vm6401_vm3, %v3987_v21, %v8446_v6  ;;  %v9109_v38 = vld [vmem:[#allocation28_spill] sm:$0xff] }
 0x15e   : > { %6061 = vmatmul.mubr.msk.bf16.gmra.mxu0 %vm675_vm2, %v5581_v9  ;;  %v1136_v48 = vpop.f32.mrf.mxu1  ;;  %v1578_v14 = vpop.f32.mrf.mxu0  ;;  %v4002_v44 = vsel %vm6401_vm3, %v3997_v52, %v4001_v24  ;;  %v5583_v9 = vcombine.low %v4473_v22, %v4476_v16 }
 0x15f   : > { %6064 = vmatprep.mubr.msk.bf16.mxu0 %vm675_vm2, %v5582_v11  ;;  %v8492_v12 = vadd.f32 %v5855_v45, %v1145_v2  ;;  %v1137_v61 = vadd.f32 %v1136_v48, %v9104_v5  ;;  %v5516_v30 = vcombine.low %v3992_v3, %v4002_v44 }
 0x160   : > { %v5824_v27 = vpop.f32.mrf.mxu1  ;;  %6027 = vmatmul.mubr.msk.bf16.gmra.mxu1 %vm675_vm2, %v5514_v34  ;;  %v5859_v40 = vpop.f32.mrf.mxu0 }
 0x161   : > { %v8499_v47 = vadd.f32 %v1565_v39, %v1137_v61  ;;  %v1158_v23 = vadd.f32 %v5824_v27, %v9105_v41  ;;  %6030 = vmatprep.mubr.msk.bf16.mxu1 %vm675_vm2, %v5515_v29 }
 0x162   : > { %v1149_v1 = vpop.f32.mrf.mxu1  ;;  %v1581_v17 = vpop.f32.mrf.mxu0 }
 0x163   : > { %v8505_v31 = vadd.f32 %v5858_v20, %v1158_v23  ;;  %v1150_v43 = vadd.f32 %v1149_v1, %v9106_v54 }
 0x164   : > { %v5825_v45 = vpop.f32.mrf.mxu1  ;;  %v5862_v11 = vpop.f32.mrf.mxu0 }
 0x165   : > { %v8508_v6 = vadd.f32 %v1578_v14, %v1150_v43  ;;  %v1161_v37 = vadd.f32 %v5825_v45, %v9107_v25 }
 0x166   : > { %6065 = vmatmul.mubr.msk.bf16.gmra.mxu0 %vm675_vm2, %v5583_v9  ;;  %v1152_v33 = vpop.f32.mrf.mxu1  ;;  %v1594_v50 = vpop.f32.mrf.mxu0 }
 0x167   : > { %v8512_v10 = vadd.f32 %v5859_v40, %v1161_v37  ;;  %v1153_v58 = vadd.f32 %v1152_v33, %v9108_v28 }
 0x168   : > { %v5828_v63 = vpop.f32.mrf.mxu1  ;;  %6031 = vmatmul.mubr.msk.bf16.gmra.mxu1 %vm675_vm2, %v5516_v30  ;;  %v5863_v34 = vpop.f32.mrf.mxu0 }
 0x169   : > { %v8516_v39 = vadd.f32 %v1581_v17, %v1153_v58  ;;  %v1174_v55 = vadd.f32 %v5828_v63, %v8102_v56 }
 0x16a   : > { %v1165_v29 = vpop.f32.mrf.mxu1  ;;  %v1597_v20 = vpop.f32.mrf.mxu0 }
 0x16b   : > { %v8519_v21 = vadd.f32 %v5862_v11, %v1174_v55  ;;  %v1166_v2 = vadd.f32 %v1165_v29, %v9109_v38 }
 0x16c   : > { %v5829_v52 = vpop.f32.mrf.mxu1  ;;  %v5902_v22 = vpop.f32.mrf.mxu0 }
 0x16d   : > { %v8522_v24 = vadd.f32 %v1594_v50, %v1166_v2  ;;  %v1177_v48 = vadd.f32 %v5829_v52, %v8133_v0 }
 0x16e   : > { %v1168_v16 = vpop.f32.mrf.mxu1  ;;  %v2575_v14 = vpop.f32.mrf.mxu0 }
 0x16f   : > { %v8525_v5 = vadd.f32 %v5863_v34, %v1177_v48  ;;  %v1169_v61 = vadd.f32 %v1168_v16, %v8155_v62 }
 0x170   : > { %v5868_v56 = vpop.f32.mrf.mxu1  ;;  %v5903_v41 = vpop.f32.mrf.mxu0 }
 0x171   : > { %v8528_v27 = vadd.f32 %v1597_v20, %v1169_v61  ;;  %v1974_v3 = vadd.f32 %v5868_v56, %v8202_v32 }
 0x172   : > { %v1845_v23 = vpop.f32.mrf.mxu1  ;;  %v2578_v9 = vpop.f32.mrf.mxu0 }
 0x173   : > { %v8531_v40 = vadd.f32 %v5902_v22, %v1974_v3  ;;  %v1972_v44 = vadd.f32 %v1845_v23, %v8213_v59 }
 0x174   : > { %v5869_v0 = vpop.f32.mrf.mxu1  ;;  %v5906_v43 = vpop.f32.mrf.mxu0 }
 0x175   : > { %v8534_v1 = vadd.f32 %v2575_v14, %v1972_v44  ;;  %v1975_v54 = vadd.f32 %v5869_v0, %v8229_v7 }
 0x176   : > { %v1848_v62 = vpop.f32.mrf.mxu1  ;;  %v2591_v30 = vpop.f32.mrf.mxu0 }
 0x177   : > { %v8537_v17 = vadd.f32 %v5903_v41, %v1975_v54  ;;  %v1973_v45 = vadd.f32 %v1848_v62, %v8247_v46 }
 0x178   : > { %v5872_v32 = vpop.f32.mrf.mxu1  ;;  %v5907_v11 = vpop.f32.mrf.mxu0 }
 0x179   : > { %v8540_v25 = vadd.f32 %v2578_v9, %v1973_v45  ;;  %v1978_v37 = vadd.f32 %v5872_v32, %v8262_v15  ;;  %v9111_v32 = vld [vmem:[#allocation15_spill] sm:$0xff] }
 0x17a   : > { %v1861_v59 = vpop.f32.mrf.mxu1  ;;  %v2594_v58 = vpop.f32.mrf.mxu0 }
 0x17b   : > { %v8543_v33 = vadd.f32 %v5906_v43, %v1978_v37  ;;  %v1976_v28 = vadd.f32 %v1861_v59, %v8268_v8  ;;  %v9110_v43 = vld [vmem:[#allocation13_spill] sm:$0xff] }
 0x17c   : > { %v5873_v7 = vpop.f32.mrf.mxu1  ;;  %v5910_v55 = vpop.f32.mrf.mxu0 }
 0x17d   : > { %v8546_v50 = vadd.f32 %v2591_v30, %v1976_v28  ;;  %v1979_v63 = vadd.f32 %v5873_v7, %v8293_v49  ;;  %v9112_v28 = vld [vmem:[#allocation11_spill] sm:$0xff] }
 0x17e   : > { %v1864_v46 = vpop.f32.mrf.mxu1  ;;  %v2607_v38 = vpop.f32.mrf.mxu0 }
 0x17f   : > { %v8549_v34 = vadd.f32 %v5907_v11, %v1979_v63  ;;  %v1977_v29 = vadd.f32 %v1864_v46, %v8306_v42 }
 0x180   : > { %v5876_v15 = vpop.f32.mrf.mxu1  ;;  %v5911_v52 = vpop.f32.mrf.mxu0 }
 0x181   : > { %v8552_v2 = vadd.f32 %v2594_v58, %v1977_v29  ;;  %v1982_v20 = vadd.f32 %v5876_v15, %v8327_v36 }
 0x182   : > { %v1877_v8 = vpop.f32.mrf.mxu1  ;;  %v2610_v16 = vpop.f32.mrf.mxu0 }
 0x183   : > { %v8555_v48 = vadd.f32 %v5910_v55, %v1982_v20  ;;  %v1980_v22 = vadd.f32 %v1877_v8, %v8337_v4 }
 0x184   : > { %v5877_v49 = vpop.f32.mrf.mxu1  ;;  %v5914_v56 = vpop.f32.mrf.mxu0 }
 0x185   : > { %v8558_v61 = vadd.f32 %v2607_v38, %v1980_v22  ;;  %v1983_v14 = vadd.f32 %v5877_v49, %v8356_v18 }
 0x186   : > { %v1880_v42 = vpop.f32.mrf.mxu1  ;;  %v2623_v23 = vpop.f32.mrf.mxu0 }
 0x187   : > { %v8561_v3 = vadd.f32 %v5911_v52, %v1983_v14  ;;  %v1981_v41 = vadd.f32 %v1880_v42, %v8374_v26 }
 0x188   : > { %v5880_v36 = vpop.f32.mrf.mxu1  ;;  %v5915_v0 = vpop.f32.mrf.mxu0 }
 0x189   : > { %v8564_v44 = vadd.f32 %v2610_v16, %v1981_v41  ;;  %v1986_v9 = vadd.f32 %v5880_v36, %v8382_v53 }
 0x18a   : > { %v1893_v4 = vpop.f32.mrf.mxu1  ;;  %v2626_v45 = vpop.f32.mrf.mxu0 }
 0x18b   : > { %v8567_v54 = vadd.f32 %v5914_v56, %v1986_v9  ;;  %v1984_v62 = vadd.f32 %v1893_v4, %v9110_v43 }
 0x18c   : > { %v5881_v18 = vpop.f32.mrf.mxu1  ;;  %v5918_v11 = vpop.f32.mrf.mxu0 }
 0x18d   : > { %v8570_v30 = vadd.f32 %v2623_v23, %v1984_v62  ;;  %v1987_v37 = vadd.f32 %v5881_v18, %v9111_v32 }
 0x18e   : > { %v1896_v26 = vpop.f32.mrf.mxu1  ;;  %v2639_v7 = vpop.f32.mrf.mxu0 }
 0x18f   : > { %v8573_v59 = vadd.f32 %v5915_v0, %v1987_v37  ;;  %v1985_v58 = vadd.f32 %v1896_v26, %v9112_v28 }
 0x190   : > { %v5884_v53 = vpop.f32.mrf.mxu1  ;;  %v5919_v46 = vpop.f32.mrf.mxu0 }
 0x191   : > { %v8576_v63 = vadd.f32 %v2626_v45, %v1985_v58  ;;  %v1990_v55 = vadd.f32 %v5884_v53, %v8436_v35 }
 0x192   : > { %v1909_v29 = vpop.f32.mrf.mxu1  ;;  %v2642_v20 = vpop.f32.mrf.mxu0 }
 0x193   : > { %v8579_v38 = vadd.f32 %v5918_v11, %v1990_v55  ;;  %v1988_v15 = vadd.f32 %v1909_v29, %v8439_v51 }
 0x194   : > { %v5885_v52 = vpop.f32.mrf.mxu1  ;;  %v5922_v16 = vpop.f32.mrf.mxu0 }
 0x195   : > { %v8582_v8 = vadd.f32 %v2639_v7, %v1988_v15  ;;  %v1991_v22 = vadd.f32 %v5885_v52, %v8458_v60 }
 0x196   : > { %v1912_v49 = vpop.f32.mrf.mxu1  ;;  %v2655_v42 = vpop.f32.mrf.mxu0 }
 0x197   : > { %v8585_v14 = vadd.f32 %v5919_v46, %v1991_v22  ;;  %v1989_v56 = vadd.f32 %v1912_v49, %v8474_v19 }
 0x198   : > { %v5888_v35 = vpop.f32.mrf.mxu1  ;;  %v5923_v36 = vpop.f32.mrf.mxu0 }
 0x199   : > { %9113 = vst [vmem:[#allocation22_spill] sm:$0xff] %v8585_v14  ;;  %v8588_v41 = vadd.f32 %v2642_v20, %v1989_v56  ;;  %v1994_v23 = vadd.f32 %v5888_v35, %v8480_v13 }
 0x19a   : > { %v1925_v51 = vpop.f32.mrf.mxu1  ;;  %v2658_v4 = vpop.f32.mrf.mxu0 }
 0x19b   : > { %9114 = vst [vmem:[#allocation19_spill] sm:$0xff] %v8588_v41  ;;  %v8591_v9 = vadd.f32 %v5922_v16, %v1994_v23  ;;  %v1992_v0 = vadd.f32 %v1925_v51, %v8483_v57 }
 0x19c   : > { %v5889_v60 = vpop.f32.mrf.mxu1  ;;  %v5926_v45 = vpop.f32.mrf.mxu0 }
 0x19d   : > { %9115 = vst [vmem:[#allocation21_spill] sm:$0xff] %v8591_v9  ;;  %v8594_v43 = vadd.f32 %v2655_v42, %v1992_v0  ;;  %v1995_v62 = vadd.f32 %v5889_v60, %v8492_v12 }
 0x19e   : > { %v1928_v19 = vpop.f32.mrf.mxu1  ;;  %v2671_v37 = vpop.f32.mrf.mxu0 }
 0x19f   : > { %9116 = vst [vmem:[#allocation24_spill] sm:$0xff] %v8594_v43  ;;  %v8597_v18 = vadd.f32 %v5923_v36, %v1995_v62  ;;  %v1993_v32 = vadd.f32 %v1928_v19, %v8499_v47 }
 0x1a0   : > { %v5892_v13 = vpop.f32.mrf.mxu1  ;;  %v5927_v28 = vpop.f32.mrf.mxu0 }
 0x1a1   : > { %9117 = vst [vmem:[#allocation26_spill] sm:$0xff] %v8597_v18  ;;  %v8600_v11 = vadd.f32 %v2658_v4, %v1993_v32  ;;  %v1998_v26 = vadd.f32 %v5892_v13, %v8505_v31 }
 0x1a2   : > { %v1941_v57 = vpop.f32.mrf.mxu1  ;;  %v2674_v53 = vpop.f32.mrf.mxu0 }
 0x1a3   : > { %9118 = vst [vmem:[#allocation9_spill] sm:$0xff] %v8600_v11  ;;  %v8603_v58 = vadd.f32 %v5926_v45, %v1998_v26  ;;  %v1996_v7 = vadd.f32 %v1941_v57, %v8508_v6 }
 0x1a4   : > { %v5893_v12 = vpop.f32.mrf.mxu1  ;;  %v5930_v29 = vpop.f32.mrf.mxu0 }
 0x1a5   : > { %9119 = vst [vmem:[#allocation18_spill] sm:$0xff] %v8603_v58  ;;  %v8606_v55 = vadd.f32 %v2671_v37, %v1996_v7  ;;  %v1999_v46 = vadd.f32 %v5893_v12, %v8512_v10 }
 0x1a6   : > { %v1944_v47 = vpop.f32.mrf.mxu1  ;;  %v2687_v52 = vpop.f32.mrf.mxu0 }
 0x1a7   : > { %9120 = vst [vmem:[#allocation10_spill] sm:$0xff] %v8606_v55  ;;  %v8609_v15 = vadd.f32 %v5927_v28, %v1999_v46  ;;  %v1997_v20 = vadd.f32 %v1944_v47, %v8516_v39 }
 0x1a8   : > { %v5896_v31 = vpop.f32.mrf.mxu1  ;;  %v5931_v49 = vpop.f32.mrf.mxu0 }
 0x1a9   : > { %9121 = vst [vmem:[#allocation12_spill] sm:$0xff] %v8609_v15  ;;  %v8612_v22 = vadd.f32 %v2674_v53, %v1997_v20  ;;  %v2002_v16 = vadd.f32 %v5896_v31, %v8519_v21 }
 0x1aa   : > { %v1957_v6 = vpop.f32.mrf.mxu1  ;;  %v2690_v35 = vpop.f32.mrf.mxu0 }
 0x1ab   : > { %9122 = vst [vmem:[#allocation14_spill] sm:$0xff] %v8612_v22  ;;  %v8615_v56 = vadd.f32 %v5930_v29, %v2002_v16  ;;  %v2000_v42 = vadd.f32 %v1957_v6, %v8522_v24 }
 0x1ac   : > { %v5897_v10 = vpop.f32.mrf.mxu1  ;;  %v8621_v51 = vpop.f32.mrf.mxu0 }
 0x1ad   : > { %9123 = vst [vmem:[#allocation16_spill] sm:$0xff] %v8615_v56  ;;  %v8618_v23 = vadd.f32 %v2687_v52, %v2000_v42  ;;  %v2003_v36 = vadd.f32 %v5897_v10, %v8525_v5 }
 0x1ae   : > { %v1960_v39 = vpop.f32.mrf.mxu1  ;;  %v8626_v21 = vpop.f32.mrf.mxu0 }
 0x1af   : > { %9124 = vst [vmem:[#allocation17_spill] sm:$0xff] %v8618_v23  ;;  %v8623_v0 = vadd.f32 %v5931_v49, %v2003_v36  ;;  %v2001_v4 = vadd.f32 %v1960_v39, %v8528_v27 }
 0x1b0   : > { %v5936_v60 = vpop.f32.mrf.mxu1  ;;  %v8630_v45 = vpop.f32.mrf.mxu0 }
 0x1b1   : > { %9125 = vst [vmem:[#allocation8_spill] sm:$0xff] %v8623_v0  ;;  %v8628_v62 = vadd.f32 %v2690_v35, %v2001_v4 }
 0x1b2   : > { %v3049_v24 = vpop.f32.mrf.mxu1  ;;  %v8632_v19 = vpop.f32.mrf.mxu0 }
 0x1b3   : > { %9126 = vst [vmem:[#allocation20_spill] sm:$0xff] %v8628_v62 }
 0x1b4   : > { %v8634_v32 = vpop.f32.mrf.mxu1  ;;  %v8636_v5 = vpop.f32.mrf.mxu0 }
 0x1b6   : > { %v8638_v37 = vpop.f32.mrf.mxu1  ;;  %v8640_v13 = vpop.f32.mrf.mxu0 }
 0x1b8   : > { %v8642_v26 = vpop.f32.mrf.mxu1  ;;  %v8644_v27 = vpop.f32.mrf.mxu0 }
 0x1ba   : > { %v8646_v28 = vpop.f32.mrf.mxu1  ;;  %v8648_v57 = vpop.f32.mrf.mxu0 }
 0x1bc   : > { %v8650_v7 = vpop.f32.mrf.mxu1  ;;  %v8652_v53 = vpop.f32.mrf.mxu0 }
 0x1be   : > { %v8654_v12 = vpop.f32.mrf.mxu1  ;;  %v8656_v46 = vpop.f32.mrf.mxu0 }
 0x1c0   : > { %v8658_v29 = vpop.f32.mrf.mxu1  ;;  %v8660_v47 = vpop.f32.mrf.mxu0 }
 0x1c2   : > { %v8662_v20 = vpop.f32.mrf.mxu1  ;;  %v8664_v52 = vpop.f32.mrf.mxu0 }
 0x1c4   : > { %v8666_v31 = vpop.f32.mrf.mxu1  ;;  %v8668_v16 = vpop.f32.mrf.mxu0 }
 0x1c6   : > { %v8670_v49 = vpop.f32.mrf.mxu1  ;;  %v8672_v6 = vpop.f32.mrf.mxu0 }
 0x1c8   : > { %v8674_v42 = vpop.f32.mrf.mxu1  ;;  %v8676_v35 = vpop.f32.mrf.mxu0 }
 0x1ca   : > { %v8678_v10 = vpop.f32.mrf.mxu1  ;;  %v8680_v36 = vpop.f32.mrf.mxu0 }
 0x1cc   : > { %v8682_v39 = vpop.f32.mrf.mxu1  ;;  %v8684_v4 = vpop.f32.mrf.mxu0 }
 0x1ce   : > { %v8686_v62 = vpop.f32.mrf.mxu1  ;;  %v8688_v0 = vpop.f32.mrf.mxu0 }
 0x1cf   : > { %9127 = vst [vmem:[#allocation23_spill] sm:$0xff] %v8688_v0 }
 0x1d0   : > { %v8690_v23 = vpop.f32.mrf.mxu1  ;;  %v8692_v56 = vpop.f32.mrf.mxu0 }
 0x1d1   : > { %9128 = vst [vmem:[#allocation25_spill] sm:$0xff] %v8692_v56 }
 0x1d2   : > { %v8694_v22 = vpop.f32.mrf.mxu1  ;;  %v8696_v15 = vpop.f32.mrf.mxu0 }
 0x1d3   : > { %9129 = vst [vmem:[#allocation27_spill] sm:$0xff] %v8696_v15 }
 0x1d4   : > { %v8698_v55 = vpop.f32.mrf.mxu1  ;;  %v8700_v58 = vpop.f32.mrf.mxu0 }
 0x1d5   : > { %9130 = vst [vmem:[#allocation28_spill] sm:$0xff] %v8698_v55  ;;  %9131 = vst [vmem:[#allocation13_spill] sm:$0xff] %v8700_v58 }
 0x1d6   : > { %v8702_v11 = vpop.f32.mrf.mxu1  ;;  %v8704_v18 = vpop.f32.mrf.mxu0 }
 0x1d7   : > { %9132 = vst [vmem:[#allocation15_spill] sm:$0xff] %v8702_v11  ;;  %9133 = vst [vmem:[#allocation11_spill] sm:$0xff] %v8704_v18 }
 0x1d8   : > { %v8706_v43 = vpop.f32.mrf.mxu1  ;;  %v8708_v9 = vpop.f32.mrf.mxu0 }
 0x1d9   : > { %9134 = vst [vmem:[#allocation29_spill] sm:$0xff] %v8706_v43  ;;  %9135 = vst [vmem:[#allocation30_spill] sm:$0xff] %v8708_v9 }
 0x1da   : > { %v8710_v41 = vpop.f32.mrf.mxu1  ;;  %v8712_v0 = vpop.f32.mrf.mxu0 }
 0x1db   : > { %9136 = vst [vmem:[#allocation31_spill] sm:$0xff] %v8710_v41  ;;  %9137 = vst [vmem:[#allocation32_spill] sm:$0xff] %v8712_v0 }
 0x1dc   : > { %v8714_v56 = vpop.f32.mrf.mxu1  ;;  %v8716_v14 = vpop.f32.mrf.mxu0 }
 0x1dd   : > { %9138 = vst [vmem:[#allocation33_spill] sm:$0xff] %v8714_v56  ;;  %9139 = vst [vmem:[#allocation34_spill] sm:$0xff] %v8716_v14 }
 0x1de   : > { %v8718_v15 = vpop.f32.mrf.mxu1  ;;  %v8720_v58 = vpop.f32.mrf.mxu0 }
 0x1df   : > { %9140 = vst [vmem:[#allocation35_spill] sm:$0xff] %v8718_v15  ;;  %9141 = vst [vmem:[#allocation36_spill] sm:$0xff] %v8720_v58 }
 0x1e0   : > { %v8722_v11 = vpop.f32.mrf.mxu1  ;;  %v8724_v18 = vpop.f32.mrf.mxu0 }
 0x1e1   : > { %9142 = vst [vmem:[#allocation37_spill] sm:$0xff] %v8722_v11  ;;  %9143 = vst [vmem:[#allocation38_spill] sm:$0xff] %v8724_v18  ;;  %v3178_v18 = vadd.f32 %v5936_v60, %v8531_v40 }
 0x1e2   : > { %v8726_v43 = vpop.f32.mrf.mxu1  ;;  %v8728_v9 = vpop.f32.mrf.mxu0 }
 0x1e3   : > { %9144 = vst [vmem:[#allocation39_spill] sm:$0xff] %v8726_v43  ;;  %9145 = vst [vmem:[#allocation40_spill] sm:$0xff] %v8728_v9 }
 0x1e4   : > { %v8730_v41 = vpop.f32.mrf.mxu1  ;;  %v8732_v0 = vpop.f32.mrf.mxu0 }
 0x1e5   : > { %9146 = vst [vmem:[#allocation41_spill] sm:$0xff] %v8730_v41  ;;  %9147 = vst [vmem:[#allocation42_spill] sm:$0xff] %v8732_v0  ;;  %v3176_v0 = vadd.f32 %v3049_v24, %v8534_v1  ;;  %v3182_v24 = vadd.f32 %v8642_v26, %v8543_v33 }
 0x1e6   : > { %v8734_v56 = vpop.f32.mrf.mxu1  ;;  %v8736_v14 = vpop.f32.mrf.mxu0 }
 0x1e7   : > { %9148 = vst [vmem:[#allocation43_spill] sm:$0xff] %v8734_v56  ;;  %9149 = vst [vmem:[#allocation44_spill] sm:$0xff] %v8736_v14  ;;  %v3541_v14 = vadd.f32 %v8621_v51, %v3178_v18  ;;  %v3539_v60 = vadd.f32 %v8626_v21, %v3176_v0  ;;  %v3180_v0 = vadd.f32 %v8646_v28, %v8546_v50 }
 0x1e8   : > { %v8738_v15 = vpop.f32.mrf.mxu1  ;;  %v8740_v55 = vpop.f32.mrf.mxu0  ;;  %v3545_v33 = vadd.f32 %v8636_v5, %v3182_v24  ;;  %v3183_v50 = vadd.f32 %v8650_v7, %v8549_v34  ;;  %v3186_v5 = vadd.f32 %v8658_v29, %v8555_v48 }
 0x1e9   : > { %9150 = vst [vmem:[#allocation45_spill] sm:$0xff] %v8738_v15  ;;  %9151 = vst [vmem:[#allocation46_spill] sm:$0xff] %v8740_v55  ;;  %v3179_v55 = vadd.f32 %v8634_v32, %v8537_v17 }
 0x1ea   : > { %v8742_v58 = vpop.f32.mrf.mxu1  ;;  %v8745_v11 = vpop.f32.mrf.mxu0  ;;  %v3549_v29 = vadd.f32 %v8652_v53, %v3186_v5  ;;  %v3190_v5 = vadd.f32 %v8674_v42, %v8567_v54 }
 0x1eb   : > { %9152 = vst [vmem:[#allocation47_spill] sm:$0xff] %v8742_v58  ;;  %9153 = vst [vmem:[#allocation48_spill] sm:$0xff] %v8745_v11  ;;  %v3177_v11 = vadd.f32 %v8638_v37, %v8540_v25  ;;  %v3542_v1 = vadd.f32 %v8630_v45, %v3179_v55 }
 0x1ec   : > { %v8747_v43 = vpop.f32.mrf.mxu1 }
 0x1ed   : > { %9154 = vst [vmem:[#allocation49_spill] sm:$0xff] %v8747_v43  ;;  %v6038_v9 = vpop.f32.mrf.mxu0  ;;  %v3540_v32 = vadd.f32 %v8632_v19, %v3177_v11  ;;  %v3181_v11 = vadd.f32 %v8654_v12, %v8552_v2  ;;  %v3543_v19 = vadd.f32 %v8640_v13, %v3180_v0  ;;  %v3546_v2 = vadd.f32 %v8644_v27, %v3183_v50 }
 0x1ee   : > { %v8753_v56 = vpop.f32.mrf.mxu1  ;;  %v3187_v0 = vadd.f32 %v8666_v31, %v8561_v3 }
 0x1ef   : > { %9155 = vst [vmem:[#allocation50_spill] sm:$0xff] %v8753_v56  ;;  %v4616_v58 = vpop.f32.mrf.mxu0  ;;  %v3544_v13 = vadd.f32 %v8648_v57, %v3181_v11 }
 0x1f0   : > { %v6004_v40 = vpop.f32.mrf.mxu1 }
 0x1f1   : > { %v4271_v43 = vadd.f32 %v6004_v40, %v3541_v14  ;;  %v6039_v15 = vpop.f32.mrf.mxu0 }
 0x1f2   : > { %v4142_v41 = vpop.f32.mrf.mxu1 }
 0x1f3   : > { %v4745_v18 = vadd.f32 %v6038_v9, %v4271_v43  ;;  %v4269_v51 = vadd.f32 %v4142_v41, %v3539_v60  ;;  %v4619_v56 = vpop.f32.mrf.mxu0 }
 0x1f4   : > { %v6005_v17 = vpop.f32.mrf.mxu1 }
 0x1f5   : > { %4777 = vst [vmem:[%s8768_s4 + $0x10] sm:$0xff] %v4745_v18  ;;  %v4743_v25 = vadd.f32 %v4616_v58, %v4269_v51  ;;  %v4272_v14 = vadd.f32 %v6005_v17, %v3542_v1  ;;  %v6042_v55 = vpop.f32.mrf.mxu0  ;;  %v4847_v12 = vmul.f32 %v4745_v18, %v4745_v18 }
 0x1f6   : > { %v4145_v21 = vpop.f32.mrf.mxu1 }
 0x1f7   : > { %4775 = vst [vmem:[%s8768_s4] sm:$0xff] %v4743_v25  ;;  %v4746_v41 = vadd.f32 %v6039_v15, %v4272_v14  ;;  %v4270_v9 = vadd.f32 %v4145_v21, %v3540_v32  ;;  %v4632_v43 = vpop.f32.mrf.mxu0  ;;  %v4845_v15 = vmul.f32 %v4743_v25, %v4743_v25  ;;  %v3184_v32 = vadd.f32 %v8662_v20, %v8558_v61 }
 0x1f8   : > { %v6008_v45 = vpop.f32.mrf.mxu1 }
 0x1f9   : > { %4778 = vst [vmem:[%s8768_s4 + $0x18] sm:$0xff] %v4746_v41  ;;  %v4744_v58 = vadd.f32 %v4619_v56, %v4270_v9  ;;  %v4275_v37 = vadd.f32 %v6008_v45, %v3545_v33  ;;  %v6043_v26 = vpop.f32.mrf.mxu0  ;;  %v4848_v14 = vmul.f32 %v4746_v41, %v4746_v41  ;;  %v3185_v33 = vadd.f32 %v8670_v49, %v8564_v44 }
 0x1fa   : > { %v4158_v28 = vpop.f32.mrf.mxu1  ;;  %v3547_v11 = vadd.f32 %v8656_v46, %v3184_v32  ;;  %v3550_v45 = vadd.f32 %v8660_v47, %v3187_v0  ;;  %v3189_v0 = vadd.f32 %v8686_v62, %v8576_v63 }
 0x1fb   : > { %4776 = vst [vmem:[%s8768_s4 + $0x8] sm:$0xff] %v4744_v58  ;;  %v4807_v40 = vadd.f32 %v4744_v58, %v4743_v25  ;;  %v4846_v60 = vmul.f32 %v4744_v58, %v4744_v58  ;;  %v4749_v34 = vadd.f32 %v6042_v55, %v4275_v37  ;;  %v4273_v7 = vadd.f32 %v4158_v28, %v3543_v19  ;;  %v4635_v1 = vpop.f32.mrf.mxu0 }
 0x1fc   : > { %v6009_v56 = vpop.f32.mrf.mxu1 }
 0x1fd   : > { %v4808_v24 = vadd.f32 %v4807_v40, %v4745_v18  ;;  %v4877_v51 = vadd.f32 %v4846_v60, %v4845_v15  ;;  %4781 = vst [vmem:[%s8768_s4 + $0x30] sm:$0xff] %v4749_v34  ;;  %v4747_v17 = vadd.f32 %v4632_v43, %v4273_v7  ;;  %v6046_v48 = vpop.f32.mrf.mxu0  ;;  %v4276_v25 = vadd.f32 %v6009_v56, %v3546_v2 }
 0x1fe   : > { %v4161_v27 = vpop.f32.mrf.mxu1  ;;  %v3188_v15 = vadd.f32 %v8678_v10, %v8570_v30  ;;  %v4851_v47 = vmul.f32 %v4749_v34, %v4749_v34  ;;  %v3191_v2 = vadd.f32 %v8682_v39, %v8573_v59 }
 0x1ff   : > { %v4878_v55 = vadd.f32 %v4877_v51, %v4847_v12  ;;  %4779 = vst [vmem:[%s8768_s4 + $0x20] sm:$0xff] %v4747_v17  ;;  %v4809_v57 = vadd.f32 %v4808_v24, %v4746_v41  ;;  %v4274_v18 = vadd.f32 %v4161_v27, %v3544_v13  ;;  %v4648_v21 = vpop.f32.mrf.mxu0  ;;  %v4849_v53 = vmul.f32 %v4747_v17, %v4747_v17 }
 0x200   : > { %v4750_v9 = vadd.f32 %v6043_v26, %v4276_v25  ;;  %v6012_v43 = vpop.f32.mrf.mxu1  ;;  %v3548_v26 = vadd.f32 %v8664_v52, %v3185_v33  ;;  %v3553_v24 = vadd.f32 %v8668_v16, %v3190_v5  ;;  %v3554_v32 = vadd.f32 %v8676_v35, %v3191_v2  ;;  %v9163_v2 = vld [vmem:[#allocation29_spill] sm:$0xff] }
 0x201   : > { %v4810_v61 = vadd.f32 %v4809_v57, %v4747_v17  ;;  %v4879_v20 = vadd.f32 %v4878_v55, %v4848_v14  ;;  %v4748_v50 = vadd.f32 %v4635_v1, %v4274_v18  ;;  %v4279_v3 = vadd.f32 %v6012_v43, %v3549_v29  ;;  %v6047_v31 = vpop.f32.mrf.mxu0 }
 0x202   : > { %4782 = vst [vmem:[%s8768_s4 + $0x38] sm:$0xff] %v4750_v9  ;;  %v4174_v41 = vpop.f32.mrf.mxu1  ;;  %v4852_v52 = vmul.f32 %v4750_v9, %v4750_v9  ;;  %v3194_v25 = vadd.f32 %v8690_v23, %v8579_v38  ;;  %v3552_v43 = vadd.f32 %v8680_v36, %v3189_v0  ;;  %v9168_v0 = vld [vmem:[#allocation33_spill] sm:$0xff] }
 0x203   : > { %v4880_v19 = vadd.f32 %v4879_v20, %v4849_v53  ;;  %4780 = vst [vmem:[%s8768_s4 + $0x28] sm:$0xff] %v4748_v50  ;;  %v4811_v58 = vadd.f32 %v4810_v61, %v4748_v50  ;;  %v4850_v37 = vmul.f32 %v4748_v50, %v4748_v50  ;;  %v4753_v44 = vadd.f32 %v6046_v48, %v4279_v3  ;;  %v4651_v49 = vpop.f32.mrf.mxu0  ;;  %v9156_v20 = vld [vmem:[#allocation22_spill] sm:$0xff]  ;;  %v9157_v50 = vld [vmem:[#allocation28_spill] sm:$0xff] }
 0x204   : > { %v4277_v46 = vadd.f32 %v4174_v41, %v3547_v11  ;;  %v6013_v28 = vpop.f32.mrf.mxu1  ;;  %v3557_v61 = vadd.f32 %v8684_v4, %v3194_v25  ;;  %v3195_v3 = vadd.f32 %v9157_v50, %v9156_v20 }
 0x205   : > { %v4812_v40 = vadd.f32 %v4811_v58, %v4749_v34  ;;  %v4881_v60 = vadd.f32 %v4880_v19, %v4850_v37  ;;  %4785 = vst [vmem:[%s8768_s4 + $0x50] sm:$0xff] %v4753_v44  ;;  %v4280_v7 = vadd.f32 %v6013_v28, %v3550_v45  ;;  %v6050_v1 = vpop.f32.mrf.mxu0  ;;  %v3551_v34 = vadd.f32 %v8672_v6, %v3188_v15  ;;  %v9158_v19 = vld [vmem:[#allocation23_spill] sm:$0xff] }
 0x206   : > { %v4751_v13 = vadd.f32 %v4648_v21, %v4277_v46  ;;  %v4177_v56 = vpop.f32.mrf.mxu1  ;;  %v3192_v21 = vadd.f32 %v8694_v22, %v8582_v8  ;;  %v4855_v35 = vmul.f32 %v4753_v44, %v4753_v44  ;;  %v9159_v37 = vld [vmem:[#allocation19_spill] sm:$0xff] }
 0x207   : > { %v4882_v54 = vadd.f32 %v4881_v60, %v4851_v47  ;;  %v4813_v42 = vadd.f32 %v4812_v40, %v4750_v9  ;;  %v4754_v12 = vadd.f32 %v6047_v31, %v4280_v7  ;;  %v4278_v30 = vadd.f32 %v4177_v56, %v3548_v26  ;;  %v4664_v10 = vpop.f32.mrf.mxu0  ;;  %v9161_v47 = vld [vmem:[#allocation25_spill] sm:$0xff] }
 0x208   : > { %4783 = vst [vmem:[%s8768_s4 + $0x40] sm:$0xff] %v4751_v13  ;;  %v6016_v51 = vpop.f32.mrf.mxu1  ;;  %v4853_v48 = vmul.f32 %v4751_v13, %v4751_v13  ;;  %v3555_v58 = vadd.f32 %v9158_v19, %v3192_v21  ;;  %v3558_v40 = vadd.f32 %v9161_v47, %v3195_v3  ;;  %v9177_v47 = vld [vmem:[#allocation10_spill] sm:$0xff] }
 0x209   : > { %v4814_v17 = vadd.f32 %v4813_v42, %v4751_v13  ;;  %v4883_v29 = vadd.f32 %v4882_v54, %v4852_v52  ;;  %4786 = vst [vmem:[%s8768_s4 + $0x58] sm:$0xff] %v4754_v12  ;;  %v4752_v59 = vadd.f32 %v4651_v49, %v4278_v30  ;;  %v6051_v39 = vpop.f32.mrf.mxu0  ;;  %v4283_v16 = vadd.f32 %v6016_v51, %v3553_v24  ;;  %v9164_v24 = vld [vmem:[#allocation27_spill] sm:$0xff]  ;;  %v9165_v51 = vld [vmem:[#allocation24_spill] sm:$0xff] }
 0x20a   : > { %v4190_v27 = vpop.f32.mrf.mxu1  ;;  %v4856_v8 = vmul.f32 %v4754_v12, %v4754_v12 }
 0x20b   : > { %v4884_v14 = vadd.f32 %v4883_v29, %v4853_v48  ;;  %4784 = vst [vmem:[%s8768_s4 + $0x48] sm:$0xff] %v4752_v59  ;;  %v4815_v6 = vadd.f32 %v4814_v17, %v4752_v59  ;;  %v4854_v55 = vmul.f32 %v4752_v59, %v4752_v59  ;;  %v4281_v57 = vadd.f32 %v4190_v27, %v3551_v34  ;;  %v4667_v18 = vpop.f32.mrf.mxu0  ;;  %v9166_v17 = vld [vmem:[#allocation31_spill] sm:$0xff] }
 0x20c   : > { %v4757_v33 = vadd.f32 %v6050_v1, %v4283_v16  ;;  %v6017_v53 = vpop.f32.mrf.mxu1  ;;  %v9162_v1 = vld [vmem:[#allocation21_spill] sm:$0xff]  ;;  %v3196_v48 = vadd.f32 %v9166_v17, %v9165_v51 }
 0x20d   : > { %v4816_v63 = vadd.f32 %v4815_v6, %v4753_v44  ;;  %v4885_v62 = vadd.f32 %v4884_v14, %v4854_v55  ;;  %v4755_v9 = vadd.f32 %v4664_v10, %v4281_v57  ;;  %v4284_v38 = vadd.f32 %v6017_v53, %v3554_v32  ;;  %v9160_v44 = vld [vmem:[#allocation15_spill] sm:$0xff]  ;;  %v9167_v32 = vld [vmem:[#allocation26_spill] sm:$0xff]  ;;  %v9169_v55 = vld [vmem:[#allocation13_spill] sm:$0xff] }
 0x20e   : > { %v6054_v23 = vpop.f32.mrf.mxu0  ;;  %4789 = vst [vmem:[%s8768_s4 + $0x70] sm:$0xff] %v4757_v33  ;;  %v4193_v31 = vpop.f32.mrf.mxu1  ;;  %v3193_v49 = vadd.f32 %v9160_v44, %v9159_v37  ;;  %v3198_v52 = vadd.f32 %v9163_v2, %v9162_v1  ;;  %v3199_v25 = vadd.f32 %v9168_v0, %v9167_v32  ;;  %v4859_v16 = vmul.f32 %v4757_v33, %v4757_v33  ;;  %v9175_v37 = vld [vmem:[#allocation37_spill] sm:$0xff]  ;;  %v9182_v0 = vld [vmem:[#allocation36_spill] sm:$0xff] }
 0x20f   : > { %v4886_v22 = vadd.f32 %v4885_v62, %v4855_v35  ;;  %4787 = vst [vmem:[%s8768_s4 + $0x60] sm:$0xff] %v4755_v9  ;;  %v4817_v11 = vadd.f32 %v4816_v63, %v4754_v12  ;;  %v4758_v45 = vadd.f32 %v6051_v39, %v4284_v38  ;;  %v4282_v36 = vadd.f32 %v4193_v31, %v3552_v43  ;;  %v9170_v38 = vld [vmem:[#allocation11_spill] sm:$0xff]  ;;  %v9171_v43 = vld [vmem:[#allocation9_spill] sm:$0xff]  ;;  %v9173_v31 = vld [vmem:[#allocation30_spill] sm:$0xff] }
 0x210   : > { %v4680_v41 = vpop.f32.mrf.mxu0  ;;  %v6020_v4 = vpop.f32.mrf.mxu1  ;;  %v4857_v5 = vmul.f32 %v4755_v9, %v4755_v9  ;;  %v3556_v34 = vadd.f32 %v9164_v24, %v3193_v49  ;;  %v3561_v57 = vadd.f32 %v9169_v55, %v3198_v52  ;;  %v9179_v52 = vld [vmem:[#allocation12_spill] sm:$0xff]  ;;  %v9181_v24 = vld [vmem:[#allocation34_spill] sm:$0xff] }
 0x211   : > { %v4818_v26 = vadd.f32 %v4817_v11, %v4755_v9  ;;  %v4887_v15 = vadd.f32 %v4886_v22, %v4856_v8  ;;  %4790 = vst [vmem:[%s8768_s4 + $0x78] sm:$0xff] %v4758_v45  ;;  %v4287_v46 = vadd.f32 %v6020_v4, %v3557_v61  ;;  %v4756_v60 = vadd.f32 %v4667_v18, %v4282_v36  ;;  %v9172_v61 = vld [vmem:[#allocation35_spill] sm:$0xff] }
 0x212   : > { %v6055_v28 = vpop.f32.mrf.mxu0  ;;  %v4206_v7 = vpop.f32.mrf.mxu1  ;;  %v4860_v53 = vmul.f32 %v4758_v45, %v4758_v45  ;;  %v3197_v20 = vadd.f32 %v9172_v61, %v9171_v43  ;;  %v3562_v8 = vadd.f32 %v9173_v31, %v3199_v25  ;;  %v9188_v31 = vld [vmem:[#allocation40_spill] sm:$0xff] }
 0x213   : > { %v4888_v13 = vadd.f32 %v4887_v15, %v4857_v5  ;;  %v4761_v56 = vadd.f32 %v6054_v23, %v4287_v46  ;;  %v4285_v54 = vadd.f32 %v4206_v7, %v3555_v58  ;;  %4788 = vst [vmem:[%s8768_s4 + $0x68] sm:$0xff] %v4756_v60  ;;  %v4819_v12 = vadd.f32 %v4818_v26, %v4756_v60  ;;  %v9174_v58 = vld [vmem:[#allocation18_spill] sm:$0xff]  ;;  %v9176_v46 = vld [vmem:[#allocation32_spill] sm:$0xff] }
 0x214   : > { %v4683_v42 = vpop.f32.mrf.mxu0  ;;  %v4858_v30 = vmul.f32 %v4756_v60, %v4756_v60  ;;  %v6021_v10 = vpop.f32.mrf.mxu1  ;;  %v3559_v23 = vadd.f32 %v9170_v38, %v3196_v48  ;;  %v9187_v38 = vld [vmem:[#allocation45_spill] sm:$0xff] }
 0x215   : > { %4793 = vst [vmem:[%s8768_s4 + $0x90] sm:$0xff] %v4761_v56  ;;  %v4759_v29 = vadd.f32 %v4680_v41, %v4285_v54  ;;  %v4288_v59 = vadd.f32 %v6021_v10, %v3558_v40  ;;  %v4820_v27 = vadd.f32 %v4819_v12, %v4757_v33  ;;  %v9178_v40 = vld [vmem:[#allocation39_spill] sm:$0xff] }
 0x216   : > { %v6058_v39 = vpop.f32.mrf.mxu0  ;;  %v4889_v14 = vadd.f32 %v4888_v13, %v4858_v30  ;;  %v4209_v6 = vpop.f32.mrf.mxu1  ;;  %v3200_v60 = vadd.f32 %v9178_v40, %v9177_v47  ;;  %v9180_v13 = vld [vmem:[#allocation41_spill] sm:$0xff] }
 0x217   : > { %4791 = vst [vmem:[%s8768_s4 + $0x80] sm:$0xff] %v4759_v29  ;;  %v4762_v18 = vadd.f32 %v6055_v28, %v4288_v59  ;;  %v4286_v21 = vadd.f32 %v4209_v6, %v3556_v34  ;;  %v4821_v62 = vadd.f32 %v4820_v27, %v4758_v45  ;;  %v4861_v11 = vmul.f32 %v4759_v29, %v4759_v29  ;;  %v9184_v27 = vld [vmem:[#allocation43_spill] sm:$0xff] }
 0x218   : > { %v4696_v35 = vpop.f32.mrf.mxu0  ;;  %v4890_v63 = vadd.f32 %v4889_v14, %v4859_v16  ;;  %v6024_v9 = vpop.f32.mrf.mxu1  ;;  %v3202_v45 = vadd.f32 %v9175_v37, %v9174_v58  ;;  %v3560_v28 = vadd.f32 %v9176_v46, %v3197_v20  ;;  %v3203_v54 = vadd.f32 %v9180_v13, %v9179_v52  ;;  %v9183_v16 = vld [vmem:[#allocation14_spill] sm:$0xff]  ;;  %v9193_v46 = vld [vmem:[#allocation49_spill] sm:$0xff]  ;;  %v9194_v13 = vld [vmem:[#allocation44_spill] sm:$0xff] }
 0x219   : > { %4794 = vst [vmem:[%s8768_s4 + $0x98] sm:$0xff] %v4762_v18  ;;  %v4760_v33 = vadd.f32 %v4683_v42, %v4286_v21  ;;  %v4291_v50 = vadd.f32 %v6024_v9, %v3561_v57  ;;  %v4822_v22 = vadd.f32 %v4821_v62, %v4759_v29  ;;  %v4863_v42 = vmul.f32 %v4761_v56, %v4761_v56  ;;  %v9185_v57 = vld [vmem:[#allocation38_spill] sm:$0xff]  ;;  %v9186_v9 = vld [vmem:[#allocation16_spill] sm:$0xff] }
 0x21a   : > { %v6059_v3 = vpop.f32.mrf.mxu0  ;;  %v4891_v41 = vadd.f32 %v4890_v63, %v4860_v53  ;;  %v4222_v19 = vpop.f32.mrf.mxu1  ;;  %v3565_v34 = vadd.f32 %v9181_v24, %v3202_v45  ;;  %v4864_v29 = vmul.f32 %v4762_v18, %v4762_v18  ;;  %v3563_v25 = vadd.f32 %v9182_v0, %v3200_v60 }
 0x21b   : > { %4792 = vst [vmem:[%s8768_s4 + $0x88] sm:$0xff] %v4760_v33  ;;  %v4862_v44 = vmul.f32 %v4760_v33, %v4760_v33  ;;  %v4765_v49 = vadd.f32 %v6058_v39, %v4291_v50  ;;  %v4289_v36 = vadd.f32 %v4222_v19, %v3559_v23  ;;  %v4823_v5 = vadd.f32 %v4822_v22, %v4760_v33  ;;  %v9189_v22 = vld [vmem:[#allocation17_spill] sm:$0xff] }
 0x21c   : > { %v4699_v4 = vpop.f32.mrf.mxu0  ;;  %v4892_v26 = vadd.f32 %v4891_v41, %v4861_v11  ;;  %v6025_v15 = vpop.f32.mrf.mxu1  ;;  %v3201_v14 = vadd.f32 %v9184_v27, %v9183_v16  ;;  %v3566_v21 = vadd.f32 %v9185_v57, %v3203_v54  ;;  %v9190_v11 = vld [vmem:[#allocation47_spill] sm:$0xff] }
 0x21d   : > { %4797 = vst [vmem:[%s8768_s4 + $0xb0] sm:$0xff] %v4765_v49  ;;  %v4763_v7 = vadd.f32 %v4696_v35, %v4289_v36  ;;  %v4292_v1 = vadd.f32 %v6025_v15, %v3562_v8  ;;  %v4824_v12 = vadd.f32 %v4823_v5, %v4761_v56  ;;  %v3204_v41 = vadd.f32 %v9190_v11, %v9189_v22  ;;  %v9192_v15 = vld [vmem:[#allocation8_spill] sm:$0xff] }
 0x21e   : > { %v6062_v2 = vpop.f32.mrf.mxu0  ;;  %v4893_v30 = vadd.f32 %v4892_v26, %v4862_v44  ;;  %v4225_v10 = vpop.f32.mrf.mxu1  ;;  %v3564_v8 = vadd.f32 %v9188_v31, %v3201_v14  ;;  %v4867_v45 = vmul.f32 %v4765_v49, %v4765_v49  ;;  %v9191_v26 = vld [vmem:[#allocation42_spill] sm:$0xff]  ;;  %v9198_v14 = vld [vmem:[#allocation48_spill] sm:$0xff] }
 0x21f   : > { %4795 = vst [vmem:[%s8768_s4 + $0xa0] sm:$0xff] %v4763_v7  ;;  %v4766_v51 = vadd.f32 %v6059_v3, %v4292_v1  ;;  %v4290_v17 = vadd.f32 %v4225_v10, %v3560_v28  ;;  %v4825_v39 = vadd.f32 %v4824_v12, %v4762_v18  ;;  %v4865_v53 = vmul.f32 %v4763_v7, %v4763_v7 }
 0x220   : > { %v4712_v48 = vpop.f32.mrf.mxu0  ;;  %v4894_v59 = vadd.f32 %v4893_v30, %v4863_v42  ;;  %v6028_v32 = vpop.f32.mrf.mxu1  ;;  %v3206_v18 = vadd.f32 %v9187_v38, %v9186_v9  ;;  %v3207_v28 = vadd.f32 %v9193_v46, %v9192_v15  ;;  %v3567_v54 = vadd.f32 %v9194_v13, %v3204_v41  ;;  %v9195_v42 = vld [vmem:[#allocation20_spill] sm:$0xff] }
 0x221   : > { %4798 = vst [vmem:[%s8768_s4 + $0xb8] sm:$0xff] %v4766_v51  ;;  %v4764_v56 = vadd.f32 %v4699_v4, %v4290_v17  ;;  %v4295_v6 = vadd.f32 %v6028_v32, %v3565_v34  ;;  %v4826_v35 = vadd.f32 %v4825_v39, %v4763_v7  ;;  %v4868_v60 = vmul.f32 %v4766_v51, %v4766_v51 }
 0x222   : > { %v6063_v55 = vpop.f32.mrf.mxu0  ;;  %v4895_v63 = vadd.f32 %v4894_v59, %v4864_v29  ;;  %v4238_v62 = vpop.f32.mrf.mxu1  ;;  %v3569_v5 = vadd.f32 %v9191_v26, %v3206_v18  ;;  %v9197_v29 = vld [vmem:[#allocation46_spill] sm:$0xff] }
 0x223   : > { %4796 = vst [vmem:[%s8768_s4 + $0xa8] sm:$0xff] %v4764_v56  ;;  %v4866_v23 = vmul.f32 %v4764_v56, %v4764_v56  ;;  %v4769_v43 = vadd.f32 %v6062_v2, %v4295_v6  ;;  %v4293_v61 = vadd.f32 %v4238_v62, %v3563_v25  ;;  %v4827_v50 = vadd.f32 %v4826_v35, %v4764_v56 }
 0x224   : > { %v4715_v20 = vpop.f32.mrf.mxu0  ;;  %v4896_v33 = vadd.f32 %v4895_v63, %v4865_v53  ;;  %v6029_v3 = vpop.f32.mrf.mxu1  ;;  %v3570_v59 = vadd.f32 %v9197_v29, %v3207_v28 }
 0x225   : > { %4801 = vst [vmem:[%s8768_s4 + $0xd0] sm:$0xff] %v4769_v43  ;;  %v4767_v19 = vadd.f32 %v4712_v48, %v4293_v61  ;;  %v4296_v58 = vadd.f32 %v6029_v3, %v3566_v21  ;;  %v4828_v44 = vadd.f32 %v4827_v50, %v4765_v49  ;;  %v9196_v49 = vld [vmem:[#allocation50_spill] sm:$0xff]  ;;  %v4871_v57 = vmul.f32 %v4769_v43, %v4769_v43 }
 0x226   : > { %v6066_v37 = vpop.f32.mrf.mxu0  ;;  %v4897_v36 = vadd.f32 %v4896_v33, %v4866_v23  ;;  %v4241_v4 = vpop.f32.mrf.mxu1  ;;  %v3205_v12 = vadd.f32 %v9196_v49, %v9195_v42 }
 0x227   : > { %4799 = vst [vmem:[%s8768_s4 + $0xc0] sm:$0xff] %v4767_v19  ;;  %v4770_v47 = vadd.f32 %v6063_v55, %v4296_v58  ;;  %v4294_v40 = vadd.f32 %v4241_v4, %v3564_v8  ;;  %v4829_v1 = vadd.f32 %v4828_v44, %v4766_v51  ;;  %v4869_v34 = vmul.f32 %v4767_v19, %v4767_v19 }
 0x228   : > { %v4898_v7 = vadd.f32 %v4897_v36, %v4867_v45  ;;  %v6032_v2 = vpop.f32.mrf.mxu1  ;;  %v4728_v52 = vpop.f32.mrf.mxu0  ;;  %v3568_v56 = vadd.f32 %v9198_v14, %v3205_v12 }
 0x229   : > { %4802 = vst [vmem:[%s8768_s4 + $0xd8] sm:$0xff] %v4770_v47  ;;  %v4768_v30 = vadd.f32 %v4715_v20, %v4294_v40  ;;  %v4299_v10 = vadd.f32 %v6032_v2, %v3569_v5  ;;  %v4830_v24 = vadd.f32 %v4829_v1, %v4767_v19  ;;  %v4872_v9 = vmul.f32 %v4770_v47, %v4770_v47 }
 0x22a   : > { %v4899_v17 = vadd.f32 %v4898_v7, %v4868_v60  ;;  %v4254_v48 = vpop.f32.mrf.mxu1  ;;  %v6067_v27 = vpop.f32.mrf.mxu0 }
 0x22b   : > { %4800 = vst [vmem:[%s8768_s4 + $0xc8] sm:$0xff] %v4768_v30  ;;  %v4870_v51 = vmul.f32 %v4768_v30, %v4768_v30  ;;  %v4773_v39 = vadd.f32 %v6066_v37, %v4299_v10  ;;  %v4297_v32 = vadd.f32 %v4254_v48, %v3567_v54  ;;  %v4831_v25 = vadd.f32 %v4830_v24, %v4768_v30 }
 0x22c   : > { %v4900_v0 = vadd.f32 %v4899_v17, %v4869_v34  ;;  %v6033_v16 = vpop.f32.mrf.mxu1  ;;  %v4731_v23 = vpop.f32.mrf.mxu0 }
 0x22d   : > { %4805 = vst [vmem:[%s8768_s4 + $0xf0] sm:$0xff] %v4773_v39  ;;  %v4771_v6 = vadd.f32 %v4728_v52, %v4297_v32  ;;  %v4300_v55 = vadd.f32 %v6033_v16, %v3570_v59  ;;  %v4832_v21 = vadd.f32 %v4831_v25, %v4769_v43 }
 0x22e   : > { %v4901_v35 = vadd.f32 %v4900_v0, %v4870_v51  ;;  %v4257_v53 = vpop.f32.mrf.mxu1 }
 0x22f   : > { %4803 = vst [vmem:[%s8768_s4 + $0xe0] sm:$0xff] %v4771_v6  ;;  %v4774_v63 = vadd.f32 %v6067_v27, %v4300_v55  ;;  %v4298_v62 = vadd.f32 %v4257_v53, %v3568_v56  ;;  %v4833_v18 = vadd.f32 %v4832_v21, %v4770_v47  ;;  %v4873_v20 = vmul.f32 %v4771_v6, %v4771_v6 }
 0x230   : > { %v4902_v38 = vadd.f32 %v4901_v35, %v4871_v57 }
 0x231   : > { %4806 = vst [vmem:[%s8768_s4 + $0xf8] sm:$0xff] %v4774_v63  ;;  %v4772_v43 = vadd.f32 %v4731_v23, %v4298_v62  ;;  %v4834_v61 = vadd.f32 %v4833_v18, %v4771_v6 }
 0x232   : > { %v4903_v33 = vadd.f32 %v4902_v38, %v4872_v9 }
 0x233   : > { %4804 = vst [vmem:[%s8768_s4 + $0xe8] sm:$0xff] %v4772_v43  ;;  %v4874_v50 = vmul.f32 %v4772_v43, %v4772_v43  ;;  %v4835_v31 = vadd.f32 %v4834_v61, %v4772_v43 }
 0x234   : > { %v4904_v3 = vadd.f32 %v4903_v33, %v4873_v20 }
 0x235   : > { %6192 = shalt.err (!%p6189_p3)
}
 0x236   : > { %s6193_s24 = scalar_lea.hbm %s8885_s9, 4096  ;;  %s6197_s27 = scalar_lea.hbm %s8951_s2, 8192 }
 0x237   : > { %p6194_p4 = scmp.ne.s32.totalorder %s8885_s9, %s6193_s24  ;;  %p6198_p9 = scmp.lt.s32.totalorder %s8885_s9, %s8951_s2 }
 0x238   : > { %p6199_p10 = scmp.lt.s32.totalorder %s6197_s27, %s6193_s24 }
 0x239   : > { %p6195_p7 = pnand %p6194_p4, %p6333_p5 }
 0x23a   : > { %p6200_p11 = por %p6199_p10, %p6198_p9 }
 0x23b   : > { %p6196_p8 = pneg %p6195_p7 }
 0x23d   : > { %p6201_p12 = pnand %p6200_p11, %p6196_p8 }
 0x23f   : > { %6204 = shalt.err (!%p6201_p12)
}
 0x240   : > { %s6272_s4 = smov 128   ;;  %s6273_s5 = smov 8   ;;  %v4875_v8 = vmul.f32 %v4773_v39, %v4773_v39  ;;  %v4836_v22 = vadd.f32 %v4835_v31, %v4773_v39  ;;  %v4905_v11 = vadd.f32 %v4904_v3, %v4874_v50  ;;  %v4876_v41 = vmul.f32 %v4774_v63, %v4774_v63 }
 0x241   : > { %6071 = dma.vmem_to_hbm [thread:$0]  (%p6333_p5), %s8887_s6, 4096, %s8885_s9, %s4916_s10, %s6272_s4, %s6272_s4, %s6273_s5  }
 0x242   : > { %v4837_v19 = vadd.f32 %v4836_v22, %v4774_v63  ;;  %v4906_v58 = vadd.f32 %v4905_v11, %v4875_v8  ;;  %s5046_s7 = sshll.u32 %s8750_s29, 1  ;;  %s5605_s6 = sshll.u32 %s6316_s16, 5 }
 0x243   : > { %s174_s8 = scalar_lea.vmem [#allocation4], %s5046_s7  ;;  %s4948_s17 = scalar_lea.hbm %s8952_s3, %s5605_s6 }
 0x244   : > { %v4838_v37 = vrot.slane %v4837_v19, 4  ;;  %v4907_v45 = vadd.f32 %v4906_v58, %v4876_v41  ;;  %s4950_s9 = sshll.u32 %s174_s8, 4  ;;  %s4921_s19 = scalar_lea.sflag [#allocation5], %s8750_s29  ;;  %s4951_s9 = int_to_ptr.vmem [resolvable:$true] %s4950_s9 }
 0x245   : > { %s6205_s20 = scalar_lea.vmem %s4951_s9, 32  ;;  %s6274_s24 = smov [#allocation4]  }
 0x246   : > { %v4839_v44 = vadd.f32 %v4838_v37, %v4837_v19  ;;  %v4908_v36 = vrot.slane %v4907_v45, 4  ;;  %p6206_p13 = scmp.ne.s32.totalorder %s4951_s9, %s6205_s20  ;;  %s6209_s16 = sshll.u32 %s6274_s24, 4  ;;  %s6210_s16 = int_to_ptr.vmem [resolvable:$false] %s6209_s16 }
 0x247   : > { %s6211_s25 = scalar_lea.vmem %s6210_s16, 64  ;;  %p6212_p2 = scmp.lt.s32.totalorder %s4951_s9, %s6210_s16 }
 0x248   : > { %v4840_v4 = vrot.slane %v4839_v44, 2  ;;  %v4909_v26 = vadd.f32 %v4908_v36, %v4907_v45  ;;  %p6207_p0 = pnand %p6206_p13, %p6333_p5  ;;  %p6213_p3 = scmp.lt.s32.totalorder %s6211_s25, %s6205_s20 }
 0x24a   : > { %v4841_v5 = vadd.f32 %v4840_v4, %v4839_v44  ;;  %v4910_v15 = vrot.slane %v4909_v26, 2  ;;  %p6208_p1 = pneg %p6207_p0  ;;  %p6214_p4 = por %p6213_p3, %p6212_p2 }
 0x24c   : > { %v4842_v46 = vrot.slane %v4841_v5, 1  ;;  %v4911_v28 = vadd.f32 %v4910_v15, %v4909_v26  ;;  %p6215_p7 = pnand %p6214_p4, %p6208_p1 }
 0x24e   : > { %v4843_v47 = vadd.f32 %v4842_v46, %v4841_v5  ;;  %v4912_v40 = vrot.slane %v4911_v28, 1 }
 0x250   : > { %4844 = vst [vmem:[%s174_s8] sm:$0x1] %v4843_v47  ;;  %v4913_v60 = vadd.f32 %v4912_v40, %v4911_v28 }
 0x252   : > { %4914 = vst [vmem:[%s174_s8 + $0x1] sm:$0x1] %v4913_v60 }
 0x253   : > { %6218 = shalt.err (!%p6215_p7)
}
 0x254   : > { %s6219_s26 = scalar_lea.hbm %s4948_s17, 32  ;;  %s6223_s28 = scalar_lea.hbm %s8952_s3, 64 }
 0x255   : > { %p6220_p8 = scmp.ne.s32.totalorder %s4948_s17, %s6219_s26  ;;  %p6224_p11 = scmp.lt.s32.totalorder %s4948_s17, %s8952_s3 }
 0x256   : > { %p6225_p12 = scmp.lt.s32.totalorder %s6223_s28, %s6219_s26 }
 0x257   : > { %p6221_p9 = pnand %p6220_p8, %p6333_p5 }
 0x258   : > { %p6226_p13 = por %p6225_p12, %p6224_p11 }
 0x259   : > { %p6222_p10 = pneg %p6221_p9 }
 0x25b   : > { %p6227_p0 = pnand %p6226_p13, %p6222_p10 }
 0x25d   : > { %6230 = shalt.err (!%p6227_p0)
}
 0x25e   : > { %6072 = dma.vmem_to_hbm [thread:$0]  (%p6333_p5), %s4951_s9, 32, %s4948_s17, %s4921_s19  }
 0x25f PF: > { %p6082_p1 = scmp.ge.s32.totalorder %s6269_s15, 2  ;;  %s4962_s5 = sand.u32 1, %s6257_s12  }
 0x260   : > { %s4963_s7 = scalar_lea.sflag [#allocation3], %s4962_s5 }
 0x261   : > { %p6076_p2 = pnand %p6082_p1, %p6337_p6 }
 0x263   : > { %p6077_p3 = pneg %p6076_p2 }
 0x265   : > { %6248 = dma.done.wait (%p6077_p3), %s4963_s7, 4096  }
 0x266   : > { %6250 = vsyncadd (%p6077_p3), %s4963_s7, 4294963200  ;;  %s4972_s6 = scalar_lea.sflag [#allocation5], %s4962_s5 }
 0x267   : > { %6252 = dma.done.wait (%p6077_p3), %s4972_s6, 32  }
 0x268   : > { %6254 = vsyncadd (%p6077_p3), %s4972_s6, 4294967264  ;;  %p17_p5 = scmp.ge.s32.totalorder %s6320_s18, 4   ;;  %s9199_s12 = smov %s6261_s13 }
 0x269   : > { %s9200_s13 = smov %s6265_s14  ;;  %s9201_s14 = smov %s6331_s21 }
 0x26a   : > { %s9202_s15 = smov %s6320_s18  ;;  %19 = sbr.rel (!%p17_p5) target bundleno = 5 (0x5), region = 90 }
 0x26f   :  { %4977 = vsyncpa [#allocation3], 1 }
 0x270   :  { %4979 = vsyncpa [#allocation3 + $0x1], 1 }
 0x271   :  { %4980 = vsyncpa [#allocation5], 1 }
 0x272   :  { %4982 = vsyncpa [#allocation5 + $0x1], 1 }

</bundles_post_ra>
